<compile_context>
chip_gen: v6e
topology: v6e:2x2x1
jax: 0.10.0
libtpu: 0.0.40
codegen_flags: <defaults>
</compile_context>

<pallas_src>
import math

import jax
import jax.numpy as jnp
import numpy as np
from jax.experimental import pallas as pl
from jax.experimental.pallas import tpu as pltpu

# ----------------------------- configuration --------------------------------
D_MODEL = 32                      # d_model (condition embedding width)
HIDDEN = 32                       # conditioner MLP hidden width per feature
FLOW_MODE = "global"
FLOW_FEATURES = [["pt", "eta", "phi"], ["pt", "eta", "phi", "mass"]]   # per object type
GLOBAL_FEATURES = ("pt", "eta", "phi", "mass")                         # dedup'd union
F_GLOBAL = len(GLOBAL_FEATURES)
MAX_CTX = 3                       # max # of conditioning kinematic features (mass)
HALF_LOG_2PI = 0.5 * math.log(2.0 * math.pi)

PACKED_IN = D_MODEL + 2 * F_GLOBAL      # 40 = [c | x | mask] packed row width
H_TOTAL = F_GLOBAL * HIDDEN             # 128 = fused hidden width (full MXU lanes)
TM = 512                                # rows per grid step (multiple of 8, lane-dense out)

_COND_FEATURES = {
    "pt":   ("eta", "phi"),
    "eta":  ("pt", "phi"),
    "phi":  ("pt", "eta"),
    "mass": ("pt", "eta", "phi"),
}
# Static column indices (into the global-feature-padded x) used as extra context.
COND_IDX = tuple(
    tuple(GLOBAL_FEATURES.index(f) for f in _COND_FEATURES[feat] if f in GLOBAL_FEATURES)
    for feat in GLOBAL_FEATURES
)


# ------------------------------ Pallas kernel --------------------------------
def kinematic_flow_kernel(pk_ref, w1_ref, b1_ref, w2_ref, b2_ref, out_ref):
    # pk: (TM, 40) = [c(32) | x(4) | m(4)], all float32.
    pk = pk_ref[...]

    # Fused conditioner for all 4 features: one 128-wide MXU matmul.  The mask
    # columns (and non-conditioning x columns) hit zero rows of the packed W1,
    # so this is exactly the per-feature variable-context flow of the reference.
    h = jnp.tanh(jnp.dot(pk, w1_ref[...], preferred_element_type=jnp.float32)
                 + b1_ref[...])                                        # (TM, 128)
    o = jnp.dot(h, w2_ref[...], preferred_element_type=jnp.float32) + b2_ref[...]  # (TM, 8)

    mu = o[:, :F_GLOBAL]                                               # (TM, 4)
    log_s = o[:, F_GLOBAL:]                                            # (TM, 4)
    x = pk[:, D_MODEL:D_MODEL + F_GLOBAL]                              # (TM, 4)
    m = pk[:, D_MODEL + F_GLOBAL:]                                     # (TM, 4)

    # Vectorized Normal log-prob across all 4 features, masked accumulate.
    z = (x - mu) * jnp.exp(-log_s)
    lp = (-0.5 * z * z - log_s - HALF_LOG_2PI) * m                     # (TM, 4)

    # Lane-dense store: (1, 1, TM) block.
    out_ref[...] = jnp.sum(lp, axis=-1)[None, None, :]


def kinematic_flow_pallas(x, c, m, packed_params):
    """x, m: [B, N, F_GLOBAL]; c: [B, N, D_MODEL]; returns log_probs [B, N]."""
    B, N, _ = x.shape
    M = B * N
    G = (M + TM - 1) // TM
    M_pad = G * TM

    packed = jnp.concatenate(
        [c.reshape(M, D_MODEL).astype(jnp.float32),
         x.reshape(M, F_GLOBAL).astype(jnp.float32),
         m.reshape(M, F_GLOBAL).astype(jnp.float32)], axis=-1)          # (M, 40)
    if M_pad != M:
        # Padded rows have mask 0 -> contribute 0; sliced off below anyway.
        packed = jnp.pad(packed, ((0, M_pad - M), (0, 0)))

    w1p, b1p, w2p, b2p = packed_params

    out = pl.pallas_call(
        kinematic_flow_kernel,
        out_shape=jax.ShapeDtypeStruct((G, 1, TM), jnp.float32),
        grid_spec=pltpu.PrefetchScalarGridSpec(
            num_scalar_prefetch=0,
            grid=(G,),
            in_specs=[
                pl.BlockSpec((TM, PACKED_IN), lambda i: (i, 0)),            # packed [c|x|m]
                pl.BlockSpec((PACKED_IN, H_TOTAL), lambda i: (0, 0)),       # W1 packed
                pl.BlockSpec((1, H_TOTAL), lambda i: (0, 0)),               # b1 packed
                pl.BlockSpec((H_TOTAL, 2 * F_GLOBAL), lambda i: (0, 0)),    # W2 packed
                pl.BlockSpec((1, 2 * F_GLOBAL), lambda i: (0, 0)),          # b2 packed
            ],
            out_specs=pl.BlockSpec((1, 1, TM), lambda i: (i, 0, 0)),
        ),
        compiler_params=pltpu.CompilerParams(
            dimension_semantics=("parallel",)),
    )(packed, w1p, b1p, w2p, b2p)

    return out.reshape(M_pad)[:M].reshape(B, N)


# ------------------------- plain-JAX glue (module logic) ---------------------
def pad_input(x, features):
    """Mirror of KinematicFlow.pad_input for the global feature list."""
    B, N, _ = x.shape
    values, mask = [], []
    for feature in GLOBAL_FEATURES:
        if feature in features:
            values.append(x[..., features.index(feature)][..., None])
            mask.append(jnp.ones((B, N, 1), x.dtype))
        else:
            values.append(jnp.zeros((B, N, 1), x.dtype))
            mask.append(jnp.zeros((B, N, 1), x.dtype))
    return jnp.concatenate(values, axis=-1), jnp.concatenate(mask, axis=-1)


def kinematic_flow_forward(xs, cs, params):
    """Forward pass in `global` flow mode; xs/cs are lists per object type."""
    assert len(xs) == len(cs)
    padded, masks = [], []
    for i in range(len(xs)):
        v, mm = pad_input(xs[i], FLOW_FEATURES[i])
        padded.append(v)
        masks.append(mm)
    x = jnp.concatenate(padded, axis=1)     # [B, N_total, F_GLOBAL]
    c = jnp.concatenate(cs, axis=1)         # [B, N_total, D_MODEL]
    m = jnp.concatenate(masks, axis=1)      # [B, N_total, F_GLOBAL]
    return kinematic_flow_pallas(x, c, m, pack_params(params))


# ------------------------------ reference (JAX) ------------------------------
def reference_forward(xs, cs, params):
    w1, b1, w2, b2 = params
    padded, masks = [], []
    for i in range(len(xs)):
        v, mm = pad_input(xs[i], FLOW_FEATURES[i])
        padded.append(v)
        masks.append(mm)
    x = jnp.concatenate(padded, axis=1)
    c = jnp.concatenate(cs, axis=1)
    m = jnp.concatenate(masks, axis=1)

    log_probs = jnp.zeros(x.shape[:2], jnp.float32)
    for j, feat in enumerate(GLOBAL_FEATURES):
        cond_idx = COND_IDX[j]
        cf = jnp.concatenate([x[..., k][..., None] for k in cond_idx], axis=-1)
        ct = jnp.concatenate([c, cf], axis=-1)                        # true (unpadded) context
        w1_act = w1[j][: D_MODEL + len(cond_idx)]                     # drop zero-padded rows
        h = jnp.tanh(ct @ w1_act + b1[j])
        o = h @ w2[j] + b2[j]
        mu, log_s = o[..., 0], o[..., 1]
        z = (x[..., j] - mu) * jnp.exp(-log_s)
        lp = -0.5 * z * z - log_s - HALF_LOG_2PI
        log_probs = log_probs + lp * m[..., j]
    return log_probs


# ------------------------------- param init / packing ------------------------
def init_params(key):
    """Per-feature flow params (matches the reference's variable-context layout)."""
    w1 = np.zeros((F_GLOBAL, D_MODEL + MAX_CTX, HIDDEN), np.float32)
    b1 = np.zeros((F_GLOBAL, HIDDEN), np.float32)
    w2 = np.zeros((F_GLOBAL, HIDDEN, 2), np.float32)
    b2 = np.zeros((F_GLOBAL, 2), np.float32)
    keys = jax.random.split(key, 4 * F_GLOBAL)
    for j in range(F_GLOBAL):
        ctx = D_MODEL + len(COND_IDX[j])
        w1[j, :ctx, :] = 0.1 * np.asarray(
            jax.random.normal(keys[4 * j + 0], (ctx, HIDDEN), jnp.float32))
        b1[j] = 0.1 * np.asarray(
            jax.random.normal(keys[4 * j + 1], (HIDDEN,), jnp.float32))
        w2[j] = 0.1 * np.asarray(
            jax.random.normal(keys[4 * j + 2], (HIDDEN, 2), jnp.float32))
        b2[j] = 0.1 * np.asarray(
            jax.random.normal(keys[4 * j + 3], (2,), jnp.float32))
    return (jnp.asarray(w1), jnp.asarray(b1), jnp.asarray(w2), jnp.asarray(b2))


def pack_params(params):
    """Host-side fusion of the 4 per-feature MLPs into MXU-friendly 2-D slabs.

    W1p: (40, 128)   rows = [c(32) | x(4) | m(4)], columns = 4 blocks of 32 hidden
                     units; per-feature conditioning-column selection baked in
                     (zero rows for the target feature and the mask columns).
    W2p: (128, 8)    block-diagonal; output columns = [mu0..mu3, ls0..ls3].
    """
    w1, b1, w2, b2 = [np.asarray(p) for p in params]
    W1p = np.zeros((PACKED_IN, H_TOTAL), np.float32)
    b1p = np.zeros((1, H_TOTAL), np.float32)
    W2p = np.zeros((H_TOTAL, 2 * F_GLOBAL), np.float32)
    b2p = np.zeros((1, 2 * F_GLOBAL), np.float32)
    for j in range(F_GLOBAL):
        h0 = j * HIDDEN
        W1p[:D_MODEL, h0:h0 + HIDDEN] = w1[j, :D_MODEL, :]
        for pos, k in enumerate(COND_IDX[j]):
            W1p[D_MODEL + k, h0:h0 + HIDDEN] = w1[j, D_MODEL + pos, :]
        b1p[0, h0:h0 + HIDDEN] = b1[j]
        W2p[h0:h0 + HIDDEN, j] = w2[j, :, 0]               # mu_j
        W2p[h0:h0 + HIDDEN, F_GLOBAL + j] = w2[j, :, 1]    # log_sigma_j
        b2p[0, j] = b2[j, 0]
        b2p[0, F_GLOBAL + j] = b2[j, 1]
    return (jnp.asarray(W1p), jnp.asarray(b1p), jnp.asarray(W2p), jnp.asarray(b2p))


# ---------------------------------- main --------------------------------------
if __name__ == "__main__":
    key = jax.random.PRNGKey(0)
    k_p, k_x0, k_x1, k_c0, k_c1 = jax.random.split(key, 5)
    params = init_params(k_p)

    B = 2
    N0, N1 = 3, 5                       # particles per object type (N_total = 8)
    xs = [
        jax.random.normal(k_x0, (B, N0, len(FLOW_FEATURES[0])), jnp.float32),  # pt,eta,phi
        jax.random.normal(k_x1, (B, N1, len(FLOW_FEATURES[1])), jnp.float32),  # pt,eta,phi,mass
    ]
    cs = [
        jax.random.normal(k_c0, (B, N0, D_MODEL), jnp.float32),
        jax.random.normal(k_c1, (B, N1, D_MODEL), jnp.float32),
    ]

    out = kinematic_flow_forward(xs, cs, params)
    out = jax.block_until_ready(out)

    ref = reference_forward(xs, cs, params)
    assert out.shape == (B, N0 + N1), out.shape
    np.testing.assert_allclose(np.asarray(out), np.asarray(ref), rtol=1e-5, atol=1e-5)

    print("KERNEL_OK")
</pallas_src>

<mosaic_0001>
module attributes {stable_mosaic.version = 11 : i64} {
  func.func @kinematic_flow_kernel(%arg0: i32, %arg1: memref<512x40xf32, #tpu.memory_space<vmem>>, %arg2: memref<40x128xf32, #tpu.memory_space<vmem>>, %arg3: memref<1x128xf32, #tpu.memory_space<vmem>>, %arg4: memref<128x8xf32, #tpu.memory_space<vmem>>, %arg5: memref<1x8xf32, #tpu.memory_space<vmem>>, %arg6: memref<1x1x512xf32, #tpu.memory_space<vmem>>) attributes {dimension_semantics = [#tpu.dimension_semantics<parallel>], iteration_bounds = array<i64: 1>, scalar_prefetch = 0 : i64, scratch_operands = 0 : i64, tpu.core_type = #tpu.core_type<tc>, window_params = [{transform_indices = @transform_0, window_bounds = array<i64: 512, 40>}, {pipeline_mode = #tpu.pipeline_mode<synchronous>, transform_indices = @transform_1, window_bounds = array<i64: 40, 128>}, {pipeline_mode = #tpu.pipeline_mode<synchronous>, transform_indices = @transform_2, window_bounds = array<i64: 1, 128>}, {pipeline_mode = #tpu.pipeline_mode<synchronous>, transform_indices = @transform_3, window_bounds = array<i64: 128, 8>}, {pipeline_mode = #tpu.pipeline_mode<synchronous>, transform_indices = @transform_4, window_bounds = array<i64: 1, 8>}, {transform_indices = @transform_5, window_bounds = array<i64: 1, 1, 512>}]} {
    %c0 = arith.constant 0 : index
    %c0_0 = arith.constant 0 : index
    %0 = vector.load %arg1[%c0, %c0_0] : memref<512x40xf32, #tpu.memory_space<vmem>>, vector<512x40xf32>
    %c0_1 = arith.constant 0 : index
    %c0_2 = arith.constant 0 : index
    %1 = vector.load %arg2[%c0_1, %c0_2] : memref<40x128xf32, #tpu.memory_space<vmem>>, vector<40x128xf32>
    %cst = arith.constant dense<0.000000e+00> : vector<512x128xf32>
    %2 = tpu.matmul %0, %1, %cst {dimension_numbers = #tpu.dot_dimension_numbers<[1], [0], [0], [1], [0, 0, 1, 1], [], []>} : vector<512x40xf32>, vector<40x128xf32>, vector<512x128xf32> -> vector<512x128xf32>
    %c0_3 = arith.constant 0 : index
    %c0_4 = arith.constant 0 : index
    %3 = vector.load %arg3[%c0_3, %c0_4] : memref<1x128xf32, #tpu.memory_space<vmem>>, vector<1x128xf32>
    %4 = vector.broadcast %3 : vector<1x128xf32> to vector<512x128xf32>
    %5 = arith.addf %2, %4 : vector<512x128xf32>
    %6 = math.tanh %5 : vector<512x128xf32>
    %c0_5 = arith.constant 0 : index
    %c0_6 = arith.constant 0 : index
    %7 = vector.load %arg4[%c0_5, %c0_6] : memref<128x8xf32, #tpu.memory_space<vmem>>, vector<128x8xf32>
    %cst_7 = arith.constant dense<0.000000e+00> : vector<512x8xf32>
    %8 = tpu.matmul %6, %7, %cst_7 {dimension_numbers = #tpu.dot_dimension_numbers<[1], [0], [0], [1], [0, 0, 1, 1], [], []>} : vector<512x128xf32>, vector<128x8xf32>, vector<512x8xf32> -> vector<512x8xf32>
    %c0_8 = arith.constant 0 : index
    %c0_9 = arith.constant 0 : index
    %9 = vector.load %arg5[%c0_8, %c0_9] : memref<1x8xf32, #tpu.memory_space<vmem>>, vector<1x8xf32>
    %10 = vector.broadcast %9 : vector<1x8xf32> to vector<512x8xf32>
    %11 = arith.addf %8, %10 : vector<512x8xf32>
    %12 = vector.extract_strided_slice %11 {offsets = [0, 0], sizes = [512, 4], strides = [1, 1]} : vector<512x8xf32> to vector<512x4xf32>
    %13 = vector.extract_strided_slice %11 {offsets = [0, 4], sizes = [512, 4], strides = [1, 1]} : vector<512x8xf32> to vector<512x4xf32>
    %14 = vector.extract_strided_slice %0 {offsets = [0, 32], sizes = [512, 4], strides = [1, 1]} : vector<512x40xf32> to vector<512x4xf32>
    %15 = vector.extract_strided_slice %0 {offsets = [0, 36], sizes = [512, 4], strides = [1, 1]} : vector<512x40xf32> to vector<512x4xf32>
    %16 = arith.subf %14, %12 : vector<512x4xf32>
    %cst_10 = arith.constant 0.000000e+00 : f32
    %17 = vector.broadcast %cst_10 : f32 to vector<512x4xf32>
    %18 = arith.subf %17, %13 : vector<512x4xf32>
    %19 = math.exp %18 : vector<512x4xf32>
    %20 = arith.mulf %16, %19 : vector<512x4xf32>
    %cst_11 = arith.constant -5.000000e-01 : f32
    %21 = vector.broadcast %cst_11 : f32 to vector<512x4xf32>
    %22 = arith.mulf %21, %20 : vector<512x4xf32>
    %23 = arith.mulf %22, %20 : vector<512x4xf32>
    %24 = arith.subf %23, %13 : vector<512x4xf32>
    %cst_12 = arith.constant 0.918938517 : f32
    %25 = vector.broadcast %cst_12 : f32 to vector<512x4xf32>
    %26 = arith.subf %24, %25 : vector<512x4xf32>
    %27 = arith.mulf %26, %15 : vector<512x4xf32>
    %cst_13 = arith.constant dense<0.000000e+00> : vector<512xf32>
    %28 = vector.multi_reduction <add>, %27, %cst_13 [1] : vector<512x4xf32> to vector<512xf32>
    %29 = vector.shape_cast %28 : vector<512xf32> to vector<1x1x512xf32>
    %c0_14 = arith.constant 0 : index
    %c0_15 = arith.constant 0 : index
    %c0_16 = arith.constant 0 : index
    %30 = vector.load %arg6[%c0_14, %c0_15, %c0_16] : memref<1x1x512xf32, #tpu.memory_space<vmem>>, vector<1x1x512xf32>
    tpu.vector_store %arg6[%c0_14, %c0_15, %c0_16], %29 {strides = array<i32>} : memref<1x1x512xf32, #tpu.memory_space<vmem>>, vector<1x1x512xf32>,
    return
  }
  func.func @transform_0(%arg0: i32) -> (i32, i32) {
    %c0_i32 = arith.constant 0 : i32
    %c0_i32_0 = arith.constant 0 : i32
    return %arg0, %c0_i32 : i32, i32
  }
  func.func @transform_1(%arg0: i32) -> (i32, i32) {
    %c0_i32 = arith.constant 0 : i32
    %c0_i32_0 = arith.constant 0 : i32
    %c0_i32_1 = arith.constant 0 : i32
    return %c0_i32, %c0_i32_0 : i32, i32
  }
  func.func @transform_2(%arg0: i32) -> (i32, i32) {
    %c0_i32 = arith.constant 0 : i32
    %c0_i32_0 = arith.constant 0 : i32
    %c0_i32_1 = arith.constant 0 : i32
    return %c0_i32, %c0_i32_0 : i32, i32
  }
  func.func @transform_3(%arg0: i32) -> (i32, i32) {
    %c0_i32 = arith.constant 0 : i32
    %c0_i32_0 = arith.constant 0 : i32
    %c0_i32_1 = arith.constant 0 : i32
    return %c0_i32, %c0_i32_0 : i32, i32
  }
  func.func @transform_4(%arg0: i32) -> (i32, i32) {
    %c0_i32 = arith.constant 0 : i32
    %c0_i32_0 = arith.constant 0 : i32
    %c0_i32_1 = arith.constant 0 : i32
    return %c0_i32, %c0_i32_0 : i32, i32
  }
  func.func @transform_5(%arg0: i32) -> (i32, i32, i32) {
    %c0_i32 = arith.constant 0 : i32
    %c0_i32_0 = arith.constant 0 : i32
    %c0_i32_1 = arith.constant 0 : i32
    return %arg0, %c0_i32, %c0_i32_0 : i32, i32, i32
  }
}

</mosaic_0001>

<bundles_post_ra>
// kernel: tpu_custom_call.1
= control target key start
LH: loop header
LB: loop body
LE: loop exit
PB: predicated region body
PF: predicated region fallthrough
CT: control target
= control target key end

     0   :  { %vm97_vm0 = vcmask 326656   ;;  %s13864_s0 = inlined_call_operand.vmem [shape: f32[512,40], index: 0, kind: input, shape index: {}]   ;;  %s13865_s1 = inlined_call_operand.vmem [shape: f32[40,128], index: 1, kind: input, shape index: {}]   ;;  %s13866_s2 = inlined_call_operand.vmem [shape: f32[1,128], index: 2, kind: input, shape index: {}]   ;;  %s13867_s3 = inlined_call_operand.vmem [shape: f32[128,8], index: 3, kind: input, shape index: {}]   ;;  %s13868_s4 = inlined_call_operand.vmem [shape: f32[1,8], index: 4, kind: input, shape index: {}]   ;;  %s13869_s5 = inlined_call_operand.hbm [shape: f32[1,1,512], index: 5, kind: output, shape index: {}]  }
   0x1   :  { %v89_v0 = vld [vmem:[%s13865_s1 + $0x20] sm:$0xff]  ;;  %v88_v1 = vld [vmem:[%s13865_s1 + $0x18] sm:$0xff]  ;;  %v87_v3 = vld [vmem:[%s13865_s1 + $0x10] sm:$0xff] }
   0x2   :  { %9243 = vmatprep.subr.mxu0 %v89_v0  ;;  %v9907_v2 = vld [vmem:[%s13864_s0] sm:$0xff]  ;;  %v86_v4 = vld [vmem:[%s13865_s1 + $0x8] sm:$0xff]  ;;  %v754_v6 = vld [vmem:[%s13867_s3 + $0x78] sm:$0xff] }
   0x3   :  { %9244 = vmatpush3.msra.mxu0 %v89_v0  ;;  %9253 = vmatprep.mubr.msk.f32.mxu0 %vm97_vm0, %v9907_v2  ;;  %v85_v5 = vld [vmem:[%s13865_s1] sm:$0xff]  ;;  %v9926_v7 = vld [vmem:[%s13864_s0 + $0x8] sm:$0xff]  ;;  %v9931_v8 = vld [vmem:[%s13864_s0 + $0x10] sm:$0xff] }
   0x4   :  { %9245 = vmatprep.subr.mxu0 %v88_v1  ;;  %9477 = vmatprep.subr.mxu1 %v754_v6  ;;  %v753_v9 = vld [vmem:[%s13867_s3 + $0x70] sm:$0xff]  ;;  %v9943_v10 = vld [vmem:[%s13864_s0 + $0x18] sm:$0xff]  ;;  %v752_v11 = vld [vmem:[%s13867_s3 + $0x68] sm:$0xff] }
   0x5   :  { %9246 = vmatpush3.msra.mxu0 %v88_v1  ;;  %9493 = vmatpush3.msra.mxu1 %v754_v6  ;;  %v9951_v12 = vld [vmem:[%s13864_s0 + $0x20] sm:$0xff]  ;;  %v9963_v14 = vld [vmem:[%s13864_s0 + $0x28] sm:$0xff]  ;;  %v750_v15 = vld [vmem:[%s13867_s3 + $0x58] sm:$0xff] }
   0x6   :  { %9247 = vmatprep.subr.mxu0 %v87_v3  ;;  %9478 = vmatprep.subr.mxu1 %v753_v9  ;;  %v751_v13 = vld [vmem:[%s13867_s3 + $0x60] sm:$0xff]  ;;  %v9971_v16 = vld [vmem:[%s13864_s0 + $0x30] sm:$0xff]  ;;  %v9983_v18 = vld [vmem:[%s13864_s0 + $0x38] sm:$0xff] }
   0x7   :  { %9248 = vmatpush3.msra.mxu0 %v87_v3  ;;  %9494 = vmatpush3.msra.mxu1 %v753_v9  ;;  %v749_v17 = vld [vmem:[%s13867_s3 + $0x50] sm:$0xff]  ;;  %v748_v19 = vld [vmem:[%s13867_s3 + $0x48] sm:$0xff]  ;;  %v9991_v20 = vld [vmem:[%s13864_s0 + $0x40] sm:$0xff] }
   0x8   :  { %9249 = vmatprep.subr.mxu0 %v86_v4  ;;  %9479 = vmatprep.subr.mxu1 %v752_v11  ;;  %v747_v21 = vld [vmem:[%s13867_s3 + $0x40] sm:$0xff]  ;;  %v10003_v22 = vld [vmem:[%s13864_s0 + $0x48] sm:$0xff]  ;;  %v746_v23 = vld [vmem:[%s13867_s3 + $0x38] sm:$0xff] }
   0x9   :  { %9250 = vmatpush3.msra.mxu0 %v86_v4  ;;  %9495 = vmatpush3.msra.mxu1 %v752_v11  ;;  %v10011_v24 = vld [vmem:[%s13864_s0 + $0x50] sm:$0xff] }
   0xa   :  { %9251 = vmatprep.subr.mxu0 %v85_v5  ;;  %9480 = vmatprep.subr.mxu1 %v751_v13 }
   0xb   :  { %9252 = vmatpush3.msra.mxu0 %v85_v5  ;;  %9496 = vmatpush3.msra.mxu1 %v751_v13 }
   0xc   :  { %9254 = vmatmul.mubr.msk.f32.vlgmr.msra.gmra.mxu0 %vm97_vm0, %v9926_v7  ;;  %9349 = vmatprep.subr.mxu0 %v754_v6 }
   0xd   :  { %9256 = vmatprep.mubr.msk.f32.mxu0 %vm97_vm0, %v9931_v8  ;;  %9350 = vmatpush3.msra.mxu0 %v754_v6 }
   0xe   :  { %9351 = vmatprep.subr.mxu0 %v753_v9  ;;  %9481 = vmatprep.subr.mxu1 %v750_v15 }
   0xf   :  { %9352 = vmatpush3.msra.mxu0 %v753_v9  ;;  %9497 = vmatpush3.msra.mxu1 %v750_v15 }
  0x10   :  { %9257 = vmatmul.mubr.msk.f32.gmra.mxu0 %vm97_vm0, %v9943_v10  ;;  %9353 = vmatprep.subr.mxu0 %v752_v11 }
  0x11   :  { %9259 = vmatprep.mubr.msk.f32.mxu0 %vm97_vm0, %v9951_v12  ;;  %9354 = vmatpush3.msra.mxu0 %v752_v11 }
  0x12   :  { %9355 = vmatprep.subr.mxu0 %v751_v13 }
  0x13   :  { %9356 = vmatpush3.msra.mxu0 %v751_v13 }
  0x14   :  { %9260 = vmatmul.mubr.msk.f32.gmra.mxu0 %vm97_vm0, %v9963_v14  ;;  %9357 = vmatprep.subr.mxu0 %v750_v15 }
  0x15   :  { %9262 = vmatprep.mubr.msk.f32.mxu0 %vm97_vm0, %v9971_v16  ;;  %9358 = vmatpush3.msra.mxu0 %v750_v15 }
  0x16   :  { %9359 = vmatprep.subr.mxu0 %v749_v17 }
  0x17   :  { %9360 = vmatpush3.msra.mxu0 %v749_v17 }
  0x18   :  { %9263 = vmatmul.mubr.msk.f32.gmra.mxu0 %vm97_vm0, %v9983_v18  ;;  %9361 = vmatprep.subr.mxu0 %v748_v19 }
  0x19   :  { %9265 = vmatprep.mubr.msk.f32.mxu0 %vm97_vm0, %v9991_v20  ;;  %9362 = vmatpush3.msra.mxu0 %v748_v19 }
  0x1a   :  { %9363 = vmatprep.subr.mxu0 %v747_v21 }
  0x1b   :  { %10 = vsyncpa [#allocation3], 0  ;;  %9364 = vmatpush3.msra.mxu0 %v747_v21  ;;  %v745_v25 = vld [vmem:[%s13867_s3 + $0x30] sm:$0xff]  ;;  %9482 = vmatprep.subr.mxu1 %v749_v17  ;;  %v10023_v26 = vld [vmem:[%s13864_s0 + $0x58] sm:$0xff]  ;;  %s9861_s22 = smov 124   ;;  %s9862_s9 = smov 28  }
  0x1c   :  { %9266 = vmatmul.mubr.msk.f32.gmra.mxu0 %vm97_vm0, %v10003_v22  ;;  %9365 = vmatprep.subr.mxu0 %v746_v23  ;;  %v744_v27 = vld [vmem:[%s13867_s3 + $0x28] sm:$0xff]  ;;  %v10031_v28 = vld [vmem:[%s13864_s0 + $0x60] sm:$0xff]  ;;  %v742_v31 = vld [vmem:[%s13867_s3 + $0x18] sm:$0xff]  ;;  %s9863_s10 = smov 32   ;;  %s9864_s14 = smov 96   ;;  %vm2939_vm1 = vcmask 31744  }
  0x1d   :  { %9268 = vmatprep.mubr.msk.f32.mxu0 %vm97_vm0, %v10011_v24  ;;  %9366 = vmatpush3.msra.mxu0 %v746_v23  ;;  %v743_v29 = vld [vmem:[%s13867_s3 + $0x20] sm:$0xff]  ;;  %v10043_v30 = vld [vmem:[%s13864_s0 + $0x68] sm:$0xff]  ;;  %v10051_v32 = vld [vmem:[%s13864_s0 + $0x70] sm:$0xff]  ;;  %vm8583_vm2 = vcmask 130112   ;;  %vm8590_vm3 = vcmask 195712   ;;  %vm8597_vm4 = vcmask 261312  }
  0x1e   :  { %9367 = vmatprep.subr.mxu0 %v745_v25  ;;  %9498 = vmatpush3.msra.mxu1 %v749_v17  ;;  %v741_v33 = vld [vmem:[%s13867_s3 + $0x10] sm:$0xff]  ;;  %v10063_v34 = vld [vmem:[%s13864_s0 + $0x78] sm:$0xff]  ;;  %v10068_v35 = vld [vmem:[%s13864_s0 + $0x80] sm:$0xff]  ;;  %vm8604_vm5 = vcmask 326912   ;;  %vm8611_vm6 = vcmask 392512   ;;  %vm8618_vm7 = vcmask 458112  }
  0x1f   :  { %9368 = vmatpush3.msra.mxu0 %v745_v25  ;;  %9483 = vmatprep.subr.mxu1 %v748_v19  ;;  %v10077_v36 = vld [vmem:[%s13864_s0 + $0x88] sm:$0xff]  ;;  %v10082_v37 = vld [vmem:[%s13864_s0 + $0x90] sm:$0xff]  ;;  %v10091_v38 = vld [vmem:[%s13864_s0 + $0x98] sm:$0xff]  ;;  %vm8625_vm8 = vcmask 523712   ;;  %vm8632_vm9 = vcmask 589312   ;;  %vm8639_vm10 = vcmask 654912  }
  0x20   :  { %9269 = vmatmul.mubr.msk.f32.gmra.mxu0 %vm97_vm0, %v10023_v26  ;;  %9369 = vmatprep.subr.mxu0 %v744_v27  ;;  %v10096_v39 = vld [vmem:[%s13864_s0 + $0xa0] sm:$0xff]  ;;  %v10105_v40 = vld [vmem:[%s13864_s0 + $0xa8] sm:$0xff]  ;;  %v10110_v41 = vld [vmem:[%s13864_s0 + $0xb0] sm:$0xff]  ;;  %vm8646_vm11 = vcmask 720512   ;;  %vm8653_vm12 = vcmask 786112   ;;  %vm8660_vm13 = vcmask 851712  }
  0x21   :  { %9271 = vmatprep.mubr.msk.f32.mxu0 %vm97_vm0, %v10031_v28  ;;  %9370 = vmatpush3.msra.mxu0 %v744_v27  ;;  %v10119_v42 = vld [vmem:[%s13864_s0 + $0xb8] sm:$0xff]  ;;  %v10124_v43 = vld [vmem:[%s13864_s0 + $0xc0] sm:$0xff]  ;;  %v10133_v44 = vld [vmem:[%s13864_s0 + $0xc8] sm:$0xff]  ;;  %vm8667_vm14 = vcmask 917312   ;;  %vm8674_vm15 = vcmask 982912  }
  0x22   :  { %9371 = vmatprep.subr.mxu0 %v743_v29  ;;  %9499 = vmatpush3.msra.mxu1 %v748_v19  ;;  %v10138_v45 = vld [vmem:[%s13864_s0 + $0xd0] sm:$0xff]  ;;  %v10147_v46 = vld [vmem:[%s13864_s0 + $0xd8] sm:$0xff]  ;;  %v10152_v47 = vld [vmem:[%s13864_s0 + $0xe0] sm:$0xff] }
  0x23   :  { %9372 = vmatpush3.msra.mxu0 %v743_v29  ;;  %9484 = vmatprep.subr.mxu1 %v747_v21  ;;  %v10161_v48 = vld [vmem:[%s13864_s0 + $0xe8] sm:$0xff]  ;;  %v10166_v49 = vld [vmem:[%s13864_s0 + $0xf0] sm:$0xff]  ;;  %v10175_v50 = vld [vmem:[%s13864_s0 + $0xf8] sm:$0xff] }
  0x24   :  { %9272 = vmatmul.mubr.msk.f32.gmra.mxu0 %vm97_vm0, %v10043_v30  ;;  %9373 = vmatprep.subr.mxu0 %v742_v31  ;;  %v10180_v51 = vld [vmem:[%s13864_s0 + $0x100] sm:$0xff]  ;;  %v10189_v52 = vld [vmem:[%s13864_s0 + $0x108] sm:$0xff]  ;;  %v10194_v53 = vld [vmem:[%s13864_s0 + $0x110] sm:$0xff] }
  0x25   :  { %9274 = vmatprep.mubr.msk.f32.mxu0 %vm97_vm0, %v10051_v32  ;;  %9374 = vmatpush3.msra.mxu0 %v742_v31  ;;  %v10203_v54 = vld [vmem:[%s13864_s0 + $0x118] sm:$0xff]  ;;  %v10208_v55 = vld [vmem:[%s13864_s0 + $0x120] sm:$0xff]  ;;  %v10217_v56 = vld [vmem:[%s13864_s0 + $0x128] sm:$0xff] }
  0x26   :  { %9375 = vmatprep.subr.mxu0 %v741_v33  ;;  %9500 = vmatpush3.msra.mxu1 %v747_v21  ;;  %v740_v57 = vld [vmem:[%s13867_s3 + $0x8] sm:$0xff]  ;;  %v10225_v58 = vld [vmem:[%s13864_s0 + $0x130] sm:$0xff]  ;;  %v10234_v59 = vld [vmem:[%s13864_s0 + $0x138] sm:$0xff] }
  0x27   :  { %9376 = vmatpush3.msra.mxu0 %v741_v33  ;;  %9485 = vmatprep.subr.mxu1 %v746_v23  ;;  %v10239_v60 = vld [vmem:[%s13864_s0 + $0x140] sm:$0xff]  ;;  %v10248_v61 = vld [vmem:[%s13864_s0 + $0x148] sm:$0xff]  ;;  %v10256_v63 = vld [vmem:[%s13864_s0 + $0x150] sm:$0xff] }
  0x28   :  { %9275 = vmatmul.mubr.msk.f32.gmra.mxu0 %vm97_vm0, %v10063_v34  ;;  %9501 = vmatpush3.msra.mxu1 %v746_v23  ;;  %v739_v62 = vld [vmem:[%s13867_s3] sm:$0xff]  ;;  %v10265_v0 = vld [vmem:[%s13864_s0 + $0x158] sm:$0xff]  ;;  %v10279_v3 = vld [vmem:[%s13864_s0 + $0x168] sm:$0xff] }
  0x29   :  { %9277 = vmatprep.mubr.msk.f32.mxu0 %vm97_vm0, %v10068_v35  ;;  %9486 = vmatprep.subr.mxu1 %v745_v25  ;;  %v10270_v1 = vld [vmem:[%s13864_s0 + $0x160] sm:$0xff]  ;;  %v10284_v4 = vld [vmem:[%s13864_s0 + $0x170] sm:$0xff]  ;;  %v10293_v5 = vld [vmem:[%s13864_s0 + $0x178] sm:$0xff] }
  0x2a   :  { %9502 = vmatpush3.msra.mxu1 %v745_v25  ;;  %9377 = vmatprep.subr.mxu0 %v740_v57  ;;  %v10298_v6 = vld [vmem:[%s13864_s0 + $0x180] sm:$0xff]  ;;  %v10307_v9 = vld [vmem:[%s13864_s0 + $0x188] sm:$0xff]  ;;  %v10312_v11 = vld [vmem:[%s13864_s0 + $0x190] sm:$0xff] }
  0x2b   :  { %9487 = vmatprep.subr.mxu1 %v744_v27  ;;  %9378 = vmatpush3.msra.mxu0 %v740_v57  ;;  %v10321_v13 = vld [vmem:[%s13864_s0 + $0x198] sm:$0xff]  ;;  %v10326_v15 = vld [vmem:[%s13864_s0 + $0x1a0] sm:$0xff]  ;;  %v10335_v17 = vld [vmem:[%s13864_s0 + $0x1a8] sm:$0xff] }
  0x2c   :  { %9278 = vmatmul.mubr.msk.f32.gmra.mxu0 %vm97_vm0, %v10077_v36  ;;  %9503 = vmatpush3.msra.mxu1 %v744_v27  ;;  %v10340_v19 = vld [vmem:[%s13864_s0 + $0x1b0] sm:$0xff]  ;;  %v10349_v21 = vld [vmem:[%s13864_s0 + $0x1b8] sm:$0xff]  ;;  %v10354_v23 = vld [vmem:[%s13864_s0 + $0x1c0] sm:$0xff] }
  0x2d   :  { %9280 = vmatprep.mubr.msk.f32.mxu0 %vm97_vm0, %v10082_v37  ;;  %9488 = vmatprep.subr.mxu1 %v743_v29  ;;  %v10363_v25 = vld [vmem:[%s13864_s0 + $0x1c8] sm:$0xff]  ;;  %v10368_v27 = vld [vmem:[%s13864_s0 + $0x1d0] sm:$0xff] }
  0x2e   :  { %9504 = vmatpush3.msra.mxu1 %v743_v29  ;;  %9379 = vmatprep.subr.mxu0 %v739_v62  ;;  %v10377_v29 = vld [vmem:[%s13864_s0 + $0x1d8] sm:$0xff] }
  0x2f   :  { %9489 = vmatprep.subr.mxu1 %v742_v31  ;;  %9380 = vmatpush3.msra.mxu0 %v739_v62 }
  0x30   :  { %9281 = vmatmul.mubr.msk.f32.gmra.mxu0 %vm97_vm0, %v10091_v38  ;;  %9505 = vmatpush3.msra.mxu1 %v742_v31  ;;  %v10384_v31 = vld [vmem:[%s13864_s0 + $0x1e0] sm:$0xff] }
  0x31   :  { %9283 = vmatprep.mubr.msk.f32.mxu0 %vm97_vm0, %v10096_v39  ;;  %9490 = vmatprep.subr.mxu1 %v741_v33 }
  0x32   :  { %9506 = vmatpush3.msra.mxu1 %v741_v33  ;;  %2429 = vrot.lane.b32.xlu1 %v9926_v7, %s9861_s22  ;;  %v10395_v33 = vld [vmem:[%s13864_s0 + $0x1e8] sm:$0xff]  ;;  %v10402_v7 = vld [vmem:[%s13864_s0 + $0x1f0] sm:$0xff] }
  0x33   :  { %9491 = vmatprep.subr.mxu1 %v740_v57  ;;  %2427 = vrot.lane.b32.xlu0 %v9907_v2, %s9861_s22  ;;  %v10413_v2 = vld [vmem:[%s13864_s0 + $0x1f8] sm:$0xff] }
  0x34   :  { %9284 = vmatmul.mubr.msk.f32.gmra.mxu0 %vm97_vm0, %v10105_v40  ;;  %9507 = vmatpush3.msra.mxu1 %v740_v57 }
  0x35   :  { %9286 = vmatprep.mubr.msk.f32.mxu0 %vm97_vm0, %v10110_v41  ;;  %9492 = vmatprep.subr.mxu1 %v739_v62 }
  0x36   :  { %9508 = vmatpush3.msra.mxu1 %v739_v62  ;;  %2433 = vrot.lane.b32.xlu1 %v9943_v10, %s9861_s22 }
  0x37   :  { %2431 = vrot.lane.b32.xlu0 %v9931_v8, %s9861_s22  ;;  %v10492_v8 = vld [vmem:[%s13866_s2] ss:$0 sm:$0xff] }
  0x38   :  { %9287 = vmatmul.mubr.msk.f32.gmra.mxu0 %vm97_vm0, %v10119_v42 }
  0x39   :  { %9289 = vmatprep.mubr.msk.f32.mxu0 %vm97_vm0, %v10124_v43 }
  0x3a   :  { %2437 = vrot.lane.b32.xlu1 %v9963_v14, %s9861_s22 }
  0x3b   :  { %2435 = vrot.lane.b32.xlu0 %v9951_v12, %s9861_s22 }
  0x3c   :  { %9290 = vmatmul.mubr.msk.f32.gmra.mxu0 %vm97_vm0, %v10133_v44 }
  0x3d   :  { %9292 = vmatprep.mubr.msk.f32.mxu0 %vm97_vm0, %v10138_v45 }
  0x3e   :  { %2441 = vrot.lane.b32.xlu1 %v9983_v18, %s9861_s22 }
  0x3f   :  { %2439 = vrot.lane.b32.xlu0 %v9971_v16, %s9861_s22 }
  0x40   :  { %9293 = vmatmul.mubr.msk.f32.gmra.mxu0 %vm97_vm0, %v10147_v46 }
  0x41   :  { %9295 = vmatprep.mubr.msk.f32.mxu0 %vm97_vm0, %v10152_v47 }
  0x42   :  { %2445 = vrot.lane.b32.xlu1 %v10003_v22, %s9861_s22 }
  0x43   :  { %2443 = vrot.lane.b32.xlu0 %v9991_v20, %s9861_s22 }
  0x44   :  { %9296 = vmatmul.mubr.msk.f32.gmra.mxu0 %vm97_vm0, %v10161_v48 }
  0x45   :  { %9298 = vmatprep.mubr.msk.f32.mxu0 %vm97_vm0, %v10166_v49 }
  0x46   :  { %2449 = vrot.lane.b32.xlu1 %v10023_v26, %s9861_s22 }
  0x47   :  { %2447 = vrot.lane.b32.xlu0 %v10011_v24, %s9861_s22 }
  0x48   :  { %9299 = vmatmul.mubr.msk.f32.gmra.mxu0 %vm97_vm0, %v10175_v50 }
  0x49   :  { %9301 = vmatprep.mubr.msk.f32.mxu0 %vm97_vm0, %v10180_v51 }
  0x4a   :  { %2453 = vrot.lane.b32.xlu1 %v10043_v30, %s9861_s22 }
  0x4b   :  { %2451 = vrot.lane.b32.xlu0 %v10031_v28, %s9861_s22 }
  0x4c   :  { %9302 = vmatmul.mubr.msk.f32.gmra.mxu0 %vm97_vm0, %v10189_v52 }
  0x4d   :  { %9304 = vmatprep.mubr.msk.f32.mxu0 %vm97_vm0, %v10194_v53 }
  0x4e   :  { %2457 = vrot.lane.b32.xlu1 %v10063_v34, %s9861_s22 }
  0x4f   :  { %2455 = vrot.lane.b32.xlu0 %v10051_v32, %s9861_s22 }
  0x50   :  { %9305 = vmatmul.mubr.msk.f32.gmra.mxu0 %vm97_vm0, %v10203_v54 }
  0x51   :  { %9307 = vmatprep.mubr.msk.f32.mxu0 %vm97_vm0, %v10208_v55 }
  0x52   :  { %2461 = vrot.lane.b32.xlu1 %v10077_v36, %s9861_s22 }
  0x53   :  { %2459 = vrot.lane.b32.xlu0 %v10068_v35, %s9861_s22 }
  0x54   :  { %9308 = vmatmul.mubr.msk.f32.gmra.mxu0 %vm97_vm0, %v10217_v56 }
  0x55   :  { %9310 = vmatprep.mubr.msk.f32.mxu0 %vm97_vm0, %v10225_v58 }
  0x56   :  { %2465 = vrot.lane.b32.xlu1 %v10091_v38, %s9861_s22 }
  0x57   :  { %2463 = vrot.lane.b32.xlu0 %v10082_v37, %s9861_s22 }
  0x58   :  { %9311 = vmatmul.mubr.msk.f32.gmra.mxu0 %vm97_vm0, %v10234_v59 }
  0x59   :  { %9313 = vmatprep.mubr.msk.f32.mxu0 %vm97_vm0, %v10239_v60 }
  0x5a   :  { %2469 = vrot.lane.b32.xlu1 %v10105_v40, %s9861_s22 }
  0x5b   :  { %2467 = vrot.lane.b32.xlu0 %v10096_v39, %s9861_s22 }
  0x5c   :  { %9314 = vmatmul.mubr.msk.f32.gmra.mxu0 %vm97_vm0, %v10248_v61 }
  0x5d   :  { %9316 = vmatprep.mubr.msk.f32.mxu0 %vm97_vm0, %v10256_v63 }
  0x5e   :  { %2473 = vrot.lane.b32.xlu1 %v10119_v42, %s9861_s22 }
  0x5f   :  { %2471 = vrot.lane.b32.xlu0 %v10110_v41, %s9861_s22 }
  0x60   :  { %9317 = vmatmul.mubr.msk.f32.gmra.mxu0 %vm97_vm0, %v10265_v0 }
  0x61   :  { %9319 = vmatprep.mubr.msk.f32.mxu0 %vm97_vm0, %v10270_v1 }
  0x62   :  { %2477 = vrot.lane.b32.xlu1 %v10133_v44, %s9861_s22 }
  0x63   :  { %2475 = vrot.lane.b32.xlu0 %v10124_v43, %s9861_s22 }
  0x64   :  { %9320 = vmatmul.mubr.msk.f32.gmra.mxu0 %vm97_vm0, %v10279_v3 }
  0x65   :  { %9322 = vmatprep.mubr.msk.f32.mxu0 %vm97_vm0, %v10284_v4 }
  0x66   :  { %2481 = vrot.lane.b32.xlu1 %v10147_v46, %s9861_s22 }
  0x67   :  { %2479 = vrot.lane.b32.xlu0 %v10138_v45, %s9861_s22 }
  0x68   :  { %9323 = vmatmul.mubr.msk.f32.gmra.mxu0 %vm97_vm0, %v10293_v5 }
  0x69   :  { %9325 = vmatprep.mubr.msk.f32.mxu0 %vm97_vm0, %v10298_v6 }
  0x6a   :  { %2485 = vrot.lane.b32.xlu1 %v10161_v48, %s9861_s22 }
  0x6b   :  { %2483 = vrot.lane.b32.xlu0 %v10152_v47, %s9861_s22 }
  0x6c   :  { %9326 = vmatmul.mubr.msk.f32.gmra.mxu0 %vm97_vm0, %v10307_v9 }
  0x6d   :  { %9328 = vmatprep.mubr.msk.f32.mxu0 %vm97_vm0, %v10312_v11 }
  0x6e   :  { %2489 = vrot.lane.b32.xlu1 %v10175_v50, %s9861_s22 }
  0x6f   :  { %2487 = vrot.lane.b32.xlu0 %v10166_v49, %s9861_s22 }
  0x70   :  { %9329 = vmatmul.mubr.msk.f32.gmra.mxu0 %vm97_vm0, %v10321_v13 }
  0x71   :  { %9331 = vmatprep.mubr.msk.f32.mxu0 %vm97_vm0, %v10326_v15 }
  0x72   :  { %2493 = vrot.lane.b32.xlu1 %v10189_v52, %s9861_s22 }
  0x73   :  { %2491 = vrot.lane.b32.xlu0 %v10180_v51, %s9861_s22 }
  0x74   :  { %9332 = vmatmul.mubr.msk.f32.gmra.mxu0 %vm97_vm0, %v10335_v17 }
  0x75   :  { %9334 = vmatprep.mubr.msk.f32.mxu0 %vm97_vm0, %v10340_v19 }
  0x76   :  { %2497 = vrot.lane.b32.xlu1 %v10203_v54, %s9861_s22 }
  0x77   :  { %2495 = vrot.lane.b32.xlu0 %v10194_v53, %s9861_s22 }
  0x78   :  { %9335 = vmatmul.mubr.msk.f32.gmra.mxu0 %vm97_vm0, %v10349_v21 }
  0x79   :  { %9337 = vmatprep.mubr.msk.f32.mxu0 %vm97_vm0, %v10354_v23 }
  0x7a   :  { %2501 = vrot.lane.b32.xlu1 %v10217_v56, %s9861_s22 }
  0x7b   :  { %2499 = vrot.lane.b32.xlu0 %v10208_v55, %s9861_s22 }
  0x7c   :  { %9338 = vmatmul.mubr.msk.f32.gmra.mxu0 %vm97_vm0, %v10363_v25 }
  0x7d   :  { %9340 = vmatprep.mubr.msk.f32.mxu0 %vm97_vm0, %v10368_v27 }
  0x7e   :  { %2505 = vrot.lane.b32.xlu1 %v10234_v59, %s9861_s22 }
  0x7f   :  { %2503 = vrot.lane.b32.xlu0 %v10225_v58, %s9861_s22 }
  0x80   :  { %9341 = vmatmul.mubr.msk.f32.gmra.mxu0 %vm97_vm0, %v10377_v29 }
  0x81   :  { %9343 = vmatprep.mubr.msk.f32.mxu0 %vm97_vm0, %v10384_v31 }
  0x82   :  { %2509 = vrot.lane.b32.xlu1 %v10248_v61, %s9861_s22 }
  0x83   :  { %2507 = vrot.lane.b32.xlu0 %v10239_v60, %s9861_s22 }
  0x84   :  { %9344 = vmatmul.mubr.msk.f32.gmra.mxu0 %vm97_vm0, %v10395_v33 }
  0x85   :  { %9346 = vmatprep.mubr.msk.f32.mxu0 %vm97_vm0, %v10402_v7 }
  0x86   :  { %2513 = vrot.lane.b32.xlu1 %v10265_v0, %s9861_s22 }
  0x87   :  { %2511 = vrot.lane.b32.xlu0 %v10256_v63, %s9861_s22 }
  0x88   :  { %9347 = vmatmul.mubr.msk.f32.gmra.mxu0 %vm97_vm0, %v10413_v2  ;;  %vm8681_vm0 = vcmask 1048512  }
  0x8a   :  { %2517 = vrot.lane.b32.xlu1 %v10279_v3, %s9861_s22 }
  0x8b   :  { %2515 = vrot.lane.b32.xlu0 %v10270_v1, %s9861_s22 }
  0x8e   :  { %2521 = vrot.lane.b32.xlu1 %v10293_v5, %s9861_s22 }
  0x8f   :  { %2519 = vrot.lane.b32.xlu0 %v10284_v4, %s9861_s22 }
  0x92   :  { %2525 = vrot.lane.b32.xlu1 %v10307_v9, %s9861_s22 }
  0x93   :  { %2523 = vrot.lane.b32.xlu0 %v10298_v6, %s9861_s22 }
  0x96   :  { %2529 = vrot.lane.b32.xlu1 %v10321_v13, %s9861_s22 }
  0x97   :  { %2527 = vrot.lane.b32.xlu0 %v10312_v11, %s9861_s22 }
  0x9a   :  { %2533 = vrot.lane.b32.xlu1 %v10335_v17, %s9861_s22 }
  0x9b   :  { %2531 = vrot.lane.b32.xlu0 %v10326_v15, %s9861_s22 }
  0x9e   :  { %2537 = vrot.lane.b32.xlu1 %v10349_v21, %s9861_s22 }
  0x9f   :  { %2535 = vrot.lane.b32.xlu0 %v10340_v19, %s9861_s22 }
  0xa2   :  { %2541 = vrot.lane.b32.xlu1 %v10363_v25, %s9861_s22 }
  0xa3   :  { %2539 = vrot.lane.b32.xlu0 %v10354_v23, %s9861_s22 }
  0xa6   :  { %2545 = vrot.lane.b32.xlu1 %v10377_v29, %s9861_s22 }
  0xa7   :  { %2543 = vrot.lane.b32.xlu0 %v10368_v27, %s9861_s22 }
  0xaa   :  { %2549 = vrot.lane.b32.xlu1 %v10395_v33, %s9861_s22 }
  0xab   :  { %2547 = vrot.lane.b32.xlu0 %v10384_v31, %s9861_s22 }
  0xae   :  { %2553 = vrot.lane.b32.xlu1 %v10413_v2, %s9861_s22 }
  0xaf   :  { %2551 = vrot.lane.b32.xlu0 %v10402_v7, %s9861_s22 }
  0xcc   :  { %v9255_v10 = vpop.f32.mrf.mxu0 }
  0xcd   :  { %v362_v12 = vadd.f32 %v9255_v10, %v10492_v8 }
  0xce   :  { %v356_v14 = vpop.f32.mrf.mxu0 }
  0xcf   :  { %v357_v16 = vadd.f32 %v10492_v8, %v356_v14 }
  0xd0   :  { %v9258_v18 = vpop.f32.mrf.mxu0 }
  0xd1   :  { %9518 = vtanh.f32 %v357_v16  ;;  %v372_v20 = vadd.f32 %v9258_v18, %v10492_v8 }
  0xd2   :  { %9520 = vtanh.f32 %v362_v12  ;;  %v366_v22 = vpop.f32.mrf.mxu0 }
  0xd3   :  { %v367_v24 = vadd.f32 %v10492_v8, %v366_v22  ;;  %9522 = vtanh.f32 %v372_v20 }
  0xd4   :  { %v9261_v26 = vpop.f32.mrf.mxu0 }
  0xd5   :  { %9524 = vtanh.f32 %v367_v24  ;;  %v382_v28 = vadd.f32 %v9261_v26, %v10492_v8 }
  0xd6   :  { %v376_v30 = vpop.f32.mrf.mxu0 }
  0xd7   :  { %v377_v32 = vadd.f32 %v10492_v8, %v376_v30  ;;  %9526 = vtanh.f32 %v382_v28 }
  0xd8   :  { %v9264_v34 = vpop.f32.mrf.mxu0 }
  0xd9   :  { %9528 = vtanh.f32 %v377_v32  ;;  %v392_v35 = vadd.f32 %v9264_v34, %v10492_v8 }
  0xda   :  { %v386_v36 = vpop.f32.mrf.mxu0 }
  0xdb   :  { %v387_v37 = vadd.f32 %v10492_v8, %v386_v36  ;;  %9530 = vtanh.f32 %v392_v35 }
  0xdc   :  { %v9267_v38 = vpop.f32.mrf.mxu0 }
  0xdd   :  { %9532 = vtanh.f32 %v387_v37  ;;  %v402_v39 = vadd.f32 %v9267_v38, %v10492_v8 }
  0xde   :  { %v9519_v40 = vpop.eup %9518  ;;  %v396_v41 = vpop.f32.mrf.mxu0 }
  0xdf   :  { %v9521_v42 = vpop.eup %9520  ;;  %9381 = vmatprep.mubr.f32.mxu0 %v9519_v40  ;;  %v397_v43 = vadd.f32 %v10492_v8, %v396_v41  ;;  %9534 = vtanh.f32 %v402_v39 }
  0xe0   :  { %9382 = vmatmul.mubr.f32.vlgmr.msra.gmra.mxu0 %v9521_v42  ;;  %v9270_v44 = vpop.f32.mrf.mxu0  ;;  %v9523_v45 = vpop.eup %9522 }
  0xe1   :  { %9536 = vtanh.f32 %v397_v43  ;;  %v412_v46 = vadd.f32 %v9270_v44, %v10492_v8 }
  0xe2   :  { %v9525_v47 = vpop.eup %9524  ;;  %v406_v48 = vpop.f32.mrf.mxu0 }
  0xe3   :  { %9384 = vmatprep.mubr.f32.mxu0 %v9525_v47  ;;  %v407_v49 = vadd.f32 %v10492_v8, %v406_v48  ;;  %9538 = vtanh.f32 %v412_v46 }
  0xe4   :  { %9385 = vmatmul.mubr.f32.gmra.mxu0 %v9523_v45  ;;  %v9273_v50 = vpop.f32.mrf.mxu0  ;;  %v9527_v51 = vpop.eup %9526 }
  0xe5   :  { %9540 = vtanh.f32 %v407_v49  ;;  %v422_v52 = vadd.f32 %v9273_v50, %v10492_v8 }
  0xe6   :  { %v9529_v53 = vpop.eup %9528  ;;  %v416_v54 = vpop.f32.mrf.mxu0 }
  0xe7   :  { %9387 = vmatprep.mubr.f32.mxu1 %v9529_v53  ;;  %v417_v55 = vadd.f32 %v10492_v8, %v416_v54  ;;  %9542 = vtanh.f32 %v422_v52 }
  0xe8   :  { %9388 = vmatmul.mubr.f32.vlgmr.msra.gmra.mxu1 %v9527_v51  ;;  %v9276_v56 = vpop.f32.mrf.mxu0  ;;  %v9531_v57 = vpop.eup %9530 }
  0xe9   :  { %9544 = vtanh.f32 %v417_v55  ;;  %v432_v58 = vadd.f32 %v9276_v56, %v10492_v8 }
  0xea   :  { %v9533_v59 = vpop.eup %9532  ;;  %v426_v60 = vpop.f32.mrf.mxu0 }
  0xeb   :  { %9390 = vmatprep.mubr.f32.mxu1 %v9533_v59  ;;  %v427_v61 = vadd.f32 %v10492_v8, %v426_v60  ;;  %9546 = vtanh.f32 %v432_v58 }
  0xec   :  { %9391 = vmatmul.mubr.f32.gmra.mxu1 %v9531_v57  ;;  %v9279_v62 = vpop.f32.mrf.mxu0  ;;  %v9535_v63 = vpop.eup %9534 }
  0xed   :  { %9548 = vtanh.f32 %v427_v61  ;;  %v442_v0 = vadd.f32 %v9279_v62, %v10492_v8 }
  0xee   :  { %v9537_v1 = vpop.eup %9536  ;;  %v436_v3 = vpop.f32.mrf.mxu0 }
  0xef   :  { %9393 = vmatprep.mubr.f32.mxu1 %v9537_v1  ;;  %v437_v4 = vadd.f32 %v10492_v8, %v436_v3  ;;  %9550 = vtanh.f32 %v442_v0 }
  0xf0   :  { %9394 = vmatmul.mubr.f32.gmra.mxu1 %v9535_v63  ;;  %v9282_v5 = vpop.f32.mrf.mxu0  ;;  %v9539_v6 = vpop.eup %9538 }
  0xf1   :  { %9552 = vtanh.f32 %v437_v4  ;;  %v452_v9 = vadd.f32 %v9282_v5, %v10492_v8 }
  0xf2   :  { %v9541_v11 = vpop.eup %9540  ;;  %v446_v13 = vpop.f32.mrf.mxu0 }
  0xf3   :  { %9396 = vmatprep.mubr.f32.mxu1 %v9541_v11  ;;  %v447_v15 = vadd.f32 %v10492_v8, %v446_v13  ;;  %9554 = vtanh.f32 %v452_v9 }
  0xf4   :  { %9397 = vmatmul.mubr.f32.gmra.mxu1 %v9539_v6  ;;  %v9285_v17 = vpop.f32.mrf.mxu0  ;;  %v9543_v19 = vpop.eup %9542 }
  0xf5   :  { %9556 = vtanh.f32 %v447_v15  ;;  %v462_v21 = vadd.f32 %v9285_v17, %v10492_v8 }
  0xf6   :  { %v9545_v23 = vpop.eup %9544  ;;  %v456_v25 = vpop.f32.mrf.mxu0 }
  0xf7   :  { %9399 = vmatprep.mubr.f32.mxu1 %v9545_v23  ;;  %v457_v27 = vadd.f32 %v10492_v8, %v456_v25  ;;  %9558 = vtanh.f32 %v462_v21 }
  0xf8   :  { %9400 = vmatmul.mubr.f32.gmra.mxu1 %v9543_v19  ;;  %v9288_v29 = vpop.f32.mrf.mxu0  ;;  %v9547_v10 = vpop.eup %9546 }
  0xf9   :  { %9560 = vtanh.f32 %v457_v27  ;;  %v472_v12 = vadd.f32 %v9288_v29, %v10492_v8 }
  0xfa   :  { %v9549_v14 = vpop.eup %9548  ;;  %v466_v33 = vpop.f32.mrf.mxu0 }
  0xfb   :  { %9402 = vmatprep.mubr.f32.mxu1 %v9549_v14  ;;  %v467_v31 = vadd.f32 %v10492_v8, %v466_v33  ;;  %9562 = vtanh.f32 %v472_v12 }
  0xfc   :  { %9403 = vmatmul.mubr.f32.gmra.mxu1 %v9547_v10  ;;  %v9291_v16 = vpop.f32.mrf.mxu0  ;;  %v9551_v18 = vpop.eup %9550 }
  0xfd   :  { %9564 = vtanh.f32 %v467_v31  ;;  %v482_v20 = vadd.f32 %v9291_v16, %v10492_v8 }
  0xfe   :  { %v9553_v22 = vpop.eup %9552  ;;  %v476_v24 = vpop.f32.mrf.mxu0 }
  0xff   :  { %9405 = vmatprep.mubr.f32.mxu1 %v9553_v22  ;;  %v477_v2 = vadd.f32 %v10492_v8, %v476_v24  ;;  %9566 = vtanh.f32 %v482_v20 }
 0x100   :  { %9406 = vmatmul.mubr.f32.gmra.mxu1 %v9551_v18  ;;  %v9294_v26 = vpop.f32.mrf.mxu0  ;;  %v9555_v28 = vpop.eup %9554 }
 0x101   :  { %9568 = vtanh.f32 %v477_v2  ;;  %v492_v7 = vadd.f32 %v9294_v26, %v10492_v8 }
 0x102   :  { %v9557_v30 = vpop.eup %9556  ;;  %v486_v32 = vpop.f32.mrf.mxu0 }
 0x103   :  { %9408 = vmatprep.mubr.f32.mxu1 %v9557_v30  ;;  %v487_v34 = vadd.f32 %v10492_v8, %v486_v32  ;;  %9570 = vtanh.f32 %v492_v7 }
 0x104   :  { %9409 = vmatmul.mubr.f32.gmra.mxu1 %v9555_v28  ;;  %v9297_v35 = vpop.f32.mrf.mxu0  ;;  %v9559_v36 = vpop.eup %9558 }
 0x105   :  { %9572 = vtanh.f32 %v487_v34  ;;  %v502_v37 = vadd.f32 %v9297_v35, %v10492_v8 }
 0x106   :  { %v9561_v38 = vpop.eup %9560  ;;  %v496_v39 = vpop.f32.mrf.mxu0 }
 0x107   :  { %9411 = vmatprep.mubr.f32.mxu1 %v9561_v38  ;;  %v497_v40 = vadd.f32 %v10492_v8, %v496_v39  ;;  %9574 = vtanh.f32 %v502_v37 }
 0x108   :  { %9412 = vmatmul.mubr.f32.gmra.mxu1 %v9559_v36  ;;  %v9300_v41 = vpop.f32.mrf.mxu0  ;;  %v9563_v42 = vpop.eup %9562 }
 0x109   :  { %9576 = vtanh.f32 %v497_v40  ;;  %v512_v43 = vadd.f32 %v9300_v41, %v10492_v8 }
 0x10a   :  { %v9565_v44 = vpop.eup %9564  ;;  %v506_v45 = vpop.f32.mrf.mxu0 }
 0x10b   :  { %9414 = vmatprep.mubr.f32.mxu1 %v9565_v44  ;;  %v507_v46 = vadd.f32 %v10492_v8, %v506_v45  ;;  %9578 = vtanh.f32 %v512_v43 }
 0x10c   :  { %9415 = vmatmul.mubr.f32.gmra.mxu1 %v9563_v42  ;;  %v9303_v47 = vpop.f32.mrf.mxu0  ;;  %v9567_v48 = vpop.eup %9566 }
 0x10d   :  { %9580 = vtanh.f32 %v507_v46  ;;  %v522_v49 = vadd.f32 %v9303_v47, %v10492_v8 }
 0x10e   :  { %v9569_v50 = vpop.eup %9568  ;;  %v516_v51 = vpop.f32.mrf.mxu0 }
 0x10f   :  { %9417 = vmatprep.mubr.f32.mxu1 %v9569_v50  ;;  %v517_v52 = vadd.f32 %v10492_v8, %v516_v51  ;;  %9582 = vtanh.f32 %v522_v49 }
 0x110   :  { %9418 = vmatmul.mubr.f32.gmra.mxu1 %v9567_v48  ;;  %v9306_v53 = vpop.f32.mrf.mxu0  ;;  %v9571_v54 = vpop.eup %9570 }
 0x111   :  { %9584 = vtanh.f32 %v517_v52  ;;  %v532_v55 = vadd.f32 %v9306_v53, %v10492_v8 }
 0x112   :  { %v9573_v56 = vpop.eup %9572  ;;  %v526_v57 = vpop.f32.mrf.mxu0 }
 0x113   :  { %v527_v58 = vadd.f32 %v10492_v8, %v526_v57  ;;  %9420 = vmatprep.mubr.f32.mxu1 %v9573_v56  ;;  %9586 = vtanh.f32 %v532_v55 }
 0x114   :  { %v9309_v59 = vpop.f32.mrf.mxu0  ;;  %9421 = vmatmul.mubr.f32.gmra.mxu1 %v9571_v54  ;;  %v9575_v60 = vpop.eup %9574 }
 0x115   :  { %9588 = vtanh.f32 %v527_v58  ;;  %v542_v61 = vadd.f32 %v9309_v59, %v10492_v8 }
 0x116   :  { %v9577_v62 = vpop.eup %9576  ;;  %v536_v63 = vpop.f32.mrf.mxu0 }
 0x117   :  { %v537_v0 = vadd.f32 %v10492_v8, %v536_v63  ;;  %9423 = vmatprep.mubr.f32.mxu1 %v9577_v62  ;;  %9590 = vtanh.f32 %v542_v61 }
 0x118   :  { %v9312_v1 = vpop.f32.mrf.mxu0  ;;  %9424 = vmatmul.mubr.f32.gmra.mxu1 %v9575_v60  ;;  %v9579_v3 = vpop.eup %9578 }
 0x119   :  { %9592 = vtanh.f32 %v537_v0  ;;  %v552_v4 = vadd.f32 %v9312_v1, %v10492_v8 }
 0x11a   :  { %v9581_v5 = vpop.eup %9580  ;;  %v546_v6 = vpop.f32.mrf.mxu0 }
 0x11b   :  { %v547_v9 = vadd.f32 %v10492_v8, %v546_v6  ;;  %9426 = vmatprep.mubr.f32.mxu1 %v9581_v5  ;;  %9594 = vtanh.f32 %v552_v4 }
 0x11c   :  { %v9315_v11 = vpop.f32.mrf.mxu0  ;;  %9427 = vmatmul.mubr.f32.gmra.mxu1 %v9579_v3  ;;  %v9583_v13 = vpop.eup %9582 }
 0x11d   :  { %9596 = vtanh.f32 %v547_v9  ;;  %v562_v15 = vadd.f32 %v9315_v11, %v10492_v8 }
 0x11e   :  { %v9585_v17 = vpop.eup %9584  ;;  %v556_v19 = vpop.f32.mrf.mxu0 }
 0x11f   :  { %v557_v21 = vadd.f32 %v10492_v8, %v556_v19  ;;  %9429 = vmatprep.mubr.f32.mxu1 %v9585_v17  ;;  %9598 = vtanh.f32 %v562_v15 }
 0x120   :  { %v9318_v23 = vpop.f32.mrf.mxu0  ;;  %9430 = vmatmul.mubr.f32.gmra.mxu1 %v9583_v13  ;;  %v9587_v25 = vpop.eup %9586 }
 0x121   :  { %9600 = vtanh.f32 %v557_v21  ;;  %v572_v27 = vadd.f32 %v9318_v23, %v10492_v8 }
 0x122   :  { %v9589_v29 = vpop.eup %9588  ;;  %v566_v10 = vpop.f32.mrf.mxu0 }
 0x123   :  { %v567_v12 = vadd.f32 %v10492_v8, %v566_v10  ;;  %9432 = vmatprep.mubr.f32.mxu1 %v9589_v29  ;;  %9602 = vtanh.f32 %v572_v27 }
 0x124   :  { %v9321_v14 = vpop.f32.mrf.mxu0  ;;  %9433 = vmatmul.mubr.f32.gmra.mxu1 %v9587_v25  ;;  %v9591_v33 = vpop.eup %9590 }
 0x125   :  { %9604 = vtanh.f32 %v567_v12  ;;  %v582_v31 = vadd.f32 %v9321_v14, %v10492_v8 }
 0x126   :  { %v9593_v16 = vpop.eup %9592  ;;  %v576_v18 = vpop.f32.mrf.mxu0 }
 0x127   :  { %v577_v20 = vadd.f32 %v10492_v8, %v576_v18  ;;  %9435 = vmatprep.mubr.f32.mxu1 %v9593_v16  ;;  %9606 = vtanh.f32 %v582_v31  ;;  %v10606_v31 = vpop.permute.xlu1 %2429  ;;  %v10608_v16 = vpop.permute.xlu0 %2427 }
 0x128   :  { %v9324_v22 = vpop.f32.mrf.mxu0  ;;  %9436 = vmatmul.mubr.f32.gmra.mxu1 %v9591_v33  ;;  %v9595_v24 = vpop.eup %9594 }
 0x129   :  { %9608 = vtanh.f32 %v577_v20  ;;  %v592_v2 = vadd.f32 %v9324_v22, %v10492_v8 }
 0x12a   :  { %v9597_v26 = vpop.eup %9596  ;;  %v586_v28 = vpop.f32.mrf.mxu0 }
 0x12b   :  { %v587_v7 = vadd.f32 %v10492_v8, %v586_v28  ;;  %9438 = vmatprep.mubr.f32.mxu1 %v9597_v26  ;;  %9610 = vtanh.f32 %v592_v2  ;;  %v10610_v22 = vpop.permute.xlu1 %2433 }
 0x12c   :  { %v9327_v30 = vpop.f32.mrf.mxu0  ;;  %9439 = vmatmul.mubr.f32.gmra.mxu1 %v9595_v24  ;;  %v9599_v32 = vpop.eup %9598 }
 0x12d   :  { %9612 = vtanh.f32 %v587_v7  ;;  %v602_v34 = vadd.f32 %v9327_v30, %v10492_v8  ;;  %v10612_v24 = vpop.permute.xlu0 %2431 }
 0x12e   :  { %v9601_v35 = vpop.eup %9600  ;;  %v596_v36 = vpop.f32.mrf.mxu0 }
 0x12f   :  { %v597_v37 = vadd.f32 %v10492_v8, %v596_v36  ;;  %9441 = vmatprep.mubr.f32.mxu1 %v9601_v35  ;;  %9614 = vtanh.f32 %v602_v34  ;;  %v10614_v2 = vpop.permute.xlu1 %2437 }
 0x130   :  { %v9330_v38 = vpop.f32.mrf.mxu0  ;;  %9442 = vmatmul.mubr.f32.gmra.mxu1 %v9599_v32  ;;  %v9603_v39 = vpop.eup %9602  ;;  %13870 = vst [vmem:[#allocation5_spill] sm:$0xff] %v10614_v2 }
 0x131   :  { %9616 = vtanh.f32 %v597_v37  ;;  %v612_v40 = vadd.f32 %v9330_v38, %v10492_v8  ;;  %v10616_v26 = vpop.permute.xlu0 %2435 }
 0x132   :  { %v9605_v41 = vpop.eup %9604  ;;  %v606_v42 = vpop.f32.mrf.mxu0  ;;  %13871 = vst [vmem:[#allocation6_spill] sm:$0xff] %v10616_v26 }
 0x133   :  { %v607_v43 = vadd.f32 %v10492_v8, %v606_v42  ;;  %9444 = vmatprep.mubr.f32.mxu1 %v9605_v41  ;;  %9618 = vtanh.f32 %v612_v40  ;;  %v10618_v28 = vpop.permute.xlu1 %2441 }
 0x134   :  { %v9333_v44 = vpop.f32.mrf.mxu0  ;;  %9445 = vmatmul.mubr.f32.gmra.mxu1 %v9603_v39  ;;  %v9607_v45 = vpop.eup %9606  ;;  %13872 = vst [vmem:[#allocation7_spill] sm:$0xff] %v10618_v28 }
 0x135   :  { %9620 = vtanh.f32 %v607_v43  ;;  %v622_v46 = vadd.f32 %v9333_v44, %v10492_v8  ;;  %v10620_v7 = vpop.permute.xlu0 %2439 }
 0x136   :  { %v9609_v47 = vpop.eup %9608  ;;  %v616_v48 = vpop.f32.mrf.mxu0  ;;  %13873 = vst [vmem:[#allocation8_spill] sm:$0xff] %v10620_v7 }
 0x137   :  { %v617_v49 = vadd.f32 %v10492_v8, %v616_v48  ;;  %9447 = vmatprep.mubr.f32.mxu1 %v9609_v47  ;;  %9622 = vtanh.f32 %v622_v46  ;;  %v10622_v30 = vpop.permute.xlu1 %2445 }
 0x138   :  { %v9336_v50 = vpop.f32.mrf.mxu0  ;;  %9448 = vmatmul.mubr.f32.gmra.mxu1 %v9607_v45  ;;  %v9611_v51 = vpop.eup %9610  ;;  %13874 = vst [vmem:[#allocation9_spill] sm:$0xff] %v10622_v30 }
 0x139   :  { %9624 = vtanh.f32 %v617_v49  ;;  %v632_v52 = vadd.f32 %v9336_v50, %v10492_v8  ;;  %v10624_v32 = vpop.permute.xlu0 %2443  ;;  %v10661_v50 = vld [vmem:[%s13868_s4] ss:$0 sm:$0xff] }
 0x13a   :  { %v9613_v53 = vpop.eup %9612  ;;  %v626_v54 = vpop.f32.mrf.mxu0  ;;  %13875 = vst [vmem:[#allocation10_spill] sm:$0xff] %v10624_v32 }
 0x13b   :  { %v627_v55 = vadd.f32 %v10492_v8, %v626_v54  ;;  %9450 = vmatprep.mubr.f32.mxu1 %v9613_v53  ;;  %9626 = vtanh.f32 %v632_v52  ;;  %v10626_v34 = vpop.permute.xlu1 %2449 }
 0x13c   :  { %v9339_v56 = vpop.f32.mrf.mxu0  ;;  %9451 = vmatmul.mubr.f32.gmra.mxu1 %v9611_v51  ;;  %v9615_v57 = vpop.eup %9614  ;;  %13876 = vst [vmem:[#allocation11_spill] sm:$0xff] %v10626_v34 }
 0x13d   :  { %9628 = vtanh.f32 %v627_v55  ;;  %v642_v58 = vadd.f32 %v9339_v56, %v10492_v8  ;;  %v10628_v35 = vpop.permute.xlu0 %2447 }
 0x13e   :  { %v9617_v59 = vpop.eup %9616  ;;  %v636_v60 = vpop.f32.mrf.mxu0  ;;  %13877 = vst [vmem:[#allocation12_spill] sm:$0xff] %v10628_v35 }
 0x13f   :  { %v637_v61 = vadd.f32 %v10492_v8, %v636_v60  ;;  %9453 = vmatprep.mubr.f32.mxu1 %v9617_v59  ;;  %9630 = vtanh.f32 %v642_v58  ;;  %v10630_v36 = vpop.permute.xlu1 %2453 }
 0x140   :  { %v9342_v62 = vpop.f32.mrf.mxu0  ;;  %9454 = vmatmul.mubr.f32.gmra.mxu1 %v9615_v57  ;;  %v9619_v63 = vpop.eup %9618  ;;  %13878 = vst [vmem:[#allocation13_spill] sm:$0xff] %v10630_v36 }
 0x141   :  { %9632 = vtanh.f32 %v637_v61  ;;  %v652_v0 = vadd.f32 %v9342_v62, %v10492_v8  ;;  %v10632_v37 = vpop.permute.xlu0 %2451 }
 0x142   :  { %v9621_v1 = vpop.eup %9620  ;;  %v646_v3 = vpop.f32.mrf.mxu0  ;;  %13879 = vst [vmem:[#allocation14_spill] sm:$0xff] %v10632_v37 }
 0x143   :  { %v647_v4 = vadd.f32 %v10492_v8, %v646_v3  ;;  %9456 = vmatprep.mubr.f32.mxu1 %v9621_v1  ;;  %9634 = vtanh.f32 %v652_v0  ;;  %v10634_v38 = vpop.permute.xlu1 %2457 }
 0x144   :  { %v9345_v5 = vpop.f32.mrf.mxu0  ;;  %9457 = vmatmul.mubr.f32.gmra.mxu1 %v9619_v63  ;;  %v9623_v6 = vpop.eup %9622  ;;  %13880 = vst [vmem:[#allocation15_spill] sm:$0xff] %v10634_v38 }
 0x145   :  { %9636 = vtanh.f32 %v647_v4  ;;  %v662_v9 = vadd.f32 %v9345_v5, %v10492_v8  ;;  %v10636_v39 = vpop.permute.xlu0 %2455 }
 0x146   :  { %v9625_v11 = vpop.eup %9624  ;;  %v656_v13 = vpop.f32.mrf.mxu0  ;;  %13881 = vst [vmem:[#allocation16_spill] sm:$0xff] %v10636_v39 }
 0x147   :  { %v657_v15 = vadd.f32 %v10492_v8, %v656_v13  ;;  %9459 = vmatprep.mubr.f32.mxu1 %v9625_v11  ;;  %9638 = vtanh.f32 %v662_v9  ;;  %v10638_v40 = vpop.permute.xlu1 %2461 }
 0x148   :  { %v9348_v17 = vpop.f32.mrf.mxu0  ;;  %9460 = vmatmul.mubr.f32.gmra.mxu1 %v9623_v6  ;;  %v9627_v19 = vpop.eup %9626  ;;  %13882 = vst [vmem:[#allocation17_spill] sm:$0xff] %v10638_v40 }
 0x149   :  { %9640 = vtanh.f32 %v657_v15  ;;  %v672_v21 = vadd.f32 %v9348_v17, %v10492_v8  ;;  %v10640_v41 = vpop.permute.xlu0 %2459 }
 0x14a   :  { %v9629_v23 = vpop.eup %9628  ;;  %v666_v25 = vpop.f32.mrf.mxu0  ;;  %13883 = vst [vmem:[#allocation18_spill] sm:$0xff] %v10640_v41 }
 0x14b   :  { %v667_v27 = vadd.f32 %v10492_v8, %v666_v25  ;;  %9462 = vmatprep.mubr.f32.mxu1 %v9629_v23  ;;  %9642 = vtanh.f32 %v672_v21  ;;  %v10642_v42 = vpop.permute.xlu1 %2465 }
 0x14c   :  { %9463 = vmatmul.mubr.f32.gmra.mxu1 %v9627_v19  ;;  %v9631_v29 = vpop.eup %9630  ;;  %13884 = vst [vmem:[#allocation19_spill] sm:$0xff] %v10642_v42 }
 0x14d   :  { %9644 = vtanh.f32 %v667_v27  ;;  %v10644_v43 = vpop.permute.xlu0 %2463 }
 0x14e   :  { %v9633_v10 = vpop.eup %9632  ;;  %13885 = vst [vmem:[#allocation20_spill] sm:$0xff] %v10644_v43 }
 0x14f   :  { %9465 = vmatprep.mubr.f32.mxu1 %v9633_v10  ;;  %v10646_v44 = vpop.permute.xlu1 %2469 }
 0x150   :  { %9466 = vmatmul.mubr.f32.gmra.mxu1 %v9631_v29  ;;  %v9635_v12 = vpop.eup %9634  ;;  %13886 = vst [vmem:[#allocation21_spill] sm:$0xff] %v10646_v44 }
 0x151   :  { %v10648_v45 = vpop.permute.xlu0 %2467 }
 0x152   :  { %v9637_v14 = vpop.eup %9636  ;;  %13887 = vst [vmem:[#allocation22_spill] sm:$0xff] %v10648_v45 }
 0x153   :  { %9468 = vmatprep.mubr.f32.mxu1 %v9637_v14  ;;  %v10650_v46 = vpop.permute.xlu1 %2473 }
 0x154   :  { %9469 = vmatmul.mubr.f32.gmra.mxu1 %v9635_v12  ;;  %v9639_v33 = vpop.eup %9638  ;;  %13888 = vst [vmem:[#allocation23_spill] sm:$0xff] %v10650_v46 }
 0x155   :  { %v10652_v47 = vpop.permute.xlu0 %2471 }
 0x156   :  { %v9641_v18 = vpop.eup %9640  ;;  %13889 = vst [vmem:[#allocation24_spill] sm:$0xff] %v10652_v47 }
 0x157   :  { %9471 = vmatprep.mubr.f32.mxu1 %v9641_v18  ;;  %v10654_v48 = vpop.permute.xlu1 %2477 }
 0x158   :  { %9472 = vmatmul.mubr.f32.gmra.mxu1 %v9639_v33  ;;  %v9643_v8 = vpop.eup %9642  ;;  %13890 = vst [vmem:[#allocation25_spill] sm:$0xff] %v10654_v48 }
 0x159   :  { %v10656_v49 = vpop.permute.xlu0 %2475 }
 0x15a   :  { %v9645_v20 = vpop.eup %9644  ;;  %13891 = vst [vmem:[#allocation26_spill] sm:$0xff] %v10656_v49 }
 0x15b   :  { %9474 = vmatprep.mubr.f32.mxu1 %v9645_v20  ;;  %v10666_v54 = vpop.permute.xlu1 %2481 }
 0x15c   :  { %9475 = vmatmul.mubr.f32.gmra.mxu1 %v9643_v8  ;;  %13892 = vst [vmem:[#allocation27_spill] sm:$0xff] %v10666_v54 }
 0x15d   :  { %v10668_v55 = vpop.permute.xlu0 %2479 }
 0x15e   :  { %13893 = vst [vmem:[#allocation28_spill] sm:$0xff] %v10668_v55 }
 0x15f   :  { %v10674_v59 = vpop.permute.xlu1 %2485 }
 0x160   :  { %13894 = vst [vmem:[#allocation29_spill] sm:$0xff] %v10674_v59 }
 0x161   :  { %v10676_v60 = vpop.permute.xlu0 %2483 }
 0x162   :  { %13895 = vst [vmem:[#allocation30_spill] sm:$0xff] %v10676_v60 }
 0x163   :  { %v10683_v1 = vpop.permute.xlu1 %2489 }
 0x164   :  { %13896 = vst [vmem:[#allocation31_spill] sm:$0xff] %v10683_v1 }
 0x165   :  { %v10685_v3 = vpop.permute.xlu0 %2487 }
 0x166   :  { %13897 = vst [vmem:[#allocation32_spill] sm:$0xff] %v10685_v3 }
 0x167   :  { %v10691_v13 = vpop.permute.xlu1 %2493 }
 0x168   :  { %13898 = vst [vmem:[#allocation33_spill] sm:$0xff] %v10691_v13 }
 0x169   :  { %v10693_v15 = vpop.permute.xlu0 %2491 }
 0x16a   :  { %13899 = vst [vmem:[#allocation34_spill] sm:$0xff] %v10693_v15 }
 0x16b   :  { %v10707_v29 = vpop.permute.xlu1 %2497 }
 0x16c   :  { %13900 = vst [vmem:[#allocation35_spill] sm:$0xff] %v10707_v29 }
 0x16d   :  { %v10709_v10 = vpop.permute.xlu0 %2495 }
 0x16e   :  { %13901 = vst [vmem:[#allocation36_spill] sm:$0xff] %v10709_v10 }
 0x16f   :  { %v10721_v20 = vpop.permute.xlu1 %2501 }
 0x170   :  { %13902 = vst [vmem:[#allocation37_spill] sm:$0xff] %v10721_v20 }
 0x1a0   :  { %v9383_v51 = vpop.f32.mrf.mxu0 }
 0x1a1   :  { %v834_v52 = vadd.f32 %v9383_v51, %v10661_v50  ;;  %v10723_v51 = vpop.permute.xlu0 %2499 }
 0x1a2   :  { %v828_v53 = vpop.f32.mrf.mxu0  ;;  %13903 = vst [vmem:[#allocation38_spill] sm:$0xff] %v10723_v51 }
 0x1a3   :  { %2109 = vrot.lane.b32.xlu1 %v834_v52, %s9862_s9  ;;  %1213 = vrot.lane.b32.xlu0 %v834_v52, %s9863_s10  ;;  %v829_v57 = vadd.f32 %v10661_v50, %v828_v53  ;;  %v1468_v9 = vsub.f32 0.0, %v834_v52 }
 0x1a4   :  { %v9386_v56 = vpop.f32.mrf.mxu0 }
 0x1a5   :  { %v844_v58 = vadd.f32 %v9386_v56, %v10661_v50  ;;  %v1467_v11 = vsub.f32 0.0, %v829_v57  ;;  %v1533_v19 = vmul.f32 1.442695, %v1468_v9 }
 0x1a6   :  { %v838_v61 = vpop.f32.mrf.mxu0 }
 0x1a7   :  { %1217 = vrot.lane.b32.xlu1 %v844_v58, %s9863_s10  ;;  %1211 = vrot.lane.b32.xlu0 %v829_v57, %s9863_s10  ;;  %v839_v63 = vadd.f32 %v10661_v50, %v838_v61  ;;  %v1531_v21 = vmul.f32 1.442695, %v1467_v11  ;;  %9646 = vpow2.f32 %v1533_v19  ;;  %v1470_v14 = vsub.f32 0.0, %v844_v58 }
 0x1a8   :  { %v9389_v62 = vpop.f32.mrf.mxu1 }
 0x1a9   :  { %v854_v4 = vadd.f32 %v9389_v62, %v10661_v50  ;;  %9648 = vpow2.f32 %v1531_v21  ;;  %v1469_v33 = vsub.f32 0.0, %v839_v63  ;;  %v1537_v52 = vmul.f32 1.442695, %v1470_v14 }
 0x1aa   :  { %v848_v0 = vpop.f32.mrf.mxu1 }
 0x1ab   :  { %2113 = vrot.lane.b32.xlu1 %v844_v58, %s9862_s9  ;;  %2107 = vrot.lane.b32.xlu0 %v829_v57, %s9862_s9  ;;  %v849_v5 = vadd.f32 %v10661_v50, %v848_v0  ;;  %v1535_v53 = vmul.f32 1.442695, %v1469_v33  ;;  %v10733_v57 = vpop.permute.xlu1 %2505  ;;  %v10735_v58 = vpop.permute.xlu0 %2503  ;;  %9650 = vpow2.f32 %v1537_v52  ;;  %v1472_v0 = vsub.f32 0.0, %v854_v4 }
 0x1ac   :  { %v9392_v6 = vpop.f32.mrf.mxu1  ;;  %13904 = vst [vmem:[#allocation39_spill] sm:$0xff] %v10733_v57  ;;  %13905 = vst [vmem:[#allocation40_spill] sm:$0xff] %v10735_v58 }
 0x1ad   :  { %v10698_v23 = vadd.f32 %v9392_v6, %v10661_v50  ;;  %9652 = vpow2.f32 %v1535_v53  ;;  %v1471_v6 = vsub.f32 0.0, %v849_v5  ;;  %v1541_v21 = vmul.f32 1.442695, %v1472_v0 }
 0x1ae   :  { %v858_v17 = vpop.f32.mrf.mxu1 }
 0x1af   :  { %1215 = vrot.lane.b32.xlu1 %v839_v63, %s9863_s10  ;;  %2111 = vrot.lane.b32.xlu0 %v839_v63, %s9862_s9  ;;  %v10701_v25 = vadd.f32 %v10661_v50, %v858_v17  ;;  %v10745_v17 = vpop.permute.xlu1 %2509  ;;  %v10747_v19 = vpop.permute.xlu0 %2507  ;;  %9654 = vpow2.f32 %v1541_v21  ;;  %v1474_v53 = vsub.f32 0.0, %v10698_v23 }
 0x1b0   :  { %v9395_v27 = vpop.f32.mrf.mxu1  ;;  %13906 = vst [vmem:[#allocation41_spill] sm:$0xff] %v10745_v17  ;;  %13907 = vst [vmem:[#allocation42_spill] sm:$0xff] %v10747_v19 }
 0x1b1   :  { %v10716_v18 = vadd.f32 %v9395_v27, %v10661_v50  ;;  %v1539_v27 = vmul.f32 1.442695, %v1471_v6  ;;  %v1545_v6 = vmul.f32 1.442695, %v1474_v53 }
 0x1b2   :  { %v868_v12 = vpop.f32.mrf.mxu1 }
 0x1b3   :  { %1221 = vrot.lane.b32.xlu1 %v854_v4, %s9863_s10  ;;  %1219 = vrot.lane.b32.xlu0 %v849_v5, %s9863_s10  ;;  %v10719_v8 = vadd.f32 %v10661_v50, %v868_v12  ;;  %v10759_v12 = vpop.permute.xlu0 %2511  ;;  %9656 = vpow2.f32 %v1539_v27 }
 0x1b4   :  { %v9398_v56 = vpop.f32.mrf.mxu1  ;;  %v9647_v61 = vpop.eup %9646  ;;  %13909 = vst [vmem:[#allocation44_spill] sm:$0xff] %v10759_v12  ;;  %9658 = vpow2.f32 %v1545_v6 }
 0x1b5   :  { %v10740_v9 = vadd.f32 %v9398_v56, %v10661_v50  ;;  %v1473_v56 = vsub.f32 0.0, %v10701_v25  ;;  %v1475_v53 = vsub.f32 0.0, %v10719_v8 }
 0x1b6   :  { %v9649_v62 = vpop.eup %9648  ;;  %v878_v63 = vpop.f32.mrf.mxu1 }
 0x1b7   :  { %2117 = vrot.lane.b32.xlu1 %v854_v4, %s9862_s9  ;;  %2115 = vrot.lane.b32.xlu0 %v849_v5, %s9862_s9  ;;  %v10743_v11 = vadd.f32 %v10661_v50, %v878_v63  ;;  %v10757_v5 = vpop.permute.xlu1 %2513  ;;  %v10773_v0 = vpop.permute.xlu0 %2515 }
 0x1b8   :  { %v9401_v4 = vpop.f32.mrf.mxu1  ;;  %13908 = vst [vmem:[#allocation43_spill] sm:$0xff] %v10757_v5  ;;  %v9651_v14 = vpop.eup %9650  ;;  %13911 = vst [vmem:[#allocation46_spill] sm:$0xff] %v10773_v0 }
 0x1ba   :  { %v9653_v33 = vpop.eup %9652  ;;  %v888_v52 = vpop.f32.mrf.mxu1 }
 0x1bb   :  { %1225 = vrot.lane.b32.xlu1 %v10698_v23, %s9863_s10  ;;  %1223 = vrot.lane.b32.xlu0 %v10701_v25, %s9863_s10  ;;  %v10771_v63 = vpop.permute.xlu1 %2517  ;;  %v10785_v27 = vpop.permute.xlu0 %2519 }
 0x1bc   :  { %13910 = vst [vmem:[#allocation45_spill] sm:$0xff] %v10771_v63  ;;  %v9404_v21 = vpop.f32.mrf.mxu1  ;;  %13913 = vst [vmem:[#allocation48_spill] sm:$0xff] %v10785_v27 }
 0x1bf   :  { %2121 = vrot.lane.b32.xlu1 %v10698_v23, %s9862_s9  ;;  %2119 = vrot.lane.b32.xlu0 %v10701_v25, %s9862_s9  ;;  %v1543_v23 = vmul.f32 1.442695, %v1473_v56  ;;  %v10783_v25 = vpop.permute.xlu1 %2521  ;;  %v10792_v56 = vadd.f32 %v9404_v21, %v10661_v50  ;;  %v10799_v6 = vpop.permute.xlu0 %2523 }
 0x1c0   :  { %13912 = vst [vmem:[#allocation47_spill] sm:$0xff] %v10783_v25  ;;  %13915 = vst [vmem:[#allocation50_spill] sm:$0xff] %v10799_v6 }
 0x1c1   :  { %9660 = vpow2.f32 %v1543_v23 }
 0x1c3   :  { %1229 = vrot.lane.b32.xlu1 %v10716_v18, %s9863_s10  ;;  %1227 = vrot.lane.b32.xlu0 %v10719_v8, %s9863_s10  ;;  %v10797_v27 = vpop.permute.xlu1 %2525  ;;  %v10811_v21 = vpop.permute.xlu0 %2527 }
 0x1c4   :  { %13914 = vst [vmem:[#allocation49_spill] sm:$0xff] %v10797_v27  ;;  %13917 = vst [vmem:[#allocation52_spill] sm:$0xff] %v10811_v21 }
 0x1c7   :  { %2125 = vrot.lane.b32.xlu1 %v10716_v18, %s9862_s9  ;;  %2123 = vrot.lane.b32.xlu0 %v10719_v8, %s9862_s9  ;;  %v10809_v8 = vpop.permute.xlu1 %2529 }
 0x1c8   :  { %13916 = vst [vmem:[#allocation51_spill] sm:$0xff] %v10809_v8 }
 0x1cb   :  { %1725 = vrot.lane.b32.xlu1 %v9647_v61, %s9862_s9  ;;  %1723 = vrot.lane.b32.xlu0 %v9649_v62, %s9862_s9  ;;  %v10766_v61 = vadd.f32 %v9401_v4, %v10661_v50  ;;  %v10769_v62 = vadd.f32 %v10661_v50, %v888_v52  ;;  %v9655_v4 = vpop.eup %9654  ;;  %v1476_v52 = vsub.f32 0.0, %v10716_v18  ;;  %v1547_v18 = vmul.f32 1.442695, %v1475_v53  ;;  %v10823_v21 = vpop.permute.xlu1 %2533 }
 0x1cc   :  { %v1477_v53 = vsub.f32 0.0, %v10743_v11  ;;  %13918 = vst [vmem:[#allocation53_spill] sm:$0xff] %v10823_v21 }
 0x1cd   :  { %v1549_v23 = vmul.f32 1.442695, %v1476_v52  ;;  %v1478_v52 = vsub.f32 0.0, %v10740_v9 }
 0x1cf   :  { %1233 = vrot.lane.b32.xlu1 %v10740_v9, %s9863_s10  ;;  %1231 = vrot.lane.b32.xlu0 %v10743_v11, %s9863_s10  ;;  %9662 = vpow2.f32 %v1549_v23  ;;  %v10825_v23 = vpop.permute.xlu0 %2531 }
 0x1d0   :  { %9664 = vpow2.f32 %v1547_v18  ;;  %13919 = vst [vmem:[#allocation54_spill] sm:$0xff] %v10825_v23  ;;  %v1553_v18 = vmul.f32 1.442695, %v1478_v52  ;;  %v1480_v52 = vsub.f32 0.0, %v10766_v61 }
 0x1d2   :  { %9666 = vpow2.f32 %v1553_v18 }
 0x1d3   :  { %2129 = vrot.lane.b32.xlu1 %v10740_v9, %s9862_s9  ;;  %2127 = vrot.lane.b32.xlu0 %v10743_v11, %s9862_s9  ;;  %v1551_v9 = vmul.f32 1.442695, %v1477_v53  ;;  %v10835_v11 = vpop.permute.xlu1 %2537  ;;  %v1479_v53 = vsub.f32 0.0, %v10769_v62 }
 0x1d4   :  { %13920 = vst [vmem:[#allocation55_spill] sm:$0xff] %v10835_v11 }
 0x1d5   :  { %9668 = vpow2.f32 %v1551_v9  ;;  %v1557_v9 = vmul.f32 1.442695, %v1480_v52  ;;  %v1482_v52 = vsub.f32 0.0, %v10792_v56 }
 0x1d7   :  { %1729 = vrot.lane.b32.xlu1 %v9651_v14, %s9862_s9  ;;  %1727 = vrot.lane.b32.xlu0 %v9653_v33, %s9862_s9  ;;  %v9657_v14 = vpop.eup %9656  ;;  %v898_v33 = vpop.f32.mrf.mxu1  ;;  %9670 = vpow2.f32 %v1557_v9 }
 0x1d8   :  { %v10795_v25 = vadd.f32 %v10661_v50, %v898_v33 }
 0x1db   :  { %1237 = vrot.lane.b32.xlu1 %v10766_v61, %s9863_s10  ;;  %1235 = vrot.lane.b32.xlu0 %v10769_v62, %s9863_s10 }
 0x1df   :  { %2133 = vrot.lane.b32.xlu1 %v10766_v61, %s9862_s9  ;;  %2131 = vrot.lane.b32.xlu0 %v10769_v62, %s9862_s9  ;;  %v1555_v61 = vmul.f32 1.442695, %v1479_v53  ;;  %v1481_v53 = vsub.f32 0.0, %v10795_v25 }
 0x1e1   :  { %9672 = vpow2.f32 %v1555_v61  ;;  %v1561_v61 = vmul.f32 1.442695, %v1482_v52 }
 0x1e3   :  { %1733 = vrot.lane.b32.xlu1 %v9655_v4, %s9862_s9  ;;  %1731 = vrot.lane.b32.xlu0 %v9657_v14, %s9862_s9  ;;  %v9407_v4 = vpop.f32.mrf.mxu1  ;;  %v9659_v14 = vpop.eup %9658  ;;  %9674 = vpow2.f32 %v1561_v61 }
 0x1e4   :  { %v9661_v33 = vpop.eup %9660  ;;  %v10818_v27 = vadd.f32 %v9407_v4, %v10661_v50 }
 0x1e5   :  { %v908_v6 = vpop.f32.mrf.mxu1  ;;  %v9663_v4 = vpop.eup %9662 }
 0x1e6   :  { %v10821_v8 = vadd.f32 %v10661_v50, %v908_v6  ;;  %v10837_v6 = vpop.permute.xlu0 %2535  ;;  %v1484_v52 = vsub.f32 0.0, %v10818_v27 }
 0x1e7   :  { %1241 = vrot.lane.b32.xlu1 %v10792_v56, %s9863_s10  ;;  %1239 = vrot.lane.b32.xlu0 %v10795_v25, %s9863_s10  ;;  %13921 = vst [vmem:[#allocation56_spill] sm:$0xff] %v10837_v6  ;;  %v10849_v6 = vpop.permute.xlu1 %2541 }
 0x1e8   :  { %13922 = vst [vmem:[#allocation57_spill] sm:$0xff] %v10849_v6 }
 0x1ea   :  { %v10851_v18 = vpop.permute.xlu0 %2539 }
 0x1eb   :  { %2137 = vrot.lane.b32.xlu1 %v10792_v56, %s9862_s9  ;;  %2135 = vrot.lane.b32.xlu0 %v10795_v25, %s9862_s9  ;;  %13923 = vst [vmem:[#allocation58_spill] sm:$0xff] %v10851_v18  ;;  %v10861_v62 = vpop.permute.xlu1 %2545  ;;  %v1559_v56 = vmul.f32 1.442695, %v1481_v53  ;;  %v1483_v53 = vsub.f32 0.0, %v10821_v8 }
 0x1ec   :  { %13924 = vst [vmem:[#allocation59_spill] sm:$0xff] %v10861_v62 }
 0x1ed   :  { %9676 = vpow2.f32 %v1559_v56  ;;  %v1565_v56 = vmul.f32 1.442695, %v1484_v52 }
 0x1ef   :  { %1737 = vrot.lane.b32.xlu1 %v9659_v14, %s9862_s9  ;;  %1735 = vrot.lane.b32.xlu0 %v9661_v33, %s9862_s9  ;;  %v9410_v14 = vpop.f32.mrf.mxu1  ;;  %v9665_v33 = vpop.eup %9664  ;;  %9678 = vpow2.f32 %v1565_v56 }
 0x1f0   :  { %v10844_v21 = vadd.f32 %v9410_v14, %v10661_v50  ;;  %v9667_v14 = vpop.eup %9666 }
 0x1f1   :  { %v918_v23 = vpop.f32.mrf.mxu1 }
 0x1f2   :  { %v10847_v11 = vadd.f32 %v10661_v50, %v918_v23  ;;  %v10863_v23 = vpop.permute.xlu0 %2543  ;;  %v1486_v63 = vsub.f32 0.0, %v10844_v21 }
 0x1f3   :  { %1245 = vrot.lane.b32.xlu1 %v10818_v27, %s9863_s10  ;;  %1243 = vrot.lane.b32.xlu0 %v10821_v8, %s9863_s10  ;;  %13925 = vst [vmem:[#allocation60_spill] sm:$0xff] %v10863_v23  ;;  %v10875_v23 = vpop.permute.xlu1 %2549 }
 0x1f4   :  { %13926 = vst [vmem:[#allocation61_spill] sm:$0xff] %v10875_v23  ;;  %v1485_v12 = vsub.f32 0.0, %v10847_v11 }
 0x1f6   :  { %v10877_v9 = vpop.permute.xlu0 %2547 }
 0x1f7   :  { %2141 = vrot.lane.b32.xlu1 %v10818_v27, %s9862_s9  ;;  %2139 = vrot.lane.b32.xlu0 %v10821_v8, %s9862_s9  ;;  %13927 = vst [vmem:[#allocation62_spill] sm:$0xff] %v10877_v9  ;;  %v10887_v25 = vpop.permute.xlu1 %2553  ;;  %v1563_v27 = vmul.f32 1.442695, %v1483_v53 }
 0x1f8   :  { %13928 = vst [vmem:[#allocation63_spill] sm:$0xff] %v10887_v25 }
 0x1f9   :  { %9680 = vpow2.f32 %v1563_v27 }
 0x1fb   :  { %1741 = vrot.lane.b32.xlu1 %v9663_v4, %s9862_s9  ;;  %1739 = vrot.lane.b32.xlu0 %v9665_v33, %s9862_s9  ;;  %v9413_v4 = vpop.f32.mrf.mxu1  ;;  %v9669_v33 = vpop.eup %9668 }
 0x1fc   :  { %v10870_v6 = vadd.f32 %v9413_v4, %v10661_v50  ;;  %v9671_v4 = vpop.eup %9670 }
 0x1fd   :  { %v928_v18 = vpop.f32.mrf.mxu1 }
 0x1fe   :  { %v10873_v62 = vadd.f32 %v10661_v50, %v928_v18  ;;  %v10889_v18 = vpop.permute.xlu0 %2551  ;;  %v1488_v57 = vsub.f32 0.0, %v10870_v6 }
 0x1ff   :  { %1249 = vrot.lane.b32.xlu1 %v10844_v21, %s9863_s10  ;;  %1247 = vrot.lane.b32.xlu0 %v10847_v11, %s9863_s10  ;;  %13929 = vst [vmem:[#allocation64_spill] sm:$0xff] %v10889_v18 }
 0x200   :  { %v1487_v51 = vsub.f32 0.0, %v10873_v62 }
 0x203   :  { %2145 = vrot.lane.b32.xlu1 %v10844_v21, %s9862_s9  ;;  %2143 = vrot.lane.b32.xlu0 %v10847_v11, %s9862_s9  ;;  %v1567_v21 = vmul.f32 1.442695, %v1485_v12 }
 0x207   :  { %1745 = vrot.lane.b32.xlu1 %v9667_v14, %s9862_s9  ;;  %1743 = vrot.lane.b32.xlu0 %v9669_v33, %s9862_s9  ;;  %v9416_v14 = vpop.f32.mrf.mxu1  ;;  %v9673_v33 = vpop.eup %9672 }
 0x208   :  { %v10896_v23 = vadd.f32 %v9416_v14, %v10661_v50 }
 0x209   :  { %v938_v9 = vpop.f32.mrf.mxu1 }
 0x20a   :  { %v10899_v25 = vadd.f32 %v10661_v50, %v938_v9  ;;  %v9675_v9 = vpop.eup %9674  ;;  %v1490_v13 = vsub.f32 0.0, %v10896_v23 }
 0x20b   :  { %1253 = vrot.lane.b32.xlu1 %v10870_v6, %s9863_s10  ;;  %1251 = vrot.lane.b32.xlu0 %v10873_v62, %s9863_s10  ;;  %v9419_v14 = vpop.f32.mrf.mxu1  ;;  %v9677_v52 = vpop.eup %9676 }
 0x20c   :  { %v10926_v5 = vadd.f32 %v9419_v14, %v10661_v50  ;;  %v1489_v3 = vsub.f32 0.0, %v10899_v25 }
 0x20d   :  { %v948_v53 = vpop.f32.mrf.mxu1 }
 0x20e   :  { %v10929_v56 = vadd.f32 %v10661_v50, %v948_v53  ;;  %v9679_v53 = vpop.eup %9678  ;;  %v1492_v54 = vsub.f32 0.0, %v10926_v5 }
 0x20f   :  { %2149 = vrot.lane.b32.xlu1 %v10870_v6, %s9862_s9  ;;  %2147 = vrot.lane.b32.xlu0 %v10873_v62, %s9862_s9  ;;  %v9422_v14 = vpop.f32.mrf.mxu1  ;;  %v1571_v6 = vmul.f32 1.442695, %v1487_v51 }
 0x210   :  { %v10956_v20 = vadd.f32 %v9422_v14, %v10661_v50  ;;  %v1491_v49 = vsub.f32 0.0, %v10929_v56 }
 0x211   :  { %v958_v12 = vpop.f32.mrf.mxu1 }
 0x212   :  { %v1494_v44 = vsub.f32 0.0, %v10956_v20 }
 0x213   :  { %1749 = vrot.lane.b32.xlu1 %v9671_v4, %s9862_s9  ;;  %1747 = vrot.lane.b32.xlu0 %v9673_v33, %s9862_s9  ;;  %v9425_v14 = vpop.f32.mrf.mxu1 }
 0x214   :  { %v10986_v1 = vadd.f32 %v9425_v14, %v10661_v50 }
 0x215   :  { %v10901_v18 = vpop.permute.xlu1 %2109  ;;  %v10903_v61 = vpop.permute.xlu0 %1213 }
 0x216   :  { %v968_v51 = vpop.f32.mrf.mxu1  ;;  %v1496_v38 = vsub.f32 0.0, %v10986_v1 }
 0x217   :  { %1257 = vrot.lane.b32.xlu1 %v10896_v23, %s9863_s10  ;;  %1255 = vrot.lane.b32.xlu0 %v10899_v25, %s9863_s10 }
 0x218   :  { %v9428_v14 = vpop.f32.mrf.mxu1 }
 0x219   :  { %v10909_v4 = vpop.permute.xlu1 %1217  ;;  %v10911_v8 = vpop.permute.xlu0 %1211  ;;  %v11016_v48 = vadd.f32 %v9428_v14, %v10661_v50 }
 0x21b   :  { %2153 = vrot.lane.b32.xlu1 %v10896_v23, %s9862_s9  ;;  %2151 = vrot.lane.b32.xlu0 %v10899_v25, %s9862_s9  ;;  %v1575_v23 = vmul.f32 1.442695, %v1489_v3  ;;  %v978_v3 = vpop.f32.mrf.mxu1 }
 0x21d   :  { %v10917_v33 = vpop.permute.xlu1 %2113  ;;  %v10919_v0 = vpop.permute.xlu0 %2107 }
 0x21e   :  { %v9431_v14 = vpop.f32.mrf.mxu1 }
 0x21f   :  { %1753 = vrot.lane.b32.xlu1 %v9675_v9, %s9862_s9  ;;  %1751 = vrot.lane.b32.xlu0 %v9677_v52, %s9862_s9  ;;  %v1569_v9 = vmul.f32 1.442695, %v1486_v63  ;;  %v9681_v63 = vpop.eup %9680  ;;  %v11046_v42 = vadd.f32 %v9431_v14, %v10661_v50 }
 0x221   :  { %v10931_v27 = vpop.permute.xlu1 %1215  ;;  %v10933_v19 = vpop.permute.xlu0 %2111  ;;  %9682 = vpow2.f32 %v1569_v9  ;;  %v10959_v9 = vadd.f32 %v10661_v50, %v958_v12  ;;  %v1500_v30 = vsub.f32 0.0, %v11046_v42 }
 0x222   :  { %9684 = vpow2.f32 %v1567_v21 }
 0x223   :  { %1261 = vrot.lane.b32.xlu1 %v10926_v5, %s9863_s10  ;;  %1259 = vrot.lane.b32.xlu0 %v10929_v56, %s9863_s10  ;;  %v1493_v43 = vsub.f32 0.0, %v10959_v9 }
 0x225   :  { %v10939_v52 = vpop.permute.xlu1 %1221  ;;  %v10941_v11 = vpop.permute.xlu0 %1219 }
 0x227   :  { %2157 = vrot.lane.b32.xlu1 %v10926_v5, %s9862_s9  ;;  %2155 = vrot.lane.b32.xlu0 %v10929_v56, %s9862_s9  ;;  %v1579_v5 = vmul.f32 1.442695, %v1491_v49  ;;  %v988_v49 = vpop.f32.mrf.mxu1 }
 0x229   :  { %v10947_v17 = vpop.permute.xlu1 %2117  ;;  %v10949_v58 = vpop.permute.xlu0 %2115 }
 0x22a   :  { %v9434_v14 = vpop.f32.mrf.mxu1 }
 0x22b   :  { %1757 = vrot.lane.b32.xlu1 %v9679_v53, %s9862_s9  ;;  %1755 = vrot.lane.b32.xlu0 %v9681_v63, %s9862_s9  ;;  %v1573_v53 = vmul.f32 1.442695, %v1488_v57  ;;  %v11076_v36 = vadd.f32 %v9434_v14, %v10661_v50 }
 0x22d   :  { %v10961_v21 = vpop.permute.xlu1 %1225  ;;  %v10963_v10 = vpop.permute.xlu0 %1223  ;;  %9686 = vpow2.f32 %v1573_v53  ;;  %v10989_v53 = vadd.f32 %v10661_v50, %v968_v51 }
 0x22e   :  { %v9683_v12 = vpop.eup %9682  ;;  %9688 = vpow2.f32 %v1571_v6 }
 0x22f   :  { %1265 = vrot.lane.b32.xlu1 %v10956_v20, %s9863_s10  ;;  %1263 = vrot.lane.b32.xlu0 %v10959_v9, %s9863_s10  ;;  %v9685_v57 = vpop.eup %9684  ;;  %v1495_v37 = vsub.f32 0.0, %v10989_v53 }
 0x231   :  { %v10969_v63 = vpop.permute.xlu1 %2121  ;;  %v10971_v62 = vpop.permute.xlu0 %2119 }
 0x233   :  { %2161 = vrot.lane.b32.xlu1 %v10956_v20, %s9862_s9  ;;  %2159 = vrot.lane.b32.xlu0 %v10959_v9, %s9862_s9  ;;  %v1583_v20 = vmul.f32 1.442695, %v1493_v43  ;;  %v998_v43 = vpop.f32.mrf.mxu1 }
 0x235   :  { %v10977_v29 = vpop.permute.xlu1 %1229  ;;  %v10979_v15 = vpop.permute.xlu0 %1227 }
 0x236   :  { %v9437_v14 = vpop.f32.mrf.mxu1 }
 0x237   :  { %1761 = vrot.lane.b32.xlu1 %v9683_v12, %s9862_s9  ;;  %1759 = vrot.lane.b32.xlu0 %v9685_v57, %s9862_s9  ;;  %v1577_v12 = vmul.f32 1.442695, %v1490_v13 }
 0x239   :  { %v10991_v6 = vpop.permute.xlu1 %2125  ;;  %v10993_v60 = vpop.permute.xlu0 %2123  ;;  %9690 = vpow2.f32 %v1577_v12  ;;  %v11019_v12 = vadd.f32 %v10661_v50, %v978_v3 }
 0x23a   :  { %13930 = vst [vmem:[#allocation65_spill] sm:$0xff] %v10993_v60  ;;  %v9687_v51 = vpop.eup %9686  ;;  %9692 = vpow2.f32 %v1575_v23 }
 0x23b   :  { %1269 = vrot.lane.b32.xlu1 %v10986_v1, %s9863_s10  ;;  %1267 = vrot.lane.b32.xlu0 %v10989_v53, %s9863_s10  ;;  %v9689_v13 = vpop.eup %9688 }
 0x23d   :  { %v10999_v57 = vpop.permute.xlu1 %1725  ;;  %v11001_v25 = vpop.permute.xlu0 %1723 }
 0x23f   :  { %2165 = vrot.lane.b32.xlu1 %v10986_v1, %s9862_s9  ;;  %2163 = vrot.lane.b32.xlu0 %v10989_v53, %s9862_s9  ;;  %v1587_v1 = vmul.f32 1.442695, %v1495_v37  ;;  %v1008_v37 = vpop.f32.mrf.mxu1 }
 0x241   :  { %v11007_v59 = vpop.permute.xlu1 %1233  ;;  %v11009_v55 = vpop.permute.xlu0 %1231 }
 0x243   :  { %1765 = vrot.lane.b32.xlu1 %v9687_v51, %s9862_s9  ;;  %1763 = vrot.lane.b32.xlu0 %v9689_v13, %s9862_s9  ;;  %v1581_v51 = vmul.f32 1.442695, %v1492_v54 }
 0x245   :  { %v11021_v23 = vpop.permute.xlu1 %2129  ;;  %v11023_v47 = vpop.permute.xlu0 %2127  ;;  %9694 = vpow2.f32 %v1581_v51  ;;  %v11049_v51 = vadd.f32 %v10661_v50, %v988_v49 }
 0x246   :  { %13931 = vst [vmem:[#allocation66_spill] sm:$0xff] %v11021_v23  ;;  %13932 = vst [vmem:[#allocation67_spill] sm:$0xff] %v11023_v47  ;;  %v9691_v3 = vpop.eup %9690  ;;  %9696 = vpow2.f32 %v1579_v5 }
 0x247   :  { %1273 = vrot.lane.b32.xlu1 %v11016_v48, %s9863_s10  ;;  %1271 = vrot.lane.b32.xlu0 %v11019_v12, %s9863_s10  ;;  %v9693_v54 = vpop.eup %9692  ;;  %v1499_v7 = vsub.f32 0.0, %v11049_v51 }
 0x249   :  { %v11029_v13 = vpop.permute.xlu1 %1729  ;;  %v11031_v56 = vpop.permute.xlu0 %1727 }
 0x24b   :  { %2169 = vrot.lane.b32.xlu1 %v11016_v48, %s9862_s9  ;;  %2167 = vrot.lane.b32.xlu0 %v11019_v12, %s9862_s9 }
 0x24d   :  { %v11037_v46 = vpop.permute.xlu1 %1237  ;;  %v11039_v45 = vpop.permute.xlu0 %1235 }
 0x24f   :  { %1769 = vrot.lane.b32.xlu1 %v9691_v3, %s9862_s9  ;;  %1767 = vrot.lane.b32.xlu0 %v9693_v54, %s9862_s9  ;;  %v1585_v3 = vmul.f32 1.442695, %v1494_v44 }
 0x251   :  { %v11051_v5 = vpop.permute.xlu1 %2133  ;;  %v11053_v41 = vpop.permute.xlu0 %2131  ;;  %9698 = vpow2.f32 %v1585_v3  ;;  %v11079_v3 = vadd.f32 %v10661_v50, %v998_v43 }
 0x252   :  { %13933 = vst [vmem:[#allocation68_spill] sm:$0xff] %v11051_v5  ;;  %13934 = vst [vmem:[#allocation69_spill] sm:$0xff] %v11053_v41  ;;  %v9695_v49 = vpop.eup %9694  ;;  %9700 = vpow2.f32 %v1583_v20  ;;  %v1497_v41 = vsub.f32 0.0, %v11019_v12  ;;  %v11106_v5 = vadd.f32 %v9437_v14, %v10661_v50  ;;  %v9440_v14 = vpop.f32.mrf.mxu1 }
 0x253   :  { %1277 = vrot.lane.b32.xlu1 %v11046_v42, %s9863_s10  ;;  %1275 = vrot.lane.b32.xlu0 %v11049_v51, %s9863_s10  ;;  %v9697_v44 = vpop.eup %9696  ;;  %v11136_v28 = vadd.f32 %v9440_v14, %v10661_v50  ;;  %v1501_v47 = vsub.f32 0.0, %v11079_v3 }
 0x255   :  { %v11059_v54 = vpop.permute.xlu1 %1733  ;;  %v11061_v9 = vpop.permute.xlu0 %1731 }
 0x257   :  { %2173 = vrot.lane.b32.xlu1 %v11046_v42, %s9862_s9  ;;  %2171 = vrot.lane.b32.xlu0 %v11049_v51, %s9862_s9  ;;  %v1595_v42 = vmul.f32 1.442695, %v1499_v7 }
 0x259   :  { %v11067_v40 = vpop.permute.xlu1 %1241  ;;  %v11069_v39 = vpop.permute.xlu0 %1239 }
 0x25b   :  { %1773 = vrot.lane.b32.xlu1 %v9695_v49, %s9862_s9  ;;  %1771 = vrot.lane.b32.xlu0 %v9697_v44, %s9862_s9  ;;  %v1589_v49 = vmul.f32 1.442695, %v1496_v38 }
 0x25d   :  { %v11081_v20 = vpop.permute.xlu1 %2137  ;;  %v11083_v35 = vpop.permute.xlu0 %2135  ;;  %9702 = vpow2.f32 %v1589_v49  ;;  %v11109_v49 = vadd.f32 %v10661_v50, %v1008_v37 }
 0x25e   :  { %13935 = vst [vmem:[#allocation70_spill] sm:$0xff] %v11081_v20  ;;  %13936 = vst [vmem:[#allocation71_spill] sm:$0xff] %v11083_v35  ;;  %v9699_v43 = vpop.eup %9698  ;;  %9704 = vpow2.f32 %v1587_v1  ;;  %v1498_v20 = vsub.f32 0.0, %v11016_v48  ;;  %v1591_v48 = vmul.f32 1.442695, %v1497_v41  ;;  %v1018_v41 = vpop.f32.mrf.mxu1 }
 0x25f   :  { %1281 = vrot.lane.b32.xlu1 %v11076_v36, %s9863_s10  ;;  %1279 = vrot.lane.b32.xlu0 %v11079_v3, %s9863_s10  ;;  %v9701_v38 = vpop.eup %9700 }
 0x260   :  { %v9443_v14 = vpop.f32.mrf.mxu1 }
 0x261   :  { %v11089_v44 = vpop.permute.xlu1 %1737  ;;  %v11091_v53 = vpop.permute.xlu0 %1735  ;;  %v11166_v23 = vadd.f32 %v9443_v14, %v10661_v50 }
 0x262   :  { %v1028_v7 = vpop.f32.mrf.mxu1 }
 0x263   :  { %2177 = vrot.lane.b32.xlu1 %v11076_v36, %s9862_s9  ;;  %2175 = vrot.lane.b32.xlu0 %v11079_v3, %s9862_s9 }
 0x264   :  { %v9446_v14 = vpop.f32.mrf.mxu1 }
 0x265   :  { %v11097_v34 = vpop.permute.xlu1 %1245  ;;  %v11099_v35 = vpop.permute.xlu0 %1243  ;;  %v11196_v26 = vadd.f32 %v9446_v14, %v10661_v50 }
 0x266   :  { %13937 = vst [vmem:[#allocation72_spill] sm:$0xff] %v11097_v34  ;;  %13938 = vst [vmem:[#allocation73_spill] sm:$0xff] %v11099_v35  ;;  %v1503_v35 = vsub.f32 0.0, %v11109_v49 }
 0x267   :  { %1777 = vrot.lane.b32.xlu1 %v9699_v43, %s9862_s9  ;;  %1775 = vrot.lane.b32.xlu0 %v9701_v38, %s9862_s9  ;;  %v1593_v43 = vmul.f32 1.442695, %v1498_v20 }
 0x269   :  { %v11111_v1 = vpop.permute.xlu1 %2141  ;;  %v11113_v32 = vpop.permute.xlu0 %2139  ;;  %9706 = vpow2.f32 %v1593_v43  ;;  %v11139_v43 = vadd.f32 %v10661_v50, %v1018_v41 }
 0x26a   :  { %13939 = vst [vmem:[#allocation74_spill] sm:$0xff] %v11111_v1  ;;  %13940 = vst [vmem:[#allocation75_spill] sm:$0xff] %v11113_v32  ;;  %v9703_v37 = vpop.eup %9702  ;;  %9708 = vpow2.f32 %v1591_v48 }
 0x26b   :  { %1285 = vrot.lane.b32.xlu1 %v11106_v5, %s9863_s10  ;;  %1283 = vrot.lane.b32.xlu0 %v11109_v49, %s9863_s10  ;;  %v9705_v20 = vpop.eup %9704  ;;  %v1505_v2 = vsub.f32 0.0, %v11139_v43 }
 0x26d   :  { %v11119_v38 = vpop.permute.xlu1 %1741  ;;  %v11121_v12 = vpop.permute.xlu0 %1739 }
 0x26f   :  { %2181 = vrot.lane.b32.xlu1 %v11106_v5, %s9862_s9  ;;  %2179 = vrot.lane.b32.xlu0 %v11109_v49, %s9862_s9 }
 0x271   :  { %v11127_v32 = vpop.permute.xlu1 %1249  ;;  %v11129_v1 = vpop.permute.xlu0 %1247 }
 0x272   :  { %13941 = vst [vmem:[#allocation76_spill] sm:$0xff] %v11127_v32  ;;  %13942 = vst [vmem:[#allocation77_spill] sm:$0xff] %v11129_v1  ;;  %v1502_v1 = vsub.f32 0.0, %v11076_v36  ;;  %v1599_v36 = vmul.f32 1.442695, %v1501_v47  ;;  %v1038_v47 = vpop.f32.mrf.mxu1 }
 0x273   :  { %1781 = vrot.lane.b32.xlu1 %v9703_v37, %s9862_s9  ;;  %1779 = vrot.lane.b32.xlu0 %v9705_v20, %s9862_s9  ;;  %v1597_v37 = vmul.f32 1.442695, %v1500_v30 }
 0x274   :  { %v9449_v14 = vpop.f32.mrf.mxu1 }
 0x275   :  { %v11141_v48 = vpop.permute.xlu1 %2145  ;;  %v11143_v32 = vpop.permute.xlu0 %2143  ;;  %9710 = vpow2.f32 %v1597_v37  ;;  %v11169_v37 = vadd.f32 %v10661_v50, %v1028_v7 }
 0x276   :  { %13943 = vst [vmem:[#allocation78_spill] sm:$0xff] %v11141_v48  ;;  %13944 = vst [vmem:[#allocation79_spill] sm:$0xff] %v11143_v32  ;;  %v9707_v41 = vpop.eup %9706  ;;  %9712 = vpow2.f32 %v1595_v42 }
 0x277   :  { %1289 = vrot.lane.b32.xlu1 %v11136_v28, %s9863_s10  ;;  %1287 = vrot.lane.b32.xlu0 %v11139_v43, %s9863_s10  ;;  %v9709_v30 = vpop.eup %9708 }
 0x279   :  { %v11149_v20 = vpop.permute.xlu1 %1745  ;;  %v11151_v51 = vpop.permute.xlu0 %1743 }
 0x27b   :  { %2185 = vrot.lane.b32.xlu1 %v11136_v28, %s9862_s9  ;;  %2183 = vrot.lane.b32.xlu0 %v11139_v43, %s9862_s9 }
 0x27d   :  { %v11157_v32 = vpop.permute.xlu1 %1253  ;;  %v11159_v48 = vpop.permute.xlu0 %1251 }
 0x27e   :  { %13945 = vst [vmem:[#allocation80_spill] sm:$0xff] %v11157_v32  ;;  %13946 = vst [vmem:[#allocation81_spill] sm:$0xff] %v11159_v48  ;;  %v1504_v48 = vsub.f32 0.0, %v11106_v5  ;;  %v1603_v5 = vmul.f32 1.442695, %v1503_v35  ;;  %v1048_v35 = vpop.f32.mrf.mxu1 }
 0x27f   :  { %1785 = vrot.lane.b32.xlu1 %v9707_v41, %s9862_s9  ;;  %1783 = vrot.lane.b32.xlu0 %v9709_v30, %s9862_s9  ;;  %v1601_v41 = vmul.f32 1.442695, %v1502_v1 }
 0x281   :  { %v11171_v42 = vpop.permute.xlu1 %2149  ;;  %v11173_v32 = vpop.permute.xlu0 %2147  ;;  %9714 = vpow2.f32 %v1601_v41  ;;  %v11199_v41 = vadd.f32 %v10661_v50, %v1038_v47 }
 0x282   :  { %13947 = vst [vmem:[#allocation82_spill] sm:$0xff] %v11171_v42  ;;  %13948 = vst [vmem:[#allocation83_spill] sm:$0xff] %v11173_v32  ;;  %v9711_v7 = vpop.eup %9710  ;;  %9716 = vpow2.f32 %v1599_v36 }
 0x283   :  { %1293 = vrot.lane.b32.xlu1 %v11166_v23, %s9863_s10  ;;  %1291 = vrot.lane.b32.xlu0 %v11169_v37, %s9863_s10  ;;  %v9713_v1 = vpop.eup %9712 }
 0x285   :  { %v11179_v30 = vpop.permute.xlu1 %1749  ;;  %v11181_v3 = vpop.permute.xlu0 %1747 }
 0x287   :  { %2189 = vrot.lane.b32.xlu1 %v11166_v23, %s9862_s9  ;;  %2187 = vrot.lane.b32.xlu0 %v11169_v37, %s9862_s9 }
 0x289   :  { %v11187_v32 = vpop.permute.xlu1 %1257  ;;  %v11189_v42 = vpop.permute.xlu0 %1255 }
 0x28a   :  { %13949 = vst [vmem:[#allocation84_spill] sm:$0xff] %v11187_v32  ;;  %13950 = vst [vmem:[#allocation85_spill] sm:$0xff] %v11189_v42  ;;  %v1506_v42 = vsub.f32 0.0, %v11136_v28  ;;  %v1607_v28 = vmul.f32 1.442695, %v1505_v2 }
 0x28b   :  { %1789 = vrot.lane.b32.xlu1 %v9711_v7, %s9862_s9  ;;  %1787 = vrot.lane.b32.xlu0 %v9713_v1, %s9862_s9  ;;  %v1605_v7 = vmul.f32 1.442695, %v1504_v48 }
 0x28d   :  { %v11201_v36 = vpop.permute.xlu1 %2153  ;;  %v11203_v32 = vpop.permute.xlu0 %2151  ;;  %9718 = vpow2.f32 %v1605_v7  ;;  %v11229_v7 = vadd.f32 %v10661_v50, %v1048_v35 }
 0x28e   :  { %13951 = vst [vmem:[#allocation86_spill] sm:$0xff] %v11201_v36  ;;  %13952 = vst [vmem:[#allocation87_spill] sm:$0xff] %v11203_v32  ;;  %v9715_v47 = vpop.eup %9714  ;;  %9720 = vpow2.f32 %v1603_v5 }
 0x28f   :  { %1297 = vrot.lane.b32.xlu1 %v11196_v26, %s9863_s10  ;;  %1295 = vrot.lane.b32.xlu0 %v11199_v41, %s9863_s10  ;;  %v9717_v48 = vpop.eup %9716 }
 0x291   :  { %v11209_v1 = vpop.permute.xlu1 %1753  ;;  %v11211_v49 = vpop.permute.xlu0 %1751 }
 0x292   :  { %13953 = vst [vmem:[#allocation88_spill] sm:$0xff] %v11209_v1  ;;  %13954 = vst [vmem:[#allocation89_spill] sm:$0xff] %v11211_v49  ;;  %v11226_v49 = vadd.f32 %v9449_v14, %v10661_v50  ;;  %v9452_v14 = vpop.f32.mrf.mxu1 }
 0x293   :  { %2193 = vrot.lane.b32.xlu1 %v11196_v26, %s9862_s9  ;;  %2191 = vrot.lane.b32.xlu0 %v11199_v41, %s9862_s9 }
 0x294   :  { %v1058_v2 = vpop.f32.mrf.mxu1 }
 0x295   :  { %v11217_v32 = vpop.permute.xlu1 %1261  ;;  %v11219_v36 = vpop.permute.xlu0 %1259 }
 0x296   :  { %13955 = vst [vmem:[#allocation90_spill] sm:$0xff] %v11217_v32  ;;  %13956 = vst [vmem:[#allocation91_spill] sm:$0xff] %v11219_v36  ;;  %v1508_v36 = vsub.f32 0.0, %v11166_v23 }
 0x297   :  { %1793 = vrot.lane.b32.xlu1 %v9715_v47, %s9862_s9  ;;  %1791 = vrot.lane.b32.xlu0 %v9717_v48, %s9862_s9  ;;  %v1609_v47 = vmul.f32 1.442695, %v1506_v42 }
 0x299   :  { %v11231_v5 = vpop.permute.xlu1 %2157  ;;  %v11233_v32 = vpop.permute.xlu0 %2155  ;;  %9722 = vpow2.f32 %v1609_v47  ;;  %v11259_v47 = vadd.f32 %v10661_v50, %v1058_v2 }
 0x29a   :  { %13957 = vst [vmem:[#allocation92_spill] sm:$0xff] %v11231_v5  ;;  %13958 = vst [vmem:[#allocation93_spill] sm:$0xff] %v11233_v32  ;;  %v9719_v35 = vpop.eup %9718  ;;  %9724 = vpow2.f32 %v1607_v28 }
 0x29b   :  { %1301 = vrot.lane.b32.xlu1 %v11226_v49, %s9863_s10  ;;  %1299 = vrot.lane.b32.xlu0 %v11229_v7, %s9863_s10  ;;  %v9721_v42 = vpop.eup %9720 }
 0x29d   :  { %v11239_v48 = vpop.permute.xlu1 %1757  ;;  %v11241_v43 = vpop.permute.xlu0 %1755 }
 0x29e   :  { %13959 = vst [vmem:[#allocation94_spill] sm:$0xff] %v11239_v48  ;;  %13960 = vst [vmem:[#allocation95_spill] sm:$0xff] %v11241_v43  ;;  %v1507_v43 = vsub.f32 0.0, %v11169_v37  ;;  %v11256_v48 = vadd.f32 %v9452_v14, %v10661_v50  ;;  %v9455_v14 = vpop.f32.mrf.mxu1 }
 0x29f   :  { %2197 = vrot.lane.b32.xlu1 %v11226_v49, %s9862_s9  ;;  %2195 = vrot.lane.b32.xlu0 %v11229_v7, %s9862_s9 }
 0x2a0   :  { %v1611_v23 = vmul.f32 1.442695, %v1507_v43  ;;  %v1068_v43 = vpop.f32.mrf.mxu1 }
 0x2a1   :  { %v11247_v32 = vpop.permute.xlu1 %1265  ;;  %v11249_v5 = vpop.permute.xlu0 %1263 }
 0x2a2   :  { %13961 = vst [vmem:[#allocation96_spill] sm:$0xff] %v11247_v32  ;;  %13962 = vst [vmem:[#allocation97_spill] sm:$0xff] %v11249_v5  ;;  %v1509_v5 = vsub.f32 0.0, %v11199_v41 }
 0x2a3   :  { %1797 = vrot.lane.b32.xlu1 %v9719_v35, %s9862_s9  ;;  %1795 = vrot.lane.b32.xlu0 %v9721_v42, %s9862_s9  ;;  %v1613_v35 = vmul.f32 1.442695, %v1508_v36 }
 0x2a4   :  { %v1615_v41 = vmul.f32 1.442695, %v1509_v5 }
 0x2a5   :  { %v11261_v28 = vpop.permute.xlu1 %2161  ;;  %v11263_v32 = vpop.permute.xlu0 %2159  ;;  %9726 = vpow2.f32 %v1613_v35  ;;  %v11288_v35 = vld [vmem:[%s13868_s4] ss:$0 sm:$0xff] }
 0x2a6   :  { %13963 = vst [vmem:[#allocation98_spill] sm:$0xff] %v11261_v28  ;;  %13964 = vst [vmem:[#allocation99_spill] sm:$0xff] %v11263_v32  ;;  %v9723_v50 = vpop.eup %9722  ;;  %9728 = vpow2.f32 %v1611_v23  ;;  %v1510_v28 = vsub.f32 0.0, %v11196_v26  ;;  %v11291_v23 = vadd.f32 %v11288_v35, %v9455_v14  ;;  %v9458_v14 = vpop.f32.mrf.mxu1 }
 0x2a7   :  { %1305 = vrot.lane.b32.xlu1 %v11256_v48, %s9863_s10  ;;  %1303 = vrot.lane.b32.xlu0 %v11259_v47, %s9863_s10  ;;  %v9725_v36 = vpop.eup %9724 }
 0x2a8   :  { %v1617_v26 = vmul.f32 1.442695, %v1510_v28  ;;  %v1078_v5 = vpop.f32.mrf.mxu1 }
 0x2a9   :  { %v11269_v42 = vpop.permute.xlu1 %1761  ;;  %v11271_v37 = vpop.permute.xlu0 %1759 }
 0x2aa   :  { %13965 = vst [vmem:[#allocation100_spill] sm:$0xff] %v11269_v42  ;;  %13966 = vst [vmem:[#allocation101_spill] sm:$0xff] %v11271_v37  ;;  %9730 = vpow2.f32 %v1617_v26  ;;  %v11321_v42 = vadd.f32 %v11288_v35, %v9458_v14  ;;  %v11324_v26 = vadd.f32 %v11288_v35, %v1078_v5  ;;  %v9461_v14 = vpop.f32.mrf.mxu1 }
 0x2ab   :  { %2201 = vrot.lane.b32.xlu1 %v11256_v48, %s9862_s9  ;;  %2199 = vrot.lane.b32.xlu0 %v11259_v47, %s9862_s9  ;;  %9732 = vpow2.f32 %v1615_v41 }
 0x2ad   :  { %v11277_v2 = vpop.permute.xlu1 %1269  ;;  %v11279_v32 = vpop.permute.xlu0 %1267 }
 0x2ae   :  { %13967 = vst [vmem:[#allocation102_spill] sm:$0xff] %v11277_v2  ;;  %13968 = vst [vmem:[#allocation103_spill] sm:$0xff] %v11279_v32  ;;  %v11294_v32 = vadd.f32 %v11288_v35, %v1068_v43 }
 0x2af   :  { %1801 = vrot.lane.b32.xlu1 %v9723_v50, %s9862_s9  ;;  %1799 = vrot.lane.b32.xlu0 %v9725_v36, %s9862_s9 }
 0x2b1   :  { %v11296_v2 = vpop.permute.xlu1 %2165  ;;  %v11298_v50 = vpop.permute.xlu0 %2163 }
 0x2b2   :  { %13969 = vst [vmem:[#allocation104_spill] sm:$0xff] %v11296_v2  ;;  %13970 = vst [vmem:[#allocation105_spill] sm:$0xff] %v11298_v50  ;;  %v9727_v43 = vpop.eup %9726 }
 0x2b3   :  { %1309 = vrot.lane.b32.xlu1 %v11291_v23, %s9863_s10  ;;  %1307 = vrot.lane.b32.xlu0 %v11294_v32, %s9863_s10  ;;  %v9729_v28 = vpop.eup %9728 }
 0x2b5   :  { %v11304_v36 = vpop.permute.xlu1 %1765  ;;  %v11306_v37 = vpop.permute.xlu0 %1763 }
 0x2b6   :  { %13971 = vst [vmem:[#allocation106_spill] sm:$0xff] %v11304_v36  ;;  %13972 = vst [vmem:[#allocation107_spill] sm:$0xff] %v11306_v37  ;;  %v1512_v37 = vsub.f32 0.0, %v11226_v49  ;;  %v1511_v36 = vsub.f32 0.0, %v11229_v7 }
 0x2b7   :  { %2205 = vrot.lane.b32.xlu1 %v11291_v23, %s9862_s9  ;;  %2203 = vrot.lane.b32.xlu0 %v11294_v32, %s9862_s9  ;;  %v9731_v5 = vpop.eup %9730 }
 0x2b8   :  { %v1619_v49 = vmul.f32 1.442695, %v1511_v36  ;;  %v1088_v36 = vpop.f32.mrf.mxu1 }
 0x2b9   :  { %v11312_v50 = vpop.permute.xlu1 %1273  ;;  %v11314_v2 = vpop.permute.xlu0 %1271 }
 0x2ba   :  { %13973 = vst [vmem:[#allocation108_spill] sm:$0xff] %v11312_v50  ;;  %13974 = vst [vmem:[#allocation109_spill] sm:$0xff] %v11314_v2  ;;  %v1514_v2 = vsub.f32 0.0, %v11256_v48 }
 0x2bb   :  { %1805 = vrot.lane.b32.xlu1 %v9727_v43, %s9862_s9  ;;  %1803 = vrot.lane.b32.xlu0 %v9729_v28, %s9862_s9  ;;  %v1621_v43 = vmul.f32 1.442695, %v1512_v37  ;;  %v9733_v37 = vpop.eup %9732 }
 0x2bd   :  { %v11326_v41 = vpop.permute.xlu1 %2169  ;;  %v11328_v50 = vpop.permute.xlu0 %2167  ;;  %9734 = vpow2.f32 %v1621_v43  ;;  %v11354_v43 = vadd.f32 %v11288_v35, %v1088_v36 }
 0x2be   :  { %13975 = vst [vmem:[#allocation110_spill] sm:$0xff] %v11326_v41  ;;  %13976 = vst [vmem:[#allocation111_spill] sm:$0xff] %v11328_v50  ;;  %9736 = vpow2.f32 %v1619_v49 }
 0x2bf   :  { %1313 = vrot.lane.b32.xlu1 %v11321_v42, %s9863_s10  ;;  %1311 = vrot.lane.b32.xlu0 %v11324_v26, %s9863_s10 }
 0x2c1   :  { %v11334_v28 = vpop.permute.xlu1 %1769  ;;  %v11336_v7 = vpop.permute.xlu0 %1767 }
 0x2c2   :  { %13977 = vst [vmem:[#allocation112_spill] sm:$0xff] %v11334_v28  ;;  %13978 = vst [vmem:[#allocation113_spill] sm:$0xff] %v11336_v7  ;;  %v1513_v7 = vsub.f32 0.0, %v11259_v47  ;;  %v11351_v28 = vadd.f32 %v11288_v35, %v9461_v14  ;;  %v9464_v14 = vpop.f32.mrf.mxu1 }
 0x2c3   :  { %2209 = vrot.lane.b32.xlu1 %v11321_v42, %s9862_s9  ;;  %2207 = vrot.lane.b32.xlu0 %v11324_v26, %s9862_s9 }
 0x2c4   :  { %v1623_v48 = vmul.f32 1.442695, %v1513_v7  ;;  %v1098_v7 = vpop.f32.mrf.mxu1 }
 0x2c5   :  { %v11342_v50 = vpop.permute.xlu1 %1277  ;;  %v11344_v41 = vpop.permute.xlu0 %1275 }
 0x2c6   :  { %13979 = vst [vmem:[#allocation114_spill] sm:$0xff] %v11342_v50  ;;  %13980 = vst [vmem:[#allocation115_spill] sm:$0xff] %v11344_v41  ;;  %v1516_v41 = vsub.f32 0.0, %v11291_v23 }
 0x2c7   :  { %1809 = vrot.lane.b32.xlu1 %v9731_v5, %s9862_s9  ;;  %1807 = vrot.lane.b32.xlu0 %v9733_v37, %s9862_s9  ;;  %v1625_v5 = vmul.f32 1.442695, %v1514_v2 }
 0x2c9   :  { %v11356_v49 = vpop.permute.xlu1 %2173  ;;  %v11358_v50 = vpop.permute.xlu0 %2171  ;;  %9738 = vpow2.f32 %v1625_v5  ;;  %v11384_v5 = vadd.f32 %v11288_v35, %v1098_v7 }
 0x2ca   :  { %13981 = vst [vmem:[#allocation116_spill] sm:$0xff] %v11356_v49  ;;  %13982 = vst [vmem:[#allocation117_spill] sm:$0xff] %v11358_v50  ;;  %v9735_v36 = vpop.eup %9734  ;;  %9740 = vpow2.f32 %v1623_v48 }
 0x2cb   :  { %1317 = vrot.lane.b32.xlu1 %v11351_v28, %s9863_s10  ;;  %1315 = vrot.lane.b32.xlu0 %v11354_v43, %s9863_s10  ;;  %v9737_v2 = vpop.eup %9736 }
 0x2cd   :  { %v11364_v37 = vpop.permute.xlu1 %1773  ;;  %v11366_v47 = vpop.permute.xlu0 %1771 }
 0x2ce   :  { %13983 = vst [vmem:[#allocation118_spill] sm:$0xff] %v11364_v37  ;;  %13984 = vst [vmem:[#allocation119_spill] sm:$0xff] %v11366_v47  ;;  %v1515_v47 = vsub.f32 0.0, %v11294_v32  ;;  %v11381_v37 = vadd.f32 %v11288_v35, %v9464_v14  ;;  %v9467_v14 = vpop.f32.mrf.mxu1 }
 0x2cf   :  { %2213 = vrot.lane.b32.xlu1 %v11351_v28, %s9862_s9  ;;  %2211 = vrot.lane.b32.xlu0 %v11354_v43, %s9862_s9 }
 0x2d0   :  { %v1627_v23 = vmul.f32 1.442695, %v1515_v47  ;;  %v1108_v47 = vpop.f32.mrf.mxu1 }
 0x2d1   :  { %v11372_v50 = vpop.permute.xlu1 %1281  ;;  %v11374_v49 = vpop.permute.xlu0 %1279 }
 0x2d2   :  { %13985 = vst [vmem:[#allocation120_spill] sm:$0xff] %v11372_v50  ;;  %13986 = vst [vmem:[#allocation121_spill] sm:$0xff] %v11374_v49  ;;  %v1518_v49 = vsub.f32 0.0, %v11321_v42 }
 0x2d3   :  { %1813 = vrot.lane.b32.xlu1 %v9735_v36, %s9862_s9  ;;  %1811 = vrot.lane.b32.xlu0 %v9737_v2, %s9862_s9  ;;  %v1629_v36 = vmul.f32 1.442695, %v1516_v41 }
 0x2d5   :  { %v11386_v48 = vpop.permute.xlu1 %2177  ;;  %v11388_v50 = vpop.permute.xlu0 %2175  ;;  %9742 = vpow2.f32 %v1629_v36  ;;  %v11414_v36 = vadd.f32 %v11288_v35, %v1108_v47 }
 0x2d6   :  { %13987 = vst [vmem:[#allocation122_spill] sm:$0xff] %v11386_v48  ;;  %13988 = vst [vmem:[#allocation123_spill] sm:$0xff] %v11388_v50  ;;  %v9739_v7 = vpop.eup %9738  ;;  %9744 = vpow2.f32 %v1627_v23 }
 0x2d7   :  { %1321 = vrot.lane.b32.xlu1 %v11381_v37, %s9863_s10  ;;  %1319 = vrot.lane.b32.xlu0 %v11384_v5, %s9863_s10  ;;  %v9741_v41 = vpop.eup %9740 }
 0x2d9   :  { %v11394_v2 = vpop.permute.xlu1 %1777  ;;  %v11396_v32 = vpop.permute.xlu0 %1775 }
 0x2da   :  { %13989 = vst [vmem:[#allocation124_spill] sm:$0xff] %v11394_v2  ;;  %13990 = vst [vmem:[#allocation125_spill] sm:$0xff] %v11396_v32  ;;  %v1517_v32 = vsub.f32 0.0, %v11324_v26  ;;  %v11411_v2 = vadd.f32 %v11288_v35, %v9467_v14  ;;  %v9470_v14 = vpop.f32.mrf.mxu1 }
 0x2db   :  { %2217 = vrot.lane.b32.xlu1 %v11381_v37, %s9862_s9  ;;  %2215 = vrot.lane.b32.xlu0 %v11384_v5, %s9862_s9 }
 0x2dc   :  { %v1631_v42 = vmul.f32 1.442695, %v1517_v32  ;;  %v1118_v32 = vpop.f32.mrf.mxu1 }
 0x2dd   :  { %v11402_v50 = vpop.permute.xlu1 %1285  ;;  %v11404_v48 = vpop.permute.xlu0 %1283 }
 0x2de   :  { %13991 = vst [vmem:[#allocation126_spill] sm:$0xff] %v11402_v50  ;;  %13992 = vst [vmem:[#allocation127_spill] sm:$0xff] %v11404_v48  ;;  %v1520_v48 = vsub.f32 0.0, %v11351_v28  ;;  %v9473_v28 = vpop.f32.mrf.mxu1 }
 0x2df   :  { %1817 = vrot.lane.b32.xlu1 %v9739_v7, %s9862_s9  ;;  %1815 = vrot.lane.b32.xlu0 %v9741_v41, %s9862_s9  ;;  %v1633_v7 = vmul.f32 1.442695, %v1518_v49 }
 0x2e1   :  { %v11416_v23 = vpop.permute.xlu1 %2181  ;;  %v11418_v50 = vpop.permute.xlu0 %2179  ;;  %9746 = vpow2.f32 %v1633_v7  ;;  %v1119_v7 = vadd.f32 %v11288_v35, %v1118_v32 }
 0x2e2   :  { %13993 = vst [vmem:[#allocation128_spill] sm:$0xff] %v11416_v23  ;;  %13994 = vst [vmem:[#allocation129_spill] sm:$0xff] %v11418_v50  ;;  %v9743_v47 = vpop.eup %9742  ;;  %9748 = vpow2.f32 %v1631_v42 }
 0x2e3   :  { %1325 = vrot.lane.b32.xlu1 %v11411_v2, %s9863_s10  ;;  %1323 = vrot.lane.b32.xlu0 %v11414_v36, %s9863_s10  ;;  %v9745_v49 = vpop.eup %9744  ;;  %v1525_v34 = vsub.f32 0.0, %v1119_v7 }
 0x2e5   :  { %v11424_v41 = vpop.permute.xlu1 %1781  ;;  %v11426_v26 = vpop.permute.xlu0 %1779 }
 0x2e6   :  { %13995 = vst [vmem:[#allocation130_spill] sm:$0xff] %v11424_v41  ;;  %13996 = vst [vmem:[#allocation131_spill] sm:$0xff] %v11426_v26  ;;  %v1519_v26 = vsub.f32 0.0, %v11354_v43  ;;  %v1124_v41 = vadd.f32 %v11288_v35, %v9470_v14 }
 0x2e7   :  { %2221 = vrot.lane.b32.xlu1 %v11411_v2, %s9862_s9  ;;  %2219 = vrot.lane.b32.xlu0 %v11414_v36, %s9862_s9 }
 0x2e9   :  { %v11432_v50 = vpop.permute.xlu1 %1289  ;;  %v11434_v23 = vpop.permute.xlu0 %1287 }
 0x2ea   :  { %13997 = vst [vmem:[#allocation132_spill] sm:$0xff] %v11432_v50  ;;  %13998 = vst [vmem:[#allocation133_spill] sm:$0xff] %v11434_v23  ;;  %v1637_v23 = vmul.f32 1.442695, %v1520_v48  ;;  %v1522_v48 = vsub.f32 0.0, %v11381_v37  ;;  %v1523_v37 = vsub.f32 0.0, %v11414_v36 }
 0x2eb   :  { %1821 = vrot.lane.b32.xlu1 %v9743_v47, %s9862_s9  ;;  %1819 = vrot.lane.b32.xlu0 %v9745_v49, %s9862_s9  ;;  %v1635_v47 = vmul.f32 1.442695, %v1519_v26  ;;  %v1521_v26 = vsub.f32 0.0, %v11384_v5 }
 0x2ec   :  { %9750 = vpow2.f32 %v1637_v23 }
 0x2ed   :  { %v11442_v1 = vpop.permute.xlu1 %2185  ;;  %v11444_v42 = vpop.permute.xlu0 %2183  ;;  %9752 = vpow2.f32 %v1635_v47 }
 0x2ee   :  { %13999 = vst [vmem:[#allocation134_spill] sm:$0xff] %v11442_v1  ;;  %14000 = vst [vmem:[#allocation135_spill] sm:$0xff] %v11444_v42  ;;  %v9747_v43 = vpop.eup %9746  ;;  %v1128_v1 = vpop.f32.mrf.mxu1 }
 0x2ef   :  { %1329 = vrot.lane.b32.xlu1 %v1124_v41, %s9863_s10  ;;  %1327 = vrot.lane.b32.xlu0 %v1119_v7, %s9863_s10  ;;  %v9749_v42 = vpop.eup %9748  ;;  %v1129_v23 = vadd.f32 %v11288_v35, %v1128_v1 }
 0x2f1   :  { %v11448_v50 = vpop.permute.xlu1 %1785  ;;  %v11450_v49 = vpop.permute.xlu0 %1783 }
 0x2f2   :  { %14001 = vst [vmem:[#allocation136_spill] sm:$0xff] %v11448_v50  ;;  %14002 = vst [vmem:[#allocation137_spill] sm:$0xff] %v11450_v49  ;;  %v1134_v49 = vadd.f32 %v11288_v35, %v9473_v28  ;;  %v9476_v28 = vpop.f32.mrf.mxu1 }
 0x2f3   :  { %2225 = vrot.lane.b32.xlu1 %v1124_v41, %s9862_s9  ;;  %2223 = vrot.lane.b32.xlu0 %v1119_v7, %s9862_s9 }
 0x2f4   :  { %v1528_v60 = vsub.f32 0.0, %v1134_v49 }
 0x2f5   :  { %v11454_v14 = vpop.permute.xlu1 %1293  ;;  %v11456_v32 = vpop.permute.xlu0 %1291 }
 0x2f6   :  { %14003 = vst [vmem:[#allocation138_spill] sm:$0xff] %v11454_v14  ;;  %14004 = vst [vmem:[#allocation139_spill] sm:$0xff] %v11456_v32  ;;  %v1641_v32 = vmul.f32 1.442695, %v1522_v48  ;;  %v1643_v48 = vmul.f32 1.442695, %v1523_v37 }
 0x2f7   :  { %1825 = vrot.lane.b32.xlu1 %v9747_v43, %s9862_s9  ;;  %1823 = vrot.lane.b32.xlu0 %v9749_v42, %s9862_s9  ;;  %v1524_v43 = vsub.f32 0.0, %v11411_v2  ;;  %v1639_v42 = vmul.f32 1.442695, %v1521_v26 }
 0x2f8   :  { %9754 = vpow2.f32 %v1641_v32  ;;  %v1144_v32 = vadd.f32 %v11288_v35, %v9476_v28  ;;  %v9776_v28 = vld [vmem:[%s13864_s0] sm:$0xff] }
 0x2f9   :  { %v11464_v50 = vpop.permute.xlu1 %2189  ;;  %v11466_v47 = vpop.permute.xlu0 %2187  ;;  %v1645_v1 = vmul.f32 1.442695, %v1524_v43  ;;  %9756 = vpow2.f32 %v1639_v42  ;;  %v1527_v43 = vsub.f32 0.0, %v1129_v23 }
 0x2fa   :  { %14005 = vst [vmem:[#allocation140_spill] sm:$0xff] %v11464_v50  ;;  %14006 = vst [vmem:[#allocation141_spill] sm:$0xff] %v11466_v47  ;;  %v1526_v47 = vsub.f32 0.0, %v1124_v41  ;;  %v9751_v50 = vpop.eup %9750  ;;  %v1647_v41 = vmul.f32 1.442695, %v1525_v34 }
 0x2fb   :  { %1333 = vrot.lane.b32.xlu1 %v1134_v49, %s9863_s10  ;;  %1331 = vrot.lane.b32.xlu0 %v1129_v23, %s9863_s10  ;;  %v9753_v36 = vpop.eup %9752  ;;  %9758 = vpow2.f32 %v1645_v1  ;;  %v1530_v1 = vsub.f32 0.0, %v1144_v32 }
 0x2fc   :  { %9760 = vpow2.f32 %v1643_v48 }
 0x2fd   :  { %v11472_v14 = vpop.permute.xlu1 %1789  ;;  %v11474_v5 = vpop.permute.xlu0 %1787 }
 0x2fe   :  { %14007 = vst [vmem:[#allocation142_spill] sm:$0xff] %v11472_v14  ;;  %14008 = vst [vmem:[#allocation143_spill] sm:$0xff] %v11474_v5  ;;  %v1138_v14 = vpop.f32.mrf.mxu1  ;;  %v1649_v5 = vmul.f32 1.442695, %v1526_v47 }
 0x2ff   :  { %2229 = vrot.lane.b32.xlu1 %v1134_v49, %s9862_s9  ;;  %2227 = vrot.lane.b32.xlu0 %v1129_v23, %s9862_s9  ;;  %v1139_v7 = vadd.f32 %v11288_v35, %v1138_v14  ;;  %v9775_v49 = vld [vmem:[%s13864_s0 + $0x8] sm:$0xff]  ;;  %v1651_v23 = vmul.f32 1.442695, %v1527_v43 }
 0x300   :  { %9762 = vpow2.f32 %v1649_v5  ;;  %v1404_v34 = vsub.f32 %v9775_v49, %v10903_v61  ;;  %v9777_v61 = vld [vmem:[%s13864_s0 + $0x18] sm:$0xff] }
 0x301   :  { %v11478_v2 = vpop.permute.xlu1 %1297  ;;  %v11480_v26 = vpop.permute.xlu0 %1295  ;;  %9764 = vpow2.f32 %v1647_v41  ;;  %v1529_v35 = vsub.f32 0.0, %v1139_v7  ;;  %v1406_v48 = vsub.f32 %v9777_v61, %v10909_v4  ;;  %v1657_v41 = vmul.f32 1.442695, %v1530_v1  ;;  %v9780_v61 = vld [vmem:[%s13864_s0 + $0x20] sm:$0xff] }
 0x302   :  { %v1916_v5 = vmul.f32 %v10999_v57, %v1404_v34 }
 0x303   :  { %1829 = vrot.lane.b32.xlu1 %v9751_v50, %s9862_s9  ;;  %1827 = vrot.lane.b32.xlu0 %v9753_v36, %s9862_s9  ;;  %v1653_v50 = vmul.f32 1.442695, %v1528_v60  ;;  %v1403_v60 = vsub.f32 %v9776_v28, %v10911_v8  ;;  %v9778_v8 = vld [vmem:[%s13864_s0 + $0x10] sm:$0xff]  ;;  %v1918_v4 = vmul.f32 %v11029_v13, %v1406_v48  ;;  %v9779_v13 = vld [vmem:[%s13864_s0 + $0x28] sm:$0xff]  ;;  %v1407_v48 = vsub.f32 %v9780_v61, %v10941_v11 }
 0x304   :  { %v1405_v57 = vsub.f32 %v9778_v8, %v10931_v27  ;;  %v1980_v28 = vmul.f32 -0.5, %v1916_v5  ;;  %v9781_v11 = vld [vmem:[%s13864_s0 + $0x38] sm:$0xff] }
 0x305   :  { %v11486_v42 = vpop.permute.xlu1 %2193  ;;  %v11488_v37 = vpop.permute.xlu0 %2191  ;;  %v1915_v36 = vmul.f32 %v11001_v25, %v1403_v60  ;;  %9766 = vpow2.f32 %v1653_v50  ;;  %v1982_v60 = vmul.f32 -0.5, %v1918_v4 }
 0x306   :  { %v9755_v43 = vpop.eup %9754  ;;  %9768 = vpow2.f32 %v1651_v23  ;;  %v1917_v25 = vmul.f32 %v11031_v56, %v1405_v57  ;;  %v1408_v56 = vsub.f32 %v9779_v13, %v10939_v52 }
 0x307   :  { %1337 = vrot.lane.b32.xlu1 %v1144_v32, %s9863_s10  ;;  %1335 = vrot.lane.b32.xlu0 %v1139_v7, %s9863_s10  ;;  %v9757_v34 = vpop.eup %9756  ;;  %v1979_v50 = vmul.f32 -0.5, %v1915_v36  ;;  %9770 = vpow2.f32 %v1657_v41  ;;  %v2044_v41 = vmul.f32 %v1980_v28, %v1916_v5  ;;  %v1410_v5 = vsub.f32 %v9781_v11, %v10961_v21  ;;  %v9785_v11 = vld [vmem:[%s13864_s0 + $0x58] sm:$0xff] }
 0x308   :  { %v9759_v1 = vpop.eup %9758  ;;  %v2046_v28 = vmul.f32 %v1982_v60, %v1918_v4  ;;  %v9784_v4 = vld [vmem:[%s13864_s0 + $0x40] sm:$0xff] }
 0x309   :  { %v11496_v14 = vpop.permute.xlu1 %1793  ;;  %v11498_v47 = vpop.permute.xlu0 %1791  ;;  %v2043_v8 = vmul.f32 %v1979_v50, %v1915_v36  ;;  %v9782_v36 = vld [vmem:[%s13864_s0 + $0x30] sm:$0xff] }
 0x30b   :  { %2233 = vrot.lane.b32.xlu1 %v1144_v32, %s9862_s9  ;;  %2231 = vrot.lane.b32.xlu0 %v1139_v7, %s9862_s9  ;;  %v1655_v32 = vmul.f32 1.442695, %v1529_v35  ;;  %v9761_v35 = vpop.eup %9760 }
 0x30d   :  { %v11516_v7 = vpop.permute.xlu1 %1301  ;;  %v11518_v49 = vpop.permute.xlu0 %1299  ;;  %9772 = vpow2.f32 %v1655_v32  ;;  %v1920_v32 = vmul.f32 %v11059_v54, %v1408_v56  ;;  %v1409_v54 = vsub.f32 %v9782_v36, %v10963_v10  ;;  %v2299_v10 = vsub.f32 %v2043_v8, %v10919_v0 }
 0x30e   :  { %v9763_v57 = vpop.eup %9762 }
 0x30f   :  { %1833 = vrot.lane.b32.xlu1 %v9755_v43, %s9862_s9  ;;  %1831 = vrot.lane.b32.xlu0 %v9757_v34, %s9862_s9  ;;  %v1981_v43 = vmul.f32 -0.5, %v1917_v25  ;;  %v1919_v34 = vmul.f32 %v11061_v9, %v1407_v48  ;;  %v9765_v13 = vpop.eup %9764  ;;  %v2300_v9 = vsub.f32 %v2044_v41, %v10901_v18  ;;  %v1922_v18 = vmul.f32 %v11089_v44, %v1410_v5 }
 0x310   :  { %v1984_v60 = vmul.f32 -0.5, %v1920_v32  ;;  %v1921_v61 = vmul.f32 %v11091_v53, %v1409_v54  ;;  %v9030_v44 = vadd.f32 -0.9189385, %v2299_v10  ;;  %v9786_v54 = vld [vmem:[%s13864_s0 + $0x50] sm:$0xff] }
 0x311   :  { %v11524_v27 = vpop.permute.xlu1 %2197  ;;  %v11526_v23 = vpop.permute.xlu0 %2195  ;;  %v2045_v50 = vmul.f32 %v1981_v43, %v1917_v25  ;;  %v1983_v56 = vmul.f32 -0.5, %v1919_v34  ;;  %v2302_v43 = vsub.f32 %v2046_v28, %v10917_v33  ;;  %v1986_v53 = vmul.f32 -0.5, %v1922_v18 }
 0x312   :  { %14009 = vst [vmem:[#allocation144_spill] sm:$0xff] %v11526_v23  ;;  %v9767_v25 = vpop.eup %9766  ;;  %v1414_v33 = vsub.f32 %v9785_v11, %v11007_v59  ;;  %v2048_v5 = vmul.f32 %v1984_v60, %v1920_v32  ;;  %v1985_v28 = vmul.f32 -0.5, %v1921_v61  ;;  %v2619_v10 = vmul.f32 %v9030_v44, %v10608_v16 }
 0x313   :  { %1837 = vrot.lane.b32.xlu1 %v9759_v1, %s9862_s9  ;;  %1835 = vrot.lane.b32.xlu0 %v9761_v35, %s9862_s9  ;;  %v9783_v1 = vld [vmem:[%s13864_s0 + $0x48] sm:$0xff]  ;;  %v1411_v35 = vsub.f32 %v9784_v4, %v10979_v15  ;;  %v2301_v0 = vsub.f32 %v2045_v50, %v10933_v19  ;;  %v9033_v50 = vadd.f32 -0.9189385, %v2302_v43  ;;  %v2050_v32 = vmul.f32 %v1986_v53, %v1922_v18 }
 0x314   :  { %v1412_v21 = vsub.f32 %v9783_v1, %v10977_v29  ;;  %v9769_v29 = vpop.eup %9768  ;;  %v2304_v60 = vsub.f32 %v2048_v5, %v10947_v17  ;;  %v9790_v17 = vld [vmem:[%s13864_s0 + $0x70] sm:$0xff]  ;;  %v14010_v5 = vld [vmem:[#allocation65_spill] sm:$0xff] }
 0x315   :  { %v11540_v23 = vpop.permute.xlu1 %1797  ;;  %v11542_v52 = vpop.permute.xlu0 %1795  ;;  %v1923_v15 = vmul.f32 %v11121_v12, %v1411_v35  ;;  %v9032_v4 = vadd.f32 -0.9189385, %v2301_v0 }
 0x316   :  { %v9771_v8 = vpop.eup %9770 }
 0x317   :  { %1841 = vrot.lane.b32.xlu1 %v9763_v57, %s9862_s9  ;;  %1839 = vrot.lane.b32.xlu0 %v9765_v13, %s9862_s9  ;;  %v1924_v57 = vmul.f32 %v11119_v38, %v1412_v21  ;;  %v9031_v13 = vadd.f32 -0.9189385, %v2300_v9  ;;  %v2047_v38 = vmul.f32 %v1983_v56, %v1919_v34  ;;  %v1413_v9 = vsub.f32 %v9786_v54, %v11009_v55  ;;  %v9787_v55 = vld [vmem:[%s13864_s0 + $0x68] sm:$0xff] }
 0x318   :  { %v1987_v21 = vmul.f32 -0.5, %v1923_v15  ;;  %v1926_v34 = vmul.f32 %v11149_v20, %v1414_v33  ;;  %v9788_v20 = vld [vmem:[%s13864_s0 + $0x60] sm:$0xff] }
 0x319   :  { %v11566_v48 = vpop.permute.xlu1 %1305  ;;  %v11568_v41 = vpop.permute.xlu0 %1303  ;;  %v1988_v1 = vmul.f32 -0.5, %v1924_v57  ;;  %v2620_v59 = vmul.f32 %v9031_v13, %v10606_v31  ;;  %v1925_v35 = vmul.f32 %v11151_v51, %v1413_v9  ;;  %v2303_v56 = vsub.f32 %v2047_v38, %v10949_v58  ;;  %v14011_v38 = vld [vmem:[#allocation72_spill] sm:$0xff]  ;;  %v14013_v54 = vld [vmem:[#allocation89_spill] sm:$0xff] }
 0x31a   :  { %v9773_v19 = vpop.eup %9772  ;;  %v1415_v16 = vsub.f32 %v9788_v20, %v11039_v45  ;;  %v2051_v18 = vmul.f32 %v1987_v21, %v1923_v15  ;;  %v2622_v13 = vmul.f32 %v9033_v50, %v10610_v22  ;;  %v2621_v45 = vmul.f32 %v9032_v4, %v10612_v24 }
 0x31b   :  { %1845 = vrot.lane.b32.xlu1 %v9767_v25, %s9862_s9  ;;  %1843 = vrot.lane.b32.xlu0 %v9769_v29, %s9862_s9  ;;  %v1416_v25 = vsub.f32 %v9787_v55, %v11037_v46  ;;  %v2049_v29 = vmul.f32 %v1985_v28, %v1921_v61  ;;  %v2052_v51 = vmul.f32 %v1988_v1, %v1924_v57  ;;  %v9789_v46 = vld [vmem:[%s13864_s0 + $0x78] sm:$0xff]  ;;  %v1990_v57 = vmul.f32 -0.5, %v1926_v34  ;;  %v14016_v55 = vld [vmem:[#allocation6_spill] sm:$0xff] }
 0x31c   :  { %v1418_v58 = vsub.f32 %v9789_v46, %v11067_v40  ;;  %v1417_v61 = vsub.f32 %v9790_v17, %v11069_v39  ;;  %v2306_v22 = vsub.f32 %v2050_v32, %v10969_v63  ;;  %v1989_v15 = vmul.f32 -0.5, %v1925_v35  ;;  %v9791_v63 = vld [vmem:[%s13864_s0 + $0x88] sm:$0xff]  ;;  %v14012_v28 = vld [vmem:[#allocation88_spill] sm:$0xff] }
 0x31d   :  { %v11580_v12 = vpop.permute.xlu1 %2201  ;;  %v11582_v36 = vpop.permute.xlu0 %2199  ;;  %v1928_v0 = vmul.f32 %v11179_v30, %v1416_v25  ;;  %v9035_v40 = vadd.f32 -0.9189385, %v2304_v60  ;;  %v9034_v44 = vadd.f32 -0.9189385, %v2303_v56  ;;  %v2305_v53 = vsub.f32 %v2049_v29, %v10971_v62  ;;  %v14015_v32 = vld [vmem:[#allocation5_spill] sm:$0xff]  ;;  %v14017_v29 = vld [vmem:[#allocation94_spill] sm:$0xff] }
 0x31e   :  { %v2308_v33 = vsub.f32 %v2052_v51, %v10991_v6  ;;  %v2307_v24 = vsub.f32 %v2051_v18, %v14010_v5  ;;  %v1420_v30 = vsub.f32 %v9791_v63, %v14011_v38  ;;  %v1929_v62 = vmul.f32 %v14013_v54, %v1417_v61  ;;  %v14024_v63 = vld [vmem:[#allocation8_spill] sm:$0xff] }
 0x31f   :  { %1849 = vrot.lane.b32.xlu1 %v9771_v8, %s9862_s9  ;;  %1847 = vrot.lane.b32.xlu0 %v9773_v19, %s9862_s9  ;;  %v1927_v8 = vmul.f32 %v11181_v3, %v1415_v16  ;;  %v1930_v19 = vmul.f32 %v14012_v28, %v1418_v58  ;;  %v9037_v3 = vadd.f32 -0.9189385, %v2306_v22  ;;  %v2054_v9 = vmul.f32 %v1990_v57, %v1926_v34  ;;  %v9792_v34 = vld [vmem:[%s13864_s0 + $0x80] sm:$0xff]  ;;  %v14020_v58 = vld [vmem:[#allocation67_spill] sm:$0xff] }
 0x320   :  { %v2053_v50 = vmul.f32 %v1989_v15, %v1925_v35  ;;  %v1992_v6 = vmul.f32 -0.5, %v1928_v0  ;;  %v9036_v1 = vadd.f32 -0.9189385, %v2305_v53  ;;  %v2623_v25 = vmul.f32 %v9034_v44, %v14016_v55  ;;  %v14018_v35 = vld [vmem:[#allocation73_spill] sm:$0xff]  ;;  %v9793_v57 = vld [vmem:[%s13864_s0 + $0x98] sm:$0xff] }
 0x321   :  { %v11600_v43 = vpop.permute.xlu1 %1801  ;;  %v11602_v31 = vpop.permute.xlu0 %1799  ;;  %v1991_v21 = vmul.f32 -0.5, %v1927_v8  ;;  %v9039_v60 = vadd.f32 -0.9189385, %v2308_v33  ;;  %v9038_v56 = vadd.f32 -0.9189385, %v2307_v24  ;;  %v1932_v20 = vmul.f32 %v14017_v29, %v1420_v30  ;;  %v14022_v15 = vld [vmem:[#allocation76_spill] sm:$0xff] }
 0x322   :  { %v1419_v16 = vsub.f32 %v9792_v34, %v14018_v35  ;;  %v1994_v51 = vmul.f32 -0.5, %v1930_v19  ;;  %v1993_v18 = vmul.f32 -0.5, %v1929_v62  ;;  %v2309_v17 = vsub.f32 %v2053_v50, %v14020_v58  ;;  %v14023_v53 = vld [vmem:[#allocation95_spill] sm:$0xff]  ;;  %v14025_v30 = vld [vmem:[#allocation77_spill] sm:$0xff]  ;;  %v14027_v50 = vld [vmem:[#allocation10_spill] sm:$0xff] }
 0x323   :  { %2749 = vrot.lane.b32.xlu1 %v2620_v59, %s9864_s14  ;;  %2747 = vrot.lane.b32.xlu0 %v2619_v10, %s9864_s14  ;;  %v2624_v10 = vmul.f32 %v9035_v40, %v14015_v32  ;;  %v2056_v61 = vmul.f32 %v1992_v6, %v1928_v0  ;;  %v1422_v40 = vsub.f32 %v9793_v57, %v14022_v15  ;;  %v9794_v0 = vld [vmem:[%s13864_s0 + $0x90] sm:$0xff]  ;;  %v1996_v54 = vmul.f32 -0.5, %v1932_v20  ;;  %v14029_v29 = vld [vmem:[#allocation81_spill] sm:$0xff]  ;;  %v14030_v34 = vld [vmem:[#allocation68_spill] sm:$0xff] }
 0x324   :  { %v2055_v44 = vmul.f32 %v1991_v21, %v1927_v8  ;;  %v1931_v33 = vmul.f32 %v14023_v53, %v1419_v16  ;;  %v2625_v38 = vmul.f32 %v9036_v1, %v14024_v63  ;;  %v1421_v28 = vsub.f32 %v9794_v0, %v14025_v30  ;;  %v9795_v8 = vld [vmem:[%s13864_s0 + $0xa8] sm:$0xff]  ;;  %v14028_v21 = vld [vmem:[#allocation80_spill] sm:$0xff]  ;;  %v14036_v63 = vld [vmem:[#allocation71_spill] sm:$0xff] }
 0x325   :  { %v11624_v39 = vpop.permute.xlu1 %1309  ;;  %v11626_v11 = vpop.permute.xlu0 %1307  ;;  %v2627_v6 = vmul.f32 %v9038_v56, %v14027_v50  ;;  %v1424_v32 = vsub.f32 %v9795_v8, %v14028_v21  ;;  %v2057_v55 = vmul.f32 %v1993_v18, %v1929_v62  ;;  %v2312_v35 = vsub.f32 %v2056_v61, %v14030_v34  ;;  %v14031_v16 = vld [vmem:[#allocation69_spill] sm:$0xff]  ;;  %v14035_v15 = vld [vmem:[#allocation70_spill] sm:$0xff]  ;;  %v14037_v0 = vld [vmem:[#allocation107_spill] sm:$0xff] }
 0x326   :  { %v1995_v58 = vmul.f32 -0.5, %v1931_v33  ;;  %v14033_v62 = vld [vmem:[#allocation101_spill] sm:$0xff] }
 0x327   :  { %2753 = vrot.lane.b32.xlu1 %v2622_v13, %s9864_s14  ;;  %2751 = vrot.lane.b32.xlu0 %v2621_v45, %s9864_s14  ;;  %v14019_v13 = vld [vmem:[#allocation66_spill] sm:$0xff]  ;;  %v14021_v45 = vld [vmem:[#allocation7_spill] sm:$0xff] }
 0x328   :  { %v2310_v46 = vsub.f32 %v2054_v9, %v14019_v13  ;;  %v2626_v22 = vmul.f32 %v9037_v3, %v14021_v45  ;;  %v14026_v3 = vld [vmem:[#allocation9_spill] sm:$0xff]  ;;  %v2311_v13 = vsub.f32 %v2055_v44, %v14031_v16  ;;  %v14032_v45 = vld [vmem:[#allocation100_spill] sm:$0xff]  ;;  %v14038_v44 = vld [vmem:[#allocation11_spill] sm:$0xff]  ;;  %v2059_v8 = vmul.f32 %v1995_v58, %v1931_v33 }
 0x329   :  { %v11638_v4 = vpop.permute.xlu1 %2205  ;;  %v11640_v59 = vpop.permute.xlu0 %2203  ;;  %v2628_v9 = vmul.f32 %v9039_v60, %v14026_v3  ;;  %v9796_v60 = vld [vmem:[%s13864_s0 + $0xa0] sm:$0xff] }
 0x32a   :  { %14014 = vst [vmem:[#allocation65_spill] sm:$0xff] %v11640_v59  ;;  %v9041_v1 = vadd.f32 -0.9189385, %v2310_v46  ;;  %v1423_v56 = vsub.f32 %v9796_v60, %v14029_v29  ;;  %v2060_v46 = vmul.f32 %v1996_v54, %v1932_v20  ;;  %v9042_v50 = vadd.f32 -0.9189385, %v2311_v13  ;;  %v14044_v60 = vld [vmem:[#allocation74_spill] sm:$0xff] }
 0x32b   :  { %2757 = vrot.lane.b32.xlu1 %v2624_v10, %s9864_s14  ;;  %2755 = vrot.lane.b32.xlu0 %v2623_v25, %s9864_s14  ;;  %v2058_v10 = vmul.f32 %v1994_v51, %v1930_v19  ;;  %v9040_v25 = vadd.f32 -0.9189385, %v2309_v17  ;;  %v1934_v19 = vmul.f32 %v14032_v45, %v1422_v40  ;;  %v1933_v51 = vmul.f32 %v14033_v62, %v1421_v28  ;;  %v14034_v17 = vld [vmem:[#allocation106_spill] sm:$0xff]  ;;  %v14039_v28 = vld [vmem:[#allocation12_spill] sm:$0xff]  ;;  %v14046_v58 = vld [vmem:[#allocation113_spill] sm:$0xff] }
 0x32c   :  { %v1936_v57 = vmul.f32 %v14034_v17, %v1424_v32  ;;  %v1935_v61 = vmul.f32 %v14037_v0, %v1423_v56  ;;  %v9043_v40 = vadd.f32 -0.9189385, %v2312_v35  ;;  %v2630_v30 = vmul.f32 %v9041_v1, %v14038_v44  ;;  %v14043_v1 = vld [vmem:[#allocation85_spill] sm:$0xff]  ;;  %v14045_v16 = vld [vmem:[#allocation112_spill] sm:$0xff] }
 0x32d   :  { %v11659_v5 = vpop.permute.xlu1 %1805  ;;  %v11661_v24 = vpop.permute.xlu0 %1803  ;;  %v2314_v53 = vsub.f32 %v2058_v10, %v14035_v15  ;;  %v2629_v3 = vmul.f32 %v9040_v25, %v14039_v28  ;;  %v1998_v20 = vmul.f32 -0.5, %v1934_v19  ;;  %v1997_v54 = vmul.f32 -0.5, %v1933_v51  ;;  %v9797_v10 = vld [vmem:[%s13864_s0 + $0xb8] sm:$0xff]  ;;  %v14047_v62 = vld [vmem:[#allocation13_spill] sm:$0xff] }
 0x32e   :  { %v2316_v33 = vsub.f32 %v2060_v46, %v14044_v60  ;;  %v2000_v29 = vmul.f32 -0.5, %v1936_v57  ;;  %v1999_v35 = vmul.f32 -0.5, %v1935_v61  ;;  %v2632_v17 = vmul.f32 %v9043_v40, %v14047_v62  ;;  %v14048_v15 = vld [vmem:[#allocation75_spill] sm:$0xff]  ;;  %v9800_v40 = vld [vmem:[%s13864_s0 + $0xc0] sm:$0xff]  ;;  %v14054_v60 = vld [vmem:[#allocation118_spill] sm:$0xff] }
 0x32f   :  { %2761 = vrot.lane.b32.xlu1 %v2626_v22, %s9864_s14  ;;  %2759 = vrot.lane.b32.xlu0 %v2625_v38, %s9864_s14  ;;  %v2313_v38 = vsub.f32 %v2057_v55, %v14036_v63  ;;  %v9045_v56 = vadd.f32 -0.9189385, %v2314_v53  ;;  %v2315_v63 = vsub.f32 %v2059_v8, %v14048_v15  ;;  %v2062_v0 = vmul.f32 %v1998_v20, %v1934_v19  ;;  %v14049_v53 = vld [vmem:[#allocation14_spill] sm:$0xff] }
 0x330   :  { %v2061_v44 = vmul.f32 %v1997_v54, %v1933_v51  ;;  %v9047_v19 = vadd.f32 -0.9189385, %v2316_v33  ;;  %v2064_v51 = vmul.f32 %v2000_v29, %v1936_v57  ;;  %v2063_v20 = vmul.f32 %v1999_v35, %v1935_v61  ;;  %v9801_v57 = vld [vmem:[%s13864_s0 + $0xd8] sm:$0xff]  ;;  %v14057_v29 = vld [vmem:[#allocation78_spill] sm:$0xff] }
 0x331   :  { %v11684_v18 = vpop.permute.xlu1 %1313  ;;  %v11686_v22 = vpop.permute.xlu0 %1311  ;;  %v9044_v34 = vadd.f32 -0.9189385, %v2313_v38  ;;  %v2631_v38 = vmul.f32 %v9042_v50, %v14049_v53  ;;  %v14052_v50 = vld [vmem:[#allocation15_spill] sm:$0xff]  ;;  %v9046_v15 = vadd.f32 -0.9189385, %v2315_v63  ;;  %v14056_v61 = vld [vmem:[#allocation96_spill] sm:$0xff]  ;;  %v2318_v35 = vsub.f32 %v2062_v0, %v14057_v29 }
 0x332   :  { %v2634_v54 = vmul.f32 %v9045_v56, %v14052_v50  ;;  %v1430_v33 = vsub.f32 %v9801_v57, %v14056_v61  ;;  %v9804_v50 = vld [vmem:[%s13864_s0 + $0xe0] sm:$0xff] }
 0x333   :  { %2765 = vrot.lane.b32.xlu1 %v2628_v9, %s9864_s14  ;;  %2763 = vrot.lane.b32.xlu0 %v2627_v6, %s9864_s14  ;;  %v14042_v9 = vld [vmem:[#allocation84_spill] sm:$0xff]  ;;  %v9798_v6 = vld [vmem:[%s13864_s0 + $0xb0] sm:$0xff] }
 0x334   :  { %v1426_v55 = vsub.f32 %v9797_v10, %v14042_v9  ;;  %v1425_v25 = vsub.f32 %v9798_v6, %v14043_v1  ;;  %v14051_v9 = vld [vmem:[#allocation91_spill] sm:$0xff]  ;;  %v14065_v61 = vld [vmem:[#allocation124_spill] sm:$0xff] }
 0x335   :  { %v11696_v21 = vpop.permute.xlu1 %2209  ;;  %v11698_v32 = vpop.permute.xlu0 %2207  ;;  %v1427_v8 = vsub.f32 %v9800_v40, %v14051_v9  ;;  %v14061_v9 = vld [vmem:[#allocation82_spill] sm:$0xff]  ;;  %v1942_v29 = vmul.f32 %v14065_v61, %v1430_v33 }
 0x336   :  { %14040 = vst [vmem:[#allocation72_spill] sm:$0xff] %v11696_v21  ;;  %14041 = vst [vmem:[#allocation88_spill] sm:$0xff] %v11698_v32  ;;  %v1938_v13 = vmul.f32 %v14045_v16, %v1426_v55  ;;  %v1937_v45 = vmul.f32 %v14046_v58, %v1425_v25  ;;  %v14053_v55 = vld [vmem:[#allocation16_spill] sm:$0xff]  ;;  %v14055_v58 = vld [vmem:[#allocation119_spill] sm:$0xff]  ;;  %v2320_v0 = vsub.f32 %v2064_v51, %v14061_v9 }
 0x337   :  { %2769 = vrot.lane.b32.xlu1 %v2630_v30, %s9864_s14  ;;  %2767 = vrot.lane.b32.xlu0 %v2629_v3, %s9864_s14  ;;  %v9799_v30 = vld [vmem:[%s13864_s0 + $0xc8] sm:$0xff]  ;;  %v2633_v6 = vmul.f32 %v9044_v34, %v14053_v55  ;;  %v1939_v62 = vmul.f32 %v14055_v58, %v1427_v8  ;;  %v14063_v55 = vld [vmem:[#allocation103_spill] sm:$0xff] }
 0x338   :  { %v14050_v3 = vld [vmem:[#allocation90_spill] sm:$0xff]  ;;  %v2002_v1 = vmul.f32 -0.5, %v1938_v13  ;;  %v2001_v25 = vmul.f32 -0.5, %v1937_v45  ;;  %v14062_v8 = vld [vmem:[#allocation17_spill] sm:$0xff]  ;;  %v14064_v58 = vld [vmem:[#allocation83_spill] sm:$0xff] }
 0x339   :  { %v11715_v28 = vpop.permute.xlu1 %1809  ;;  %v11717_v46 = vpop.permute.xlu0 %1807  ;;  %v1428_v10 = vsub.f32 %v9799_v30, %v14050_v3  ;;  %v14059_v30 = vld [vmem:[#allocation97_spill] sm:$0xff]  ;;  %v2319_v57 = vsub.f32 %v2063_v20, %v14064_v58  ;;  %v2003_v51 = vmul.f32 -0.5, %v1939_v62  ;;  %v14070_v33 = vld [vmem:[#allocation130_spill] sm:$0xff] }
 0x33a   :  { %v9803_v3 = vld [vmem:[%s13864_s0 + $0xe8] sm:$0xff] }
 0x33b   :  { %2773 = vrot.lane.b32.xlu1 %v2632_v17, %s9864_s14  ;;  %2771 = vrot.lane.b32.xlu0 %v2631_v38, %s9864_s14  ;;  %v1940_v16 = vmul.f32 %v14054_v60, %v1428_v10  ;;  %v14058_v17 = vld [vmem:[#allocation79_spill] sm:$0xff]  ;;  %v14060_v10 = vld [vmem:[#allocation102_spill] sm:$0xff]  ;;  %v1431_v60 = vsub.f32 %v9804_v50, %v14063_v55  ;;  %v9051_v55 = vadd.f32 -0.9189385, %v2320_v0  ;;  %v14074_v0 = vld [vmem:[#allocation108_spill] sm:$0xff] }
 0x33c   :  { %v2317_v53 = vsub.f32 %v2061_v44, %v14058_v17  ;;  %v9802_v38 = vld [vmem:[%s13864_s0 + $0xd0] sm:$0xff]  ;;  %v1432_v40 = vsub.f32 %v9803_v3, %v14060_v10  ;;  %v2636_v44 = vmul.f32 %v9047_v19, %v14062_v8  ;;  %v2066_v17 = vmul.f32 %v2002_v1, %v1938_v13  ;;  %v14066_v10 = vld [vmem:[#allocation125_spill] sm:$0xff] }
 0x33d   :  { %v11740_v56 = vpop.permute.xlu1 %1317  ;;  %v11742_v34 = vpop.permute.xlu0 %1315  ;;  %v1429_v63 = vsub.f32 %v9802_v38, %v14059_v30  ;;  %v2065_v38 = vmul.f32 %v2001_v25, %v1937_v45  ;;  %v2004_v30 = vmul.f32 -0.5, %v1940_v16  ;;  %v9049_v3 = vadd.f32 -0.9189385, %v2318_v35  ;;  %v14069_v50 = vld [vmem:[#allocation18_spill] sm:$0xff]  ;;  %v14073_v25 = vld [vmem:[#allocation87_spill] sm:$0xff] }
 0x33e   :  { %v9048_v19 = vadd.f32 -0.9189385, %v2317_v53  ;;  %v2635_v20 = vmul.f32 %v9046_v15, %v14069_v50  ;;  %v1944_v58 = vmul.f32 %v14070_v33, %v1432_v40  ;;  %v2006_v13 = vmul.f32 -0.5, %v1942_v29  ;;  %v14072_v45 = vld [vmem:[#allocation86_spill] sm:$0xff]  ;;  %v9805_v15 = vld [vmem:[%s13864_s0 + $0xf8] sm:$0xff] }
 0x33f   :  { %2777 = vrot.lane.b32.xlu1 %v2634_v54, %s9864_s14  ;;  %2775 = vrot.lane.b32.xlu0 %v2633_v6, %s9864_s14  ;;  %v1941_v9 = vmul.f32 %v14066_v10, %v1429_v63  ;;  %v14071_v54 = vld [vmem:[#allocation131_spill] sm:$0xff]  ;;  %v9050_v6 = vadd.f32 -0.9189385, %v2319_v57  ;;  %v2322_v1 = vsub.f32 %v2066_v17, %v14072_v45  ;;  %v2321_v35 = vsub.f32 %v2065_v38, %v14073_v25  ;;  %v9807_v45 = vld [vmem:[%s13864_s0 + $0x108] sm:$0xff] }
 0x340   :  { %v1943_v61 = vmul.f32 %v14071_v54, %v1431_v60  ;;  %v2068_v53 = vmul.f32 %v2004_v30, %v1940_v16  ;;  %v2067_v63 = vmul.f32 %v2003_v51, %v1939_v62  ;;  %v1434_v40 = vsub.f32 %v9805_v15, %v14074_v0  ;;  %v9806_v16 = vld [vmem:[%s13864_s0 + $0xf0] sm:$0xff]  ;;  %v14077_v62 = vld [vmem:[#allocation109_spill] sm:$0xff] }
 0x341   :  { %v11763_v8 = vpop.permute.xlu1 %2213  ;;  %v11765_v32 = vpop.permute.xlu0 %2211  ;;  %v2005_v10 = vmul.f32 -0.5, %v1941_v9  ;;  %v1433_v17 = vsub.f32 %v9806_v16, %v14077_v62  ;;  %v2008_v38 = vmul.f32 -0.5, %v1944_v58  ;;  %v14078_v51 = vld [vmem:[#allocation21_spill] sm:$0xff]  ;;  %v14079_v25 = vld [vmem:[#allocation114_spill] sm:$0xff]  ;;  %v2070_v0 = vmul.f32 %v2006_v13, %v1942_v29  ;;  %v14081_v16 = vld [vmem:[#allocation92_spill] sm:$0xff] }
 0x342   :  { %14067 = vst [vmem:[#allocation89_spill] sm:$0xff] %v11763_v8  ;;  %14068 = vst [vmem:[#allocation5_spill] sm:$0xff] %v11765_v32  ;;  %v2007_v30 = vmul.f32 -0.5, %v1943_v61  ;;  %v2640_v54 = vmul.f32 %v9051_v55, %v14078_v51  ;;  %v1436_v15 = vsub.f32 %v9807_v45, %v14079_v25  ;;  %v2324_v62 = vsub.f32 %v2068_v53, %v14081_v16  ;;  %v14082_v32 = vld [vmem:[#allocation93_spill] sm:$0xff]  ;;  %v14083_v51 = vld [vmem:[#allocation115_spill] sm:$0xff] }
 0x343   :  { %2781 = vrot.lane.b32.xlu1 %v2636_v44, %s9864_s14  ;;  %2779 = vrot.lane.b32.xlu0 %v2635_v20, %s9864_s14  ;;  %v14075_v44 = vld [vmem:[#allocation19_spill] sm:$0xff]  ;;  %v14076_v20 = vld [vmem:[#allocation20_spill] sm:$0xff]  ;;  %v2323_v8 = vsub.f32 %v2067_v63, %v14082_v32  ;;  %v2069_v45 = vmul.f32 %v2005_v10, %v1941_v9  ;;  %v14086_v53 = vld [vmem:[#allocation142_spill] sm:$0xff] }
 0x344   :  { %v2638_v50 = vmul.f32 %v9049_v3, %v14075_v44  ;;  %v2637_v33 = vmul.f32 %v9048_v19, %v14076_v20  ;;  %v14080_v3 = vld [vmem:[#allocation22_spill] sm:$0xff]  ;;  %v9053_v44 = vadd.f32 -0.9189385, %v2322_v1  ;;  %v9052_v20 = vadd.f32 -0.9189385, %v2321_v35  ;;  %v9808_v55 = vld [vmem:[%s13864_s0 + $0x100] sm:$0xff] }
 0x345   :  { %v11778_v60 = vpop.permute.xlu1 %1813  ;;  %v11780_v57 = vpop.permute.xlu0 %1811  ;;  %v2639_v19 = vmul.f32 %v9050_v6, %v14080_v3  ;;  %v1435_v21 = vsub.f32 %v9808_v55, %v14083_v51  ;;  %v14084_v29 = vld [vmem:[#allocation136_spill] sm:$0xff]  ;;  %v2072_v1 = vmul.f32 %v2008_v38, %v1944_v58  ;;  %v2071_v35 = vmul.f32 %v2007_v30, %v1943_v61  ;;  %v14087_v32 = vld [vmem:[#allocation98_spill] sm:$0xff]  ;;  %v14088_v16 = vld [vmem:[#allocation143_spill] sm:$0xff] }
 0x346   :  { %v1946_v13 = vmul.f32 %v14084_v29, %v1434_v40  ;;  %v1948_v3 = vmul.f32 %v14086_v53, %v1436_v15  ;;  %v2326_v63 = vsub.f32 %v2070_v0, %v14087_v32  ;;  %v9055_v9 = vadd.f32 -0.9189385, %v2324_v62  ;;  %v14089_v10 = vld [vmem:[#allocation23_spill] sm:$0xff]  ;;  %v14090_v55 = vld [vmem:[#allocation24_spill] sm:$0xff] }
 0x347   :  { %2785 = vrot.lane.b32.xlu1 %v2638_v50, %s9864_s14  ;;  %2783 = vrot.lane.b32.xlu0 %v2637_v33, %s9864_s14  ;;  %v14085_v50 = vld [vmem:[#allocation137_spill] sm:$0xff]  ;;  %v1947_v59 = vmul.f32 %v14088_v16, %v1435_v21  ;;  %v9054_v40 = vadd.f32 -0.9189385, %v2323_v8  ;;  %v2641_v51 = vmul.f32 %v9052_v20, %v14090_v55  ;;  %v9809_v58 = vld [vmem:[%s13864_s0 + $0x118] sm:$0xff]  ;;  %v9810_v8 = vld [vmem:[%s13864_s0 + $0x110] sm:$0xff] }
 0x348   :  { %v1945_v25 = vmul.f32 %v14085_v50, %v1433_v17  ;;  %v2642_v17 = vmul.f32 %v9053_v44, %v14089_v10  ;;  %v14091_v61 = vld [vmem:[#allocation120_spill] sm:$0xff]  ;;  %v14092_v30 = vld [vmem:[#allocation99_spill] sm:$0xff]  ;;  %v2010_v0 = vmul.f32 -0.5, %v1946_v13  ;;  %v14097_v50 = vld [vmem:[#allocation105_spill] sm:$0xff]  ;;  %v2012_v32 = vmul.f32 -0.5, %v1948_v3 }
 0x349   :  { %v11804_v33 = vpop.permute.xlu1 %1321  ;;  %v11806_v6 = vpop.permute.xlu0 %1319  ;;  %v1438_v38 = vsub.f32 %v9809_v58, %v14091_v61  ;;  %v2325_v15 = vsub.f32 %v2069_v45, %v14092_v30  ;;  %v14096_v20 = vld [vmem:[#allocation104_spill] sm:$0xff]  ;;  %v2327_v53 = vsub.f32 %v2071_v35, %v14097_v50  ;;  %v9057_v16 = vadd.f32 -0.9189385, %v2326_v63  ;;  %v14098_v58 = vld [vmem:[#allocation25_spill] sm:$0xff]  ;;  %v14099_v30 = vld [vmem:[#allocation26_spill] sm:$0xff] }
 0x34a   :  { %v2009_v21 = vmul.f32 -0.5, %v1945_v25  ;;  %v2328_v62 = vsub.f32 %v2072_v1, %v14096_v20  ;;  %v2011_v10 = vmul.f32 -0.5, %v1947_v59  ;;  %v2644_v61 = vmul.f32 %v9055_v9, %v14098_v58  ;;  %v9811_v1 = vld [vmem:[%s13864_s0 + $0x128] sm:$0xff] }
 0x34b   :  { %2789 = vrot.lane.b32.xlu1 %v2640_v54, %s9864_s14  ;;  %2787 = vrot.lane.b32.xlu0 %v2639_v19, %s9864_s14  ;;  %v14095_v19 = vld [vmem:[#allocation121_spill] sm:$0xff]  ;;  %v1950_v45 = vmul.f32 %v11496_v14, %v1438_v38  ;;  %v14100_v35 = vld [vmem:[#allocation126_spill] sm:$0xff]  ;;  %v9058_v38 = vadd.f32 -0.9189385, %v2327_v53 }
 0x34c   :  { %v1437_v44 = vsub.f32 %v9810_v8, %v14095_v19  ;;  %v9056_v8 = vadd.f32 -0.9189385, %v2325_v15  ;;  %v1440_v63 = vsub.f32 %v9811_v1, %v14100_v35  ;;  %v2074_v19 = vmul.f32 %v2010_v0, %v1946_v13  ;;  %v9812_v14 = vld [vmem:[%s13864_s0 + $0x120] sm:$0xff]  ;;  %v14102_v13 = vld [vmem:[#allocation27_spill] sm:$0xff] }
 0x34d   :  { %v11820_v29 = vpop.permute.xlu1 %2217  ;;  %v11822_v54 = vpop.permute.xlu0 %2215  ;;  %v2073_v20 = vmul.f32 %v2009_v21, %v1945_v25  ;;  %v2076_v15 = vmul.f32 %v2012_v32, %v1948_v3  ;;  %v2646_v25 = vmul.f32 %v9057_v16, %v14102_v13  ;;  %v2014_v0 = vmul.f32 -0.5, %v1950_v45  ;;  %v14104_v3 = vld [vmem:[#allocation110_spill] sm:$0xff]  ;;  %v14105_v32 = vld [vmem:[#allocation111_spill] sm:$0xff]  ;;  %v14106_v16 = vld [vmem:[#allocation28_spill] sm:$0xff] }
 0x34e   :  { %14093 = vst [vmem:[#allocation6_spill] sm:$0xff] %v11820_v29  ;;  %14094 = vst [vmem:[#allocation94_spill] sm:$0xff] %v11822_v54  ;;  %v1949_v55 = vmul.f32 %v11498_v47, %v1437_v44  ;;  %v2643_v54 = vmul.f32 %v9054_v40, %v14099_v30  ;;  %v14101_v47 = vld [vmem:[#allocation127_spill] sm:$0xff]  ;;  %v9059_v40 = vadd.f32 -0.9189385, %v2328_v62  ;;  %v2075_v44 = vmul.f32 %v2011_v10, %v1947_v59  ;;  %v14103_v62 = vld [vmem:[#allocation132_spill] sm:$0xff] }
 0x34f   :  { %2793 = vrot.lane.b32.xlu1 %v2642_v17, %s9864_s14  ;;  %2791 = vrot.lane.b32.xlu0 %v2641_v51, %s9864_s14  ;;  %v1439_v9 = vsub.f32 %v9812_v14, %v14101_v47  ;;  %v1952_v50 = vmul.f32 %v11540_v23, %v1440_v63  ;;  %v9813_v30 = vld [vmem:[%s13864_s0 + $0x138] sm:$0xff]  ;;  %v2330_v59 = vsub.f32 %v2074_v19, %v14104_v3  ;;  %v9814_v23 = vld [vmem:[%s13864_s0 + $0x130] sm:$0xff]  ;;  %v14109_v47 = vld [vmem:[#allocation29_spill] sm:$0xff] }
 0x350   :  { %v2013_v21 = vmul.f32 -0.5, %v1949_v55  ;;  %v1442_v53 = vsub.f32 %v9813_v30, %v14103_v62  ;;  %v2329_v10 = vsub.f32 %v2073_v20, %v14105_v32  ;;  %v2645_v1 = vmul.f32 %v9056_v8, %v14106_v16  ;;  %v14108_v63 = vld [vmem:[#allocation116_spill] sm:$0xff]  ;;  %v14110_v13 = vld [vmem:[#allocation30_spill] sm:$0xff]  ;;  %v14112_v3 = vld [vmem:[#allocation139_spill] sm:$0xff] }
 0x351   :  { %v11840_v17 = vpop.permute.xlu1 %1817  ;;  %v11842_v51 = vpop.permute.xlu0 %1815  ;;  %v1951_v58 = vmul.f32 %v11542_v52, %v1439_v9  ;;  %v14107_v52 = vld [vmem:[#allocation133_spill] sm:$0xff]  ;;  %v2332_v14 = vsub.f32 %v2076_v15, %v14108_v63  ;;  %v2648_v9 = vmul.f32 %v9059_v40, %v14109_v47  ;;  %v2647_v19 = vmul.f32 %v9058_v38, %v14110_v13  ;;  %v14111_v30 = vld [vmem:[#allocation138_spill] sm:$0xff] }
 0x352   :  { %v1441_v35 = vsub.f32 %v9814_v23, %v14107_v52  ;;  %v9815_v20 = vld [vmem:[%s13864_s0 + $0x148] sm:$0xff]  ;;  %v9816_v8 = vld [vmem:[%s13864_s0 + $0x140] sm:$0xff]  ;;  %v2078_v40 = vmul.f32 %v2014_v0, %v1950_v45  ;;  %v2077_v38 = vmul.f32 %v2013_v21, %v1949_v55  ;;  %v2016_v15 = vmul.f32 -0.5, %v1952_v50  ;;  %v14115_v0 = vld [vmem:[#allocation123_spill] sm:$0xff] }
 0x353   :  { %2797 = vrot.lane.b32.xlu1 %v2644_v61, %s9864_s14  ;;  %2795 = vrot.lane.b32.xlu0 %v2643_v54, %s9864_s14  ;;  %v1444_v62 = vsub.f32 %v9815_v20, %v14111_v30  ;;  %v1443_v32 = vsub.f32 %v9816_v8, %v14112_v3  ;;  %v14113_v16 = vld [vmem:[#allocation117_spill] sm:$0xff]  ;;  %v2015_v52 = vmul.f32 -0.5, %v1951_v58  ;;  %v9061_v63 = vadd.f32 -0.9189385, %v2330_v59  ;;  %v14114_v45 = vld [vmem:[#allocation122_spill] sm:$0xff] }
 0x354   :  { %v2331_v23 = vsub.f32 %v2075_v44, %v14113_v16  ;;  %v9060_v47 = vadd.f32 -0.9189385, %v2329_v10  ;;  %v1954_v13 = vmul.f32 %v11600_v43, %v1442_v53  ;;  %v1953_v20 = vmul.f32 %v11602_v31, %v1441_v35 }
 0x355   :  { %v11859_v61 = vpop.permute.xlu1 %1325  ;;  %v11861_v54 = vpop.permute.xlu0 %1323  ;;  %v9063_v8 = vadd.f32 -0.9189385, %v2332_v14  ;;  %v1956_v44 = vmul.f32 %v11659_v5, %v1444_v62  ;;  %v2334_v55 = vsub.f32 %v2078_v40, %v14114_v45  ;;  %v2333_v43 = vsub.f32 %v2077_v38, %v14115_v0  ;;  %v14116_v5 = vld [vmem:[#allocation31_spill] sm:$0xff]  ;;  %v14117_v62 = vld [vmem:[#allocation32_spill] sm:$0xff]  ;;  %v14121_v0 = vld [vmem:[#allocation129_spill] sm:$0xff] }
 0x356   :  { %v2080_v21 = vmul.f32 %v2016_v15, %v1952_v50  ;;  %v2079_v31 = vmul.f32 %v2015_v52, %v1951_v58  ;;  %v2018_v53 = vmul.f32 -0.5, %v1954_v13  ;;  %v2017_v59 = vmul.f32 -0.5, %v1953_v20  ;;  %v9818_v50 = vld [vmem:[%s13864_s0 + $0x150] sm:$0xff]  ;;  %v9820_v38 = vld [vmem:[%s13864_s0 + $0x160] sm:$0xff] }
 0x357   :  { %2801 = vrot.lane.b32.xlu1 %v2646_v25, %s9864_s14  ;;  %2799 = vrot.lane.b32.xlu0 %v2645_v1, %s9864_s14  ;;  %v9062_v25 = vadd.f32 -0.9189385, %v2331_v23  ;;  %v1955_v1 = vmul.f32 %v11661_v24, %v1443_v32  ;;  %v2650_v14 = vmul.f32 %v9061_v63, %v14116_v5  ;;  %v2649_v24 = vmul.f32 %v9060_v47, %v14117_v62  ;;  %v14118_v32 = vld [vmem:[#allocation33_spill] sm:$0xff] }
 0x358   :  { %v1445_v58 = vsub.f32 %v9818_v50, %v11480_v26  ;;  %v2020_v3 = vmul.f32 -0.5, %v1956_v44  ;;  %v2652_v16 = vmul.f32 %v9063_v8, %v14118_v32  ;;  %v9819_v23 = vld [vmem:[%s13864_s0 + $0x168] sm:$0xff]  ;;  %v9065_v63 = vadd.f32 -0.9189385, %v2334_v55  ;;  %v14120_v8 = vld [vmem:[#allocation128_spill] sm:$0xff] }
 0x359   :  { %v11884_v30 = vpop.permute.xlu1 %2221  ;;  %v11886_v29 = vpop.permute.xlu0 %2219  ;;  %v1448_v40 = vsub.f32 %v9819_v23, %v11516_v7  ;;  %v2019_v15 = vmul.f32 -0.5, %v1955_v1  ;;  %v14119_v26 = vld [vmem:[#allocation34_spill] sm:$0xff]  ;;  %v9064_v47 = vadd.f32 -0.9189385, %v2333_v43  ;;  %v2336_v45 = vsub.f32 %v2080_v21, %v14120_v8  ;;  %v14122_v43 = vld [vmem:[#allocation35_spill] sm:$0xff]  ;;  %v14123_v21 = vld [vmem:[#allocation36_spill] sm:$0xff] }
 0x35a   :  { %v2651_v52 = vmul.f32 %v9062_v25, %v14119_v26  ;;  %v2335_v5 = vsub.f32 %v2079_v31, %v14121_v0  ;;  %v2082_v7 = vmul.f32 %v2018_v53, %v1954_v13  ;;  %v2081_v62 = vmul.f32 %v2017_v59, %v1953_v20  ;;  %v14124_v31 = vld [vmem:[#allocation134_spill] sm:$0xff]  ;;  %v14125_v59 = vld [vmem:[#allocation135_spill] sm:$0xff] }
 0x35b   :  { %2805 = vrot.lane.b32.xlu1 %v2648_v9, %s9864_s14  ;;  %2803 = vrot.lane.b32.xlu0 %v2647_v19, %s9864_s14  ;;  %v9817_v9 = vld [vmem:[%s13864_s0 + $0x158] sm:$0xff]  ;;  %v1957_v50 = vmul.f32 %v11717_v46, %v1445_v58  ;;  %v1960_v25 = vmul.f32 %v11778_v60, %v1448_v40  ;;  %v9067_v13 = vadd.f32 -0.9189385, %v2336_v45  ;;  %v2653_v46 = vmul.f32 %v9064_v47, %v14123_v21  ;;  %v14128_v47 = vld [vmem:[#allocation37_spill] sm:$0xff]  ;;  %v14129_v45 = vld [vmem:[#allocation38_spill] sm:$0xff] }
 0x35c   :  { %v1446_v19 = vsub.f32 %v9817_v9, %v11478_v2  ;;  %v1447_v2 = vsub.f32 %v9820_v38, %v11518_v49  ;;  %v9066_v20 = vadd.f32 -0.9189385, %v2335_v5  ;;  %v2338_v53 = vsub.f32 %v2082_v7, %v14124_v31  ;;  %v14126_v40 = vld [vmem:[#allocation140_spill] sm:$0xff] }
 0x35d   :  { %v11894_v10 = vpop.permute.xlu1 %1821  ;;  %v11896_v35 = vpop.permute.xlu0 %1819  ;;  %v2024_v26 = vmul.f32 -0.5, %v1960_v25  ;;  %v2656_v8 = vmul.f32 %v9067_v13, %v14128_v47 }
 0x35e   :  { %v1958_v9 = vmul.f32 %v11715_v28, %v1446_v19  ;;  %v1959_v55 = vmul.f32 %v11780_v57, %v1447_v2  ;;  %v2654_v28 = vmul.f32 %v9065_v63, %v14122_v43  ;;  %v2337_v19 = vsub.f32 %v2081_v62, %v14125_v59  ;;  %v9821_v57 = vld [vmem:[%s13864_s0 + $0x178] sm:$0xff]  ;;  %v14127_v2 = vld [vmem:[#allocation141_spill] sm:$0xff] }
 0x35f   :  { %2809 = vrot.lane.b32.xlu1 %v2650_v14, %s9864_s14  ;;  %2807 = vrot.lane.b32.xlu0 %v2649_v24, %s9864_s14  ;;  %v2084_v14 = vmul.f32 %v2020_v3, %v1956_v44  ;;  %v2083_v24 = vmul.f32 %v2019_v15, %v1955_v1  ;;  %v2021_v1 = vmul.f32 -0.5, %v1957_v50  ;;  %v1450_v3 = vsub.f32 %v9821_v57, %v11566_v48  ;;  %v9823_v43 = vld [vmem:[%s13864_s0 + $0x188] sm:$0xff]  ;;  %v9825_v57 = vld [vmem:[%s13864_s0 + $0x198] sm:$0xff] }
 0x360   :  { %v2022_v44 = vmul.f32 -0.5, %v1958_v9  ;;  %v2655_v0 = vmul.f32 %v9066_v20, %v14129_v45  ;;  %v9069_v5 = vadd.f32 -0.9189385, %v2338_v53  ;;  %v2088_v21 = vmul.f32 %v2024_v26, %v1960_v25  ;;  %v14130_v25 = vld [vmem:[#allocation39_spill] sm:$0xff] }
 0x361   :  { %v11924_v49 = vpop.permute.xlu1 %1329  ;;  %v11926_v32 = vpop.permute.xlu0 %1327  ;;  %v2340_v38 = vsub.f32 %v2084_v14, %v14126_v40  ;;  %v2339_v15 = vsub.f32 %v2083_v24, %v14127_v2  ;;  %v1962_v63 = vmul.f32 %v11840_v17, %v1450_v3  ;;  %v2085_v62 = vmul.f32 %v2021_v1, %v1957_v50  ;;  %v9824_v17 = vld [vmem:[%s13864_s0 + $0x180] sm:$0xff] }
 0x362   :  { %v2086_v7 = vmul.f32 %v2022_v44, %v1958_v9  ;;  %v14131_v44 = vld [vmem:[#allocation40_spill] sm:$0xff] }
 0x363   :  { %2813 = vrot.lane.b32.xlu1 %v2652_v16, %s9864_s14  ;;  %2811 = vrot.lane.b32.xlu0 %v2651_v52, %s9864_s14  ;;  %v9822_v16 = vld [vmem:[%s13864_s0 + $0x170] sm:$0xff]  ;;  %v2023_v52 = vmul.f32 -0.5, %v1959_v55  ;;  %v9071_v13 = vadd.f32 -0.9189385, %v2340_v38  ;;  %v9070_v20 = vadd.f32 -0.9189385, %v2339_v15  ;;  %v2341_v59 = vsub.f32 %v2085_v62, %v11488_v37 }
 0x364   :  { %v1449_v23 = vsub.f32 %v9822_v16, %v11568_v41  ;;  %v9068_v41 = vadd.f32 -0.9189385, %v2337_v19  ;;  %v2026_v9 = vmul.f32 -0.5, %v1962_v63  ;;  %v2342_v53 = vsub.f32 %v2086_v7, %v11486_v42  ;;  %v9826_v42 = vld [vmem:[%s13864_s0 + $0x190] sm:$0xff] }
 0x365   :  { %v11936_v58 = vpop.permute.xlu1 %2225  ;;  %v11938_v60 = vpop.permute.xlu0 %2223  ;;  %v1453_v37 = vsub.f32 %v9826_v42, %v11686_v22  ;;  %v2344_v16 = vsub.f32 %v2088_v21, %v11524_v27  ;;  %v14134_v38 = vld [vmem:[#allocation42_spill] sm:$0xff] }
 0x366   :  { %v1961_v48 = vmul.f32 %v11842_v51, %v1449_v23  ;;  %v1451_v51 = vsub.f32 %v9824_v17, %v11626_v11  ;;  %v2657_v1 = vmul.f32 %v9068_v41, %v14131_v44  ;;  %v14133_v23 = vld [vmem:[#allocation144_spill] sm:$0xff]  ;;  %v2659_v2 = vmul.f32 %v9070_v20, %v14134_v38  ;;  %v9827_v27 = vld [vmem:[%s13864_s0 + $0x1a8] sm:$0xff]  ;;  %v14135_v20 = vld [vmem:[#allocation43_spill] sm:$0xff] }
 0x367   :  { %2817 = vrot.lane.b32.xlu1 %v2654_v28, %s9864_s14  ;;  %2815 = vrot.lane.b32.xlu0 %v2653_v46, %s9864_s14  ;;  %v1452_v28 = vsub.f32 %v9823_v43, %v11624_v39  ;;  %v2087_v46 = vmul.f32 %v2023_v52, %v1959_v55  ;;  %v2658_v55 = vmul.f32 %v9069_v5, %v14130_v25  ;;  %v9073_v47 = vadd.f32 -0.9189385, %v2342_v53  ;;  %v14137_v53 = vld [vmem:[#allocation45_spill] sm:$0xff]  ;;  %v14141_v38 = vld [vmem:[#allocation48_spill] sm:$0xff] }
 0x368   :  { %v2025_v50 = vmul.f32 -0.5, %v1961_v48  ;;  %v1963_v39 = vmul.f32 %v11896_v35, %v1451_v51  ;;  %v14132_v35 = vld [vmem:[#allocation41_spill] sm:$0xff]  ;;  %v2090_v15 = vmul.f32 %v2026_v9, %v1962_v63  ;;  %v1456_v41 = vsub.f32 %v9827_v27, %v11740_v56 }
 0x369   :  { %v1826_v14 = vpop.permute.xlu1 %1825  ;;  %v1824_v24 = vpop.permute.xlu0 %1823  ;;  %v1964_v31 = vmul.f32 %v11894_v10, %v1452_v28  ;;  %v1454_v10 = vsub.f32 %v9825_v57, %v11684_v18  ;;  %v2660_v3 = vmul.f32 %v9071_v13, %v14132_v35  ;;  %v2343_v40 = vsub.f32 %v2087_v46, %v14133_v23  ;;  %v9828_v63 = vld [vmem:[%s13864_s0 + $0x1a0] sm:$0xff]  ;;  %v14140_v23 = vld [vmem:[#allocation47_spill] sm:$0xff] }
 0x36a   :  { %v2089_v18 = vmul.f32 %v2025_v50, %v1961_v48  ;;  %v2027_v52 = vmul.f32 -0.5, %v1963_v39  ;;  %v1965_v22 = vmul.f32 %v1824_v24, %v1453_v37  ;;  %v1455_v48 = vsub.f32 %v9828_v63, %v11742_v34  ;;  %v14136_v46 = vld [vmem:[#allocation44_spill] sm:$0xff] }
 0x36b   :  { %2821 = vrot.lane.b32.xlu1 %v2656_v8, %s9864_s14  ;;  %2819 = vrot.lane.b32.xlu0 %v2655_v0, %s9864_s14  ;;  %v2028_v26 = vmul.f32 -0.5, %v1964_v31  ;;  %v9072_v8 = vadd.f32 -0.9189385, %v2341_v59  ;;  %v1966_v45 = vmul.f32 %v1826_v14, %v1454_v10  ;;  %v9075_v7 = vadd.f32 -0.9189385, %v2344_v16  ;;  %v14138_v59 = vld [vmem:[#allocation46_spill] sm:$0xff] }
 0x36c   :  { %v9074_v62 = vadd.f32 -0.9189385, %v2343_v40  ;;  %v2346_v14 = vsub.f32 %v2090_v15, %v11580_v12  ;;  %v2345_v24 = vsub.f32 %v2089_v18, %v11582_v36  ;;  %v2091_v28 = vmul.f32 %v2027_v52, %v1963_v39  ;;  %v14143_v18 = vld [vmem:[#allocation88_spill] sm:$0xff] }
 0x36d   :  { %v11970_v19 = vpop.permute.xlu1 %1333  ;;  %v11972_v11 = vpop.permute.xlu0 %1331  ;;  %v2092_v43 = vmul.f32 %v2028_v26, %v1964_v31  ;;  %v2030_v17 = vmul.f32 -0.5, %v1966_v45  ;;  %v2029_v56 = vmul.f32 -0.5, %v1965_v22  ;;  %v2662_v21 = vmul.f32 %v9073_v47, %v14135_v20 }
 0x36e   :  { %v2661_v34 = vmul.f32 %v9072_v8, %v14136_v46  ;;  %v2664_v12 = vmul.f32 %v9075_v7, %v14137_v53  ;;  %v2663_v36 = vmul.f32 %v9074_v62, %v14138_v59  ;;  %v9077_v31 = vadd.f32 -0.9189385, %v2346_v14  ;;  %v14145_v62 = vld [vmem:[#allocation50_spill] sm:$0xff] }
 0x36f   :  { %2825 = vrot.lane.b32.xlu1 %v2658_v55, %s9864_s14  ;;  %2823 = vrot.lane.b32.xlu0 %v2657_v1, %s9864_s14  ;;  %v9076_v39 = vadd.f32 -0.9189385, %v2345_v24  ;;  %v2348_v25 = vsub.f32 %v2092_v43, %v11638_v4  ;;  %v14139_v55 = vld [vmem:[#allocation65_spill] sm:$0xff]  ;;  %v2094_v1 = vmul.f32 %v2030_v17, %v1966_v45  ;;  %v2093_v57 = vmul.f32 %v2029_v56, %v1965_v22  ;;  %v9829_v22 = vld [vmem:[%s13864_s0 + $0x1b8] sm:$0xff] }
 0x370   :  { %v2347_v44 = vsub.f32 %v2091_v28, %v14139_v55  ;;  %v2666_v40 = vmul.f32 %v9077_v31, %v14140_v23  ;;  %v1458_v27 = vsub.f32 %v9829_v22, %v11804_v33  ;;  %v14146_v28 = vld [vmem:[#allocation89_spill] sm:$0xff]  ;;  %v14149_v55 = vld [vmem:[#allocation52_spill] sm:$0xff]  ;;  %v14153_v22 = vld [vmem:[#allocation54_spill] sm:$0xff] }
 0x371   :  { %v11990_v0 = vpop.permute.xlu1 %2229  ;;  %v11992_v5 = vpop.permute.xlu0 %2227  ;;  %v2665_v4 = vmul.f32 %v9076_v39, %v14141_v38  ;;  %v2349_v26 = vsub.f32 %v2093_v57, %v14143_v18  ;;  %v14147_v56 = vld [vmem:[#allocation5_spill] sm:$0xff]  ;;  %v14148_v39 = vld [vmem:[#allocation51_spill] sm:$0xff] }
 0x372   :  { %v9078_v16 = vadd.f32 -0.9189385, %v2347_v44  ;;  %v9833_v38 = vld [vmem:[%s13864_s0 + $0x1d8] sm:$0xff] }
 0x373   :  { %2829 = vrot.lane.b32.xlu1 %v2660_v3, %s9864_s14  ;;  %2827 = vrot.lane.b32.xlu0 %v2659_v2, %s9864_s14  ;;  %v9079_v3 = vadd.f32 -0.9189385, %v2348_v25  ;;  %v14142_v2 = vld [vmem:[#allocation72_spill] sm:$0xff]  ;;  %v9080_v43 = vadd.f32 -0.9189385, %v2349_v26 }
 0x374   :  { %v2350_v15 = vsub.f32 %v2094_v1, %v14142_v2  ;;  %v2667_v14 = vmul.f32 %v9078_v16, %v14145_v62  ;;  %v9834_v2 = vld [vmem:[%s13864_s0 + $0x1d0] sm:$0xff] }
 0x375   :  { %v1830_v51 = vpop.permute.xlu1 %1829  ;;  %v1828_v13 = vpop.permute.xlu0 %1827  ;;  %v2669_v44 = vmul.f32 %v9080_v43, %v14149_v55 }
 0x376   :  { %v1968_v9 = vmul.f32 %v1830_v51, %v1456_v41  ;;  %v1967_v50 = vmul.f32 %v1828_v13, %v1455_v48  ;;  %v9830_v41 = vld [vmem:[%s13864_s0 + $0x1b0] sm:$0xff]  ;;  %v14144_v48 = vld [vmem:[#allocation49_spill] sm:$0xff]  ;;  %v9081_v24 = vadd.f32 -0.9189385, %v2350_v15  ;;  %v1461_v15 = vsub.f32 %v9834_v2, %v11926_v32 }
 0x377   :  { %2833 = vrot.lane.b32.xlu1 %v2662_v21, %s9864_s14  ;;  %2831 = vrot.lane.b32.xlu0 %v2661_v34, %s9864_s14  ;;  %v1457_v63 = vsub.f32 %v9830_v41, %v11806_v6  ;;  %v2668_v7 = vmul.f32 %v9079_v3, %v14144_v48  ;;  %v9831_v6 = vld [vmem:[%s13864_s0 + $0x1c8] sm:$0xff]  ;;  %v9832_v34 = vld [vmem:[%s13864_s0 + $0x1c0] sm:$0xff] }
 0x378   :  { %v2032_v10 = vmul.f32 -0.5, %v1968_v9  ;;  %v2031_v42 = vmul.f32 -0.5, %v1967_v50  ;;  %v1460_v46 = vsub.f32 %v9831_v6, %v11859_v61  ;;  %v2670_v25 = vmul.f32 %v9081_v24, %v14148_v39  ;;  %v14151_v3 = vld [vmem:[#allocation94_spill] sm:$0xff]  ;;  %v14154_v24 = vld [vmem:[#allocation55_spill] sm:$0xff]  ;;  %v14156_v6 = vld [vmem:[#allocation57_spill] sm:$0xff] }
 0x379   :  { %v12014_v37 = vpop.permute.xlu1 %1337  ;;  %v12016_v35 = vpop.permute.xlu0 %1335 }
 0x37a   :  { %v2096_v52 = vmul.f32 %v2032_v10, %v1968_v9  ;;  %v2095_v47 = vmul.f32 %v2031_v42, %v1967_v50  ;;  %v1459_v9 = vsub.f32 %v9832_v34, %v11861_v54  ;;  %v14150_v42 = vld [vmem:[#allocation6_spill] sm:$0xff] }
 0x37b   :  { %2837 = vrot.lane.b32.xlu1 %v2664_v12, %s9864_s14  ;;  %2835 = vrot.lane.b32.xlu0 %v2663_v36, %s9864_s14  ;;  %v14157_v34 = vld [vmem:[#allocation58_spill] sm:$0xff] }
 0x37c   :  { %v2352_v17 = vsub.f32 %v2096_v52, %v14146_v28  ;;  %v2351_v51 = vsub.f32 %v2095_v47, %v14147_v56  ;;  %v14152_v52 = vld [vmem:[#allocation53_spill] sm:$0xff]  ;;  %v14155_v28 = vld [vmem:[#allocation56_spill] sm:$0xff] }
 0x37d   :  { %v12024_v8 = vpop.permute.xlu1 %2233  ;;  %v12026_v45 = vpop.permute.xlu0 %2231 }
 0x37e   :  { %v9083_v12 = vadd.f32 -0.9189385, %v2352_v17  ;;  %v9082_v59 = vadd.f32 -0.9189385, %v2351_v51 }
 0x37f   :  { %2841 = vrot.lane.b32.xlu1 %v2666_v40, %s9864_s14  ;;  %2839 = vrot.lane.b32.xlu0 %v2665_v4, %s9864_s14  ;;  %v1462_v4 = vsub.f32 %v9833_v38, %v11924_v49  ;;  %v9837_v38 = vld [vmem:[%s13864_s0 + $0x1f8] sm:$0xff] }
 0x380   :  { %v2672_v47 = vmul.f32 %v9083_v12, %v14152_v52  ;;  %v14158_v12 = vld [vmem:[#allocation59_spill] sm:$0xff] }
 0x381   :  { %v1834_v13 = vpop.permute.xlu1 %1833  ;;  %v1832_v20 = vpop.permute.xlu0 %1831 }
 0x382   :  { %v1970_v21 = vmul.f32 %v1834_v13, %v1458_v27  ;;  %v1969_v33 = vmul.f32 %v1832_v20, %v1457_v63  ;;  %v2671_v27 = vmul.f32 %v9082_v59, %v14153_v22 }
 0x383   :  { %2845 = vrot.lane.b32.xlu1 %v2668_v7, %s9864_s14  ;;  %2843 = vrot.lane.b32.xlu0 %v2667_v14, %s9864_s14 }
 0x384   :  { %v2034_v50 = vmul.f32 -0.5, %v1970_v21  ;;  %v2033_v53 = vmul.f32 -0.5, %v1969_v33 }
 0x385   :  { %v1838_v36 = vpop.permute.xlu1 %1837  ;;  %v1836_v31 = vpop.permute.xlu0 %1835 }
 0x386   :  { %v2098_v1 = vmul.f32 %v2034_v50, %v1970_v21  ;;  %v2097_v57 = vmul.f32 %v2033_v53, %v1969_v33  ;;  %v1972_v10 = vmul.f32 %v1838_v36, %v1460_v46  ;;  %v1971_v61 = vmul.f32 %v1836_v31, %v1459_v9  ;;  %v14159_v36 = vld [vmem:[#allocation60_spill] sm:$0xff] }
 0x387   :  { %2849 = vrot.lane.b32.xlu1 %v2670_v25, %s9864_s14  ;;  %2847 = vrot.lane.b32.xlu0 %v2669_v44, %s9864_s14 }
 0x388   :  { %v2354_v54 = vsub.f32 %v2098_v1, %v14150_v42  ;;  %v2353_v16 = vsub.f32 %v2097_v57, %v14151_v3  ;;  %v2036_v23 = vmul.f32 -0.5, %v1972_v10  ;;  %v2035_v40 = vmul.f32 -0.5, %v1971_v61 }
 0x389   :  { %v1842_v18 = vpop.permute.xlu1 %1841  ;;  %v1840_v26 = vpop.permute.xlu0 %1839 }
 0x38a   :  { %v9085_v41 = vadd.f32 -0.9189385, %v2354_v54  ;;  %v9084_v63 = vadd.f32 -0.9189385, %v2353_v16  ;;  %v2100_v48 = vmul.f32 %v2036_v23, %v1972_v10  ;;  %v2099_v7 = vmul.f32 %v2035_v40, %v1971_v61  ;;  %v9835_v10 = vld [vmem:[%s13864_s0 + $0x1e8] sm:$0xff]  ;;  %v9836_v23 = vld [vmem:[%s13864_s0 + $0x1e0] sm:$0xff] }
 0x38b   :  { %v1974_v62 = vmul.f32 %v1842_v18, %v1462_v4  ;;  %v1973_v14 = vmul.f32 %v1840_v26, %v1461_v15  ;;  %2853 = vrot.lane.b32.xlu1 %v2672_v47, %s9864_s14  ;;  %2851 = vrot.lane.b32.xlu0 %v2671_v27, %s9864_s14  ;;  %v1464_v61 = vsub.f32 %v9835_v10, %v11970_v19 }
 0x38c   :  { %v2356_v49 = vsub.f32 %v2100_v48, %v11884_v30  ;;  %v2355_v32 = vsub.f32 %v2099_v7, %v11886_v29  ;;  %v2674_v43 = vmul.f32 %v9085_v41, %v14154_v24  ;;  %v2673_v17 = vmul.f32 %v9084_v63, %v14155_v28 }
 0x38d   :  { %v2038_v56 = vmul.f32 -0.5, %v1974_v62  ;;  %v2037_v51 = vmul.f32 -0.5, %v1973_v14  ;;  %v1844_v39 = vpop.permute.xlu0 %1843  ;;  %v1846_v55 = vpop.permute.xlu1 %1845  ;;  %v1463_v40 = vsub.f32 %v9836_v23, %v11972_v11  ;;  %v1466_v4 = vsub.f32 %v9837_v38, %v12014_v37 }
 0x38e   :  { %v9087_v13 = vadd.f32 -0.9189385, %v2356_v49  ;;  %v9086_v20 = vadd.f32 -0.9189385, %v2355_v32  ;;  %v1976_v3 = vmul.f32 %v1846_v55, %v1464_v61 }
 0x38f   :  { %v2102_v21 = vmul.f32 %v2038_v56, %v1974_v62  ;;  %v2101_v33 = vmul.f32 %v2037_v51, %v1973_v14  ;;  %2857 = vrot.lane.b32.xlu1 %v2674_v43, %s9864_s14  ;;  %2855 = vrot.lane.b32.xlu0 %v2673_v17, %s9864_s14  ;;  %v1975_v15 = vmul.f32 %v1844_v39, %v1463_v40  ;;  %v14160_v17 = vld [vmem:[#allocation61_spill] sm:$0xff] }
 0x390   :  { %v2676_v46 = vmul.f32 %v9087_v13, %v14156_v6  ;;  %v2675_v30 = vmul.f32 %v9086_v20, %v14157_v34  ;;  %v2040_v2 = vmul.f32 -0.5, %v1976_v3  ;;  %v14162_v20 = vld [vmem:[#allocation62_spill] sm:$0xff] }
 0x391   :  { %v2358_v29 = vsub.f32 %v2102_v21, %v11936_v58  ;;  %v2357_v9 = vsub.f32 %v2101_v33, %v11938_v60  ;;  %v12086_v25 = vpop.permute.xlu0 %1847  ;;  %v1850_v44 = vpop.permute.xlu1 %1849  ;;  %v2039_v22 = vmul.f32 -0.5, %v1975_v15 }
 0x392   :  { %v1978_v18 = vmul.f32 %v1850_v44, %v1466_v4  ;;  %v2104_v47 = vmul.f32 %v2040_v2, %v1976_v3 }
 0x393   :  { %v9089_v50 = vadd.f32 -0.9189385, %v2358_v29  ;;  %v9088_v53 = vadd.f32 -0.9189385, %v2357_v9  ;;  %2861 = vrot.lane.b32.xlu1 %v2676_v46, %s9864_s14  ;;  %2859 = vrot.lane.b32.xlu0 %v2675_v30, %s9864_s14  ;;  %v2103_v48 = vmul.f32 %v2039_v22, %v1975_v15  ;;  %v9865_v22 = vmov 0  }
 0x394   :  { %v2042_v27 = vmul.f32 -0.5, %v1978_v18  ;;  %v2360_v63 = vsub.f32 %v2104_v47, %v11990_v0  ;;  %v14161_v0 = vld [vmem:[#allocation63_spill] sm:$0xff]  ;;  %9517 = vset.pattern.permute.xlu1 %v9865_v22  ;;  %9516 = vset.pattern.permute.xlu0 %v9865_v22 }
 0x395   :  { %v2678_v59 = vmul.f32 %v9089_v50, %v14158_v12  ;;  %v2677_v31 = vmul.f32 %v9088_v53, %v14159_v36  ;;  %v2748_v58 = vpop.permute.xlu0 %2747  ;;  %v2750_v57 = vpop.permute.xlu1 %2749  ;;  %v2359_v14 = vsub.f32 %v2103_v48, %v11992_v5  ;;  %v9838_v36 = vld [vmem:[%s13864_s0 + $0x1f0] sm:$0xff]  ;;  %s9867_s0 = smov [#allocation2]  }
 0x396   :  { %v2940_v54 = vsel %vm2939_vm1, %v2748_v58, 0.0  ;;  %v2943_v52 = vsel %vm2939_vm1, %v2750_v57, 0.0  ;;  %v2106_v7 = vmul.f32 %v2042_v27, %v1978_v18  ;;  %v9091_v62 = vadd.f32 -0.9189385, %v2360_v63 }
 0x397   :  { %2865 = vrot.lane.b32.xlu1 %v2678_v59, %s9864_s14  ;;  %2863 = vrot.lane.b32.xlu0 %v2677_v31, %s9864_s14  ;;  %v9090_v24 = vadd.f32 -0.9189385, %v2359_v14  ;;  %v1465_v31 = vsub.f32 %v9838_v36, %v12016_v35 }
 0x398   :  { %v2362_v49 = vsub.f32 %v2106_v7, %v12024_v8  ;;  %v2680_v56 = vmul.f32 %v9091_v62, %v14160_v17 }
 0x399   :  { %v2752_v60 = vpop.permute.xlu0 %2751  ;;  %v2754_v16 = vpop.permute.xlu1 %2753  ;;  %v2679_v21 = vmul.f32 %v9090_v24, %v14162_v20  ;;  %v1977_v58 = vmul.f32 %v12086_v25, %v1465_v31 }
 0x39a   :  { %v2949_v19 = vsel %vm2939_vm1, %v2754_v16, 0.0  ;;  %v9093_v43 = vadd.f32 -0.9189385, %v2362_v49  ;;  %v2946_v12 = vsel %vm2939_vm1, %v2752_v60, 0.0 }
 0x39b   :  { %v2041_v57 = vmul.f32 -0.5, %v1977_v58 }
 0x39c   :  { %v2682_v13 = vmul.f32 %v9093_v43, %v14161_v0 }
 0x39d   :  { %v12088_v1 = vpop.permute.xlu0 %2755  ;;  %v2758_v11 = vpop.permute.xlu1 %2757  ;;  %v2105_v35 = vmul.f32 %v2041_v57, %v1977_v58 }
 0x39e   :  { %v2955_v39 = vsel %vm2939_vm1, %v2758_v11, 0.0  ;;  %v2952_v55 = vsel %vm2939_vm1, %v12088_v1, 0.0 }
 0x39f   :  { %v2361_v25 = vsub.f32 %v2105_v35, %v12026_v45 }
 0x3a1   :  { %v12094_v42 = vpop.permute.xlu0 %2759  ;;  %v12108_v37 = vpop.permute.xlu1 %2761  ;;  %v9092_v40 = vadd.f32 -0.9189385, %v2361_v25 }
 0x3a2   :  { %v2958_v10 = vsel %vm2939_vm1, %v12094_v42, 0.0  ;;  %v2961_v17 = vsel %vm2939_vm1, %v12108_v37, 0.0 }
 0x3a5   :  { %v2764_v26 = vpop.permute.xlu0 %2763  ;;  %v12112_v28 = vpop.permute.xlu1 %2765 }
 0x3a6   :  { %v2967_v0 = vsel %vm2939_vm1, %v12112_v28, 0.0 }
 0x3a9   :  { %v2768_v41 = vpop.permute.xlu0 %2767  ;;  %v12118_v33 = vpop.permute.xlu1 %2769 }
 0x3aa   :  { %v2970_v1 = vsel %vm2939_vm1, %v2768_v41, 0.0 }
 0x3ad   :  { %v2772_v32 = vpop.permute.xlu0 %2771  ;;  %v12122_v8 = vpop.permute.xlu1 %2773 }
 0x3ae   :  { %v2976_v38 = vsel %vm2939_vm1, %v2772_v32, 0.0 }
 0x3b1   :  { %v2776_v51 = vpop.permute.xlu0 %2775  ;;  %v12124_v46 = vpop.permute.xlu1 %2777 }
 0x3b2   :  { %v2982_v4 = vsel %vm2939_vm1, %v2776_v51, 0.0 }
 0x3b5   :  { %v2780_v5 = vpop.permute.xlu0 %2779  ;;  %v12126_v30 = vpop.permute.xlu1 %2781 }
 0x3b6   :  { %2941 = vadd.xlane.f32.xlu0 %v2940_v54  ;;  %v2964_v54 = vsel %vm2939_vm1, %v2764_v26, 0.0  ;;  %v2988_v45 = vsel %vm2939_vm1, %v2780_v5, 0.0 }
 0x3b9   :  { %v2784_v6 = vpop.permute.xlu0 %2783  ;;  %v12128_v9 = vpop.permute.xlu1 %2785 }
 0x3ba   :  { %2950 = vadd.xlane.f32.xlu0 %v2949_v19  ;;  %v14163_v19 = vld [vmem:[#allocation64_spill] sm:$0xff] }
 0x3bb   :  { %2944 = vadd.xlane.f32.xlu1 %v2943_v52  ;;  %v2681_v2 = vmul.f32 %v9092_v40, %v14163_v19  ;;  %v2994_v52 = vsel %vm2939_vm1, %v2784_v6, 0.0 }
 0x3bd   :  { %v2788_v34 = vpop.permute.xlu0 %2787  ;;  %v12130_v53 = vpop.permute.xlu1 %2789 }
 0x3be   :  { %v3000_v27 = vsel %vm2939_vm1, %v2788_v34, 0.0  ;;  %v2979_v34 = vsel %vm2939_vm1, %v12122_v8, 0.0 }
 0x3c1   :  { %v2792_v29 = vpop.permute.xlu0 %2791  ;;  %v12141_v44 = vpop.permute.xlu1 %2793 }
 0x3c2   :  { %v3006_v41 = vsel %vm2939_vm1, %v2792_v29, 0.0  ;;  %v3009_v57 = vsel %vm2939_vm1, %v12141_v44, 0.0 }
 0x3c5   :  { %v2796_v50 = vpop.permute.xlu0 %2795  ;;  %v12145_v61 = vpop.permute.xlu1 %2797 }
 0x3c6   :  { %v3012_v7 = vsel %vm2939_vm1, %v2796_v50, 0.0  ;;  %v2985_v50 = vsel %vm2939_vm1, %v12124_v46, 0.0 }
 0x3c9   :  { %v2800_v59 = vpop.permute.xlu0 %2799  ;;  %v12150_v16 = vpop.permute.xlu1 %2801 }
 0x3ca   :  { %v3018_v14 = vsel %vm2939_vm1, %v2800_v59, 0.0  ;;  %v2991_v59 = vsel %vm2939_vm1, %v12126_v30, 0.0  ;;  %v3021_v25 = vsel %vm2939_vm1, %v12150_v16, 0.0 }
 0x3cc   :  { %2869 = vrot.lane.b32.xlu1 %v2680_v56, %s9864_s14 }
 0x3cd   :  { %v2804_v60 = vpop.permute.xlu0 %2803  ;;  %v12153_v42 = vpop.permute.xlu1 %2805 }
 0x3ce   :  { %v3024_v32 = vsel %vm2939_vm1, %v2804_v60, 0.0 }
 0x3d0   :  { %2873 = vrot.lane.b32.xlu1 %v2682_v13, %s9864_s14  ;;  %2867 = vrot.lane.b32.xlu0 %v2679_v21, %s9864_s14  ;;  %v2973_v21 = vsel %vm2939_vm1, %v12118_v33, 0.0 }
 0x3d1   :  { %v2808_v3 = vpop.permute.xlu0 %2807  ;;  %v12159_v18 = vpop.permute.xlu1 %2809 }
 0x3d2   :  { %v3030_v56 = vsel %vm2939_vm1, %v2808_v3, 0.0  ;;  %v3033_v16 = vsel %vm2939_vm1, %v12159_v18, 0.0 }
 0x3d5   :  { %v2812_v23 = vpop.permute.xlu0 %2811  ;;  %v12162_v47 = vpop.permute.xlu1 %2813 }
 0x3d6   :  { %v3036_v13 = vsel %vm2939_vm1, %v2812_v23, 0.0  ;;  %v3027_v23 = vsel %vm2939_vm1, %v12153_v42, 0.0 }
 0x3d9   :  { %v2816_v15 = vpop.permute.xlu0 %2815  ;;  %v12166_v63 = vpop.permute.xlu1 %2817 }
 0x3da   :  { %v3042_v5 = vsel %vm2939_vm1, %v2816_v15, 0.0 }
 0x3dd   :  { %v2820_v26 = vpop.permute.xlu0 %2819  ;;  %v12169_v62 = vpop.permute.xlu1 %2821 }
 0x3de   :  { %v3048_v28 = vsel %vm2939_vm1, %v2820_v26, 0.0 }
 0x3e1   :  { %v2824_v11 = vpop.permute.xlu0 %2823  ;;  %v12173_v24 = vpop.permute.xlu1 %2825 }
 0x3e2   :  { %v3054_v33 = vsel %vm2939_vm1, %v2824_v11, 0.0 }
 0x3e5   :  { %v2828_v48 = vpop.permute.xlu0 %2827  ;;  %v12178_v51 = vpop.permute.xlu1 %2829 }
 0x3e6   :  { %v3060_v36 = vsel %vm2939_vm1, %v2828_v48, 0.0 }
 0x3e9   :  { %v2832_v49 = vpop.permute.xlu0 %2831  ;;  %v12186_v37 = vpop.permute.xlu1 %2833 }
 0x3ea   :  { %v3066_v46 = vsel %vm2939_vm1, %v2832_v49, 0.0 }
 0x3ed   :  { %v2836_v43 = vpop.permute.xlu0 %2835  ;;  %v12191_v29 = vpop.permute.xlu1 %2837 }
 0x3ee   :  { %v3072_v30 = vsel %vm2939_vm1, %v2836_v43, 0.0 }
 0x3ef   :  { %2947 = vadd.xlane.f32.xlu0 %v2946_v12 }
 0x3f1   :  { %v2840_v20 = vpop.permute.xlu0 %2839  ;;  %v12199_v8 = vpop.permute.xlu1 %2841 }
 0x3f3   :  { %2956 = vadd.xlane.f32.xlu0 %v2955_v39  ;;  %v2997_v39 = vsel %vm2939_vm1, %v12128_v9, 0.0 }
 0x3f4   :  { %2953 = vadd.xlane.f32.xlu1 %v2952_v55  ;;  %v3003_v55 = vsel %vm2939_vm1, %v12130_v53, 0.0 }
 0x3f5   :  { %v2844_v6 = vpop.permute.xlu0 %2843  ;;  %v12204_v58 = vpop.permute.xlu1 %2845 }
 0x3f6   :  { %v3084_v53 = vsel %vm2939_vm1, %v2844_v6, 0.0 }
 0x3f8   :  { %2959 = vadd.xlane.f32.xlu1 %v2958_v10  ;;  %v3078_v10 = vsel %vm2939_vm1, %v2840_v20, 0.0 }
 0x3f9   :  { %v2848_v12 = vpop.permute.xlu0 %2847  ;;  %v12212_v9 = vpop.permute.xlu1 %2849 }
 0x3fa   :  { %v3090_v44 = vsel %vm2939_vm1, %v2848_v12, 0.0 }
 0x3fc   :  { %2965 = vadd.xlane.f32.xlu1 %v2964_v54  ;;  %v3015_v54 = vsel %vm2939_vm1, %v12145_v61, 0.0 }
 0x3fd   :  { %v2852_v31 = vpop.permute.xlu0 %2851  ;;  %v12217_v3 = vpop.permute.xlu1 %2853 }
 0x3fe   :  { %v3096_v40 = vsel %vm2939_vm1, %v2852_v31, 0.0 }
 0x400   :  { %2971 = vadd.xlane.f32.xlu1 %v2970_v1 }
 0x401   :  { %v2856_v60 = vpop.permute.xlu0 %2855  ;;  %v12225_v61 = vpop.permute.xlu1 %2857 }
 0x402   :  { %v3102_v19 = vsel %vm2939_vm1, %v2856_v60, 0.0 }
 0x404   :  { %2977 = vadd.xlane.f32.xlu1 %v2976_v38 }
 0x405   :  { %v2860_v35 = vpop.permute.xlu0 %2859 }
 0x406   :  { %v3108_v26 = vsel %vm2939_vm1, %v2860_v35, 0.0 }
 0x408   :  { %2983 = vadd.xlane.f32.xlu1 %v2982_v4  ;;  %v3196_v4 = vlaneseq }
 0x409   :  { %2871 = vrot.lane.b32.xlu0 %v2681_v2, %s9864_s14  ;;  %v2864_v1 = vpop.permute.xlu0 %2863  ;;  %v12232_v2 = vpop.permute.xlu1 %2861  ;;  %s8956_s14 = sshll.u32 %s9867_s0, 4  ;;  %s8957_s14 = int_to_ptr.vmem [resolvable:$true] %s8956_s14 }
 0x40a   :  { %v12237_v42 = vshrl.u32 %v3196_v4, 7  ;;  %s9839_s26 = scalar_lea.vmem %s8957_s14, 64  ;;  %p9844_p1 = scmp.lt.s32.totalorder %s8957_s14, %s8957_s14 }
 0x40b   :  { %p9840_p0 = scmp.ne.s32.totalorder %s8957_s14, %s9839_s26  ;;  %p9845_p2 = scmp.lt.s32.totalorder %s9839_s26, %s9839_s26 }
 0x40c   :  { %2989 = vadd.xlane.f32.xlu1 %v2988_v45  ;;  %v3039_v45 = vsel %vm2939_vm1, %v12162_v47, 0.0  ;;  %v12243_v18 = vsub.s32 0, %v12237_v42  ;;  %v12249_v22 = vsub.s32 2, %v12237_v42  ;;  %v3114_v47 = vsel %vm2939_vm1, %v2864_v1, 0.0 }
 0x40d   :  { %v12255_v48 = vsub.s32 3, %v12237_v42  ;;  %v12266_v43 = vsub.s32 6, %v12237_v42  ;;  %p9846_p3 = por %p9845_p2, %p9844_p1 }
 0x40f   :  { %p9847_p4 = pnand %p9846_p3, %p9840_p0 }
 0x410   :  { %2995 = vadd.xlane.f32.xlu1 %v2994_v52  ;;  %v12246_v52 = vsub.s32 1, %v12237_v42 }
 0x414   :  { %3001 = vadd.xlane.f32.xlu1 %v3000_v27  ;;  %v9866_v27 = vmov 1966171168  }
 0x415   :  { %v5249_v11 = vunpack.c.l.s4 %v9866_v27 }
 0x418   :  { %3007 = vadd.xlane.f32.xlu1 %v3006_v41  ;;  %v3045_v41 = vsel %vm2939_vm1, %v12166_v63, 0.0  ;;  %v12269_v63 = vsub.s32 7, %v12237_v42 }
 0x41c   :  { %3013 = vadd.xlane.f32.xlu1 %v3012_v7  ;;  %v12258_v7 = vsub.s32 4, %v12237_v42 }
 0x420   :  { %3019 = vadd.xlane.f32.xlu1 %v3018_v14  ;;  %v12260_v14 = vpop.permute.xlu1 %2865 }
 0x424   :  { %3025 = vadd.xlane.f32.xlu1 %v3024_v32  ;;  %v12263_v32 = vsub.s32 5, %v12237_v42 }
 0x428   :  { %2962 = vadd.xlane.f32.xlu0 %v2961_v17  ;;  %3031 = vadd.xlane.f32.xlu1 %v3030_v56  ;;  %v3051_v17 = vsel %vm2939_vm1, %v12169_v62, 0.0  ;;  %v3057_v62 = vsel %vm2939_vm1, %v12173_v24, 0.0 }
 0x42c   :  { %2968 = vadd.xlane.f32.xlu0 %v2967_v0  ;;  %3037 = vadd.xlane.f32.xlu1 %v3036_v13  ;;  %v5250_v13 = vunpack.c.0.s8 %v5249_v11 }
 0x42e   :  { %v12319_v1 = vsub.s32 %v5250_v13, %v12237_v42 }
 0x430   :  { %2974 = vadd.xlane.f32.xlu0 %v2973_v21  ;;  %3043 = vadd.xlane.f32.xlu1 %v3042_v5 }
 0x434   :  { %2980 = vadd.xlane.f32.xlu0 %v2979_v34  ;;  %3049 = vadd.xlane.f32.xlu1 %v3048_v28 }
 0x438   :  { %2986 = vadd.xlane.f32.xlu0 %v2985_v50  ;;  %3055 = vadd.xlane.f32.xlu1 %v3054_v33 }
 0x43c   :  { %2992 = vadd.xlane.f32.xlu0 %v2991_v59  ;;  %3061 = vadd.xlane.f32.xlu1 %v3060_v36 }
 0x43f   :  { %v12227_v38 = vpop.xlane.xlu0 %2941 }
 0x440   :  { %2998 = vadd.xlane.f32.xlu0 %v2997_v39  ;;  %3067 = vadd.xlane.f32.xlu1 %v3066_v46  ;;  %v3199_v56 = vrot.slane %v12227_v38, %v12243_v18  ;;  %v3203_v0 = vrot.slane %v12227_v38, %v12246_v52  ;;  %v3207_v21 = vrot.slane %v12227_v38, %v12249_v22 }
 0x441   :  { %v3211_v5 = vrot.slane %v12227_v38, %v12255_v48  ;;  %v3215_v6 = vrot.slane %v12227_v38, %v12258_v7  ;;  %v3219_v28 = vrot.slane %v12227_v38, %v12263_v32  ;;  %v3223_v50 = vrot.slane %v12227_v38, %v12266_v43 }
 0x442   :  { %v3227_v33 = vrot.slane %v12227_v38, %v12269_v63 }
 0x443   :  { %v12234_v15 = vpop.xlane.xlu0 %2950  ;;  %v5246_v38 = vcombine.low %v3215_v6, %v3219_v28 }
 0x444   :  { %3004 = vadd.xlane.f32.xlu0 %v3003_v55  ;;  %3073 = vadd.xlane.f32.xlu1 %v3072_v30  ;;  %v2945_v34 = vpop.xlane.xlu1 %2944  ;;  %v3295_v12 = vrot.slane %v12234_v15, %v12243_v18  ;;  %v3299_v59 = vrot.slane %v12234_v15, %v12246_v52  ;;  %v3303_v36 = vrot.slane %v12234_v15, %v12249_v22 }
 0x445   :  { %v3307_v24 = vrot.slane %v12234_v15, %v12255_v48  ;;  %v3311_v31 = vrot.slane %v12234_v15, %v12258_v7  ;;  %v3315_v39 = vrot.slane %v12234_v15, %v12263_v32  ;;  %v3319_v46 = vrot.slane %v12234_v15, %v12266_v43 }
 0x446   :  { %v3323_v55 = vrot.slane %v12234_v15, %v12269_v63  ;;  %v3231_v30 = vrot.slane %v2945_v34, %v12243_v18  ;;  %v3235_v60 = vrot.slane %v2945_v34, %v12246_v52  ;;  %v3247_v35 = vrot.slane %v2945_v34, %v12258_v7 }
 0x447   :  { %v2868_v49 = vpop.permute.xlu0 %2867  ;;  %v5392_v15 = vcombine.low %v3303_v36, %v3307_v24 }
 0x448   :  { %3010 = vadd.xlane.f32.xlu0 %v3009_v57  ;;  %3079 = vadd.xlane.f32.xlu1 %v3078_v10  ;;  %v3120_v20 = vsel %vm2939_vm1, %v2868_v49, 0.0  ;;  %v3239_v57 = vrot.slane %v2945_v34, %v12249_v22  ;;  %v3243_v10 = vrot.slane %v2945_v34, %v12255_v48  ;;  %v5293_v27 = vcombine.low %v3231_v30, %v3235_v60  ;;  %v2870_v28 = vpop.permute.xlu1 %2869 }
 0x449   :  { %v3069_v49 = vsel %vm2939_vm1, %v12186_v37, 0.0  ;;  %v12345_v30 = vsel %vm2939_vm1, %v12217_v3, 0.0  ;;  %v12353_v60 = vsel %vm2939_vm1, %v12232_v2, 0.0 }
 0x44a   :  { %v5294_v11 = vcombine.low %v3239_v57, %v3243_v10  ;;  %v5303_v6 = vrot.slane %v5293_v27, %v12319_v1  ;;  %v12362_v57 = vsel %vm2939_vm1, %v2870_v28, 0.0 }
 0x44c   :  { %3016 = vadd.xlane.f32.xlu0 %v3015_v54  ;;  %3085 = vadd.xlane.f32.xlu1 %v3084_v53  ;;  %v3251_v54 = vrot.slane %v2945_v34, %v12263_v32  ;;  %v3255_v53 = vrot.slane %v2945_v34, %v12266_v43  ;;  %v5310_v37 = vrot.slane %v5294_v11, %v12319_v1  ;;  %v2874_v3 = vpop.permute.xlu1 %2873 }
 0x44e   :  { %v5325_v24 = vcombine.low %v5303_v6, %v5310_v37 }
 0x450   :  { %3022 = vadd.xlane.f32.xlu0 %v3021_v25  ;;  %3091 = vadd.xlane.f32.xlu1 %v3090_v44  ;;  %v3259_v25 = vrot.slane %v2945_v34, %v12269_v63  ;;  %v3063_v44 = vsel %vm2939_vm1, %v12178_v51, 0.0  ;;  %v5333_v2 = vrot.slane %v5325_v24, %v12319_v1 }
 0x454   :  { %3028 = vadd.xlane.f32.xlu0 %v3027_v23  ;;  %3097 = vadd.xlane.f32.xlu1 %v3096_v40  ;;  %v5244_v23 = vcombine.low %v3199_v56, %v3203_v0  ;;  %v5245_v40 = vcombine.low %v3207_v21, %v3211_v5  ;;  %v5268_v56 = vrot.slane %v5246_v38, %v12319_v1 }
 0x456   :  { %v5254_v51 = vrot.slane %v5244_v23, %v12319_v1 }
 0x458   :  { %3034 = vadd.xlane.f32.xlu0 %v3033_v16  ;;  %3103 = vadd.xlane.f32.xlu1 %v3102_v19  ;;  %v5247_v16 = vcombine.low %v3223_v50, %v3227_v33  ;;  %v5391_v19 = vcombine.low %v3295_v12, %v3299_v59  ;;  %v3075_v50 = vsel %vm2939_vm1, %v12191_v29, 0.0  ;;  %v12349_v29 = vsel %vm2939_vm1, %v12225_v61, 0.0 }
 0x45a   :  { %v5275_v0 = vrot.slane %v5247_v16, %v12319_v1  ;;  %v5401_v13 = vrot.slane %v5391_v19, %v12319_v1 }
 0x45c   :  { %3040 = vadd.xlane.f32.xlu0 %v3039_v45  ;;  %3109 = vadd.xlane.f32.xlu1 %v3108_v26  ;;  %v5393_v45 = vcombine.low %v3311_v31, %v3315_v39  ;;  %v5394_v26 = vcombine.low %v3319_v46, %v3323_v55  ;;  %v5277_v12 = vcombine.low %v5268_v56, %v5275_v0  ;;  %v3081_v39 = vsel %vm2939_vm1, %v12199_v8, 0.0 }
 0x45d   :  { %v3087_v46 = vsel %vm2939_vm1, %v12204_v58, 0.0  ;;  %v3093_v55 = vsel %vm2939_vm1, %v12212_v9, 0.0  ;;  %v12357_v8 = vsel %vm2939_vm1, %v12260_v14, 0.0 }
 0x45e   :  { %v5415_v21 = vrot.slane %v5393_v45, %v12319_v1  ;;  %v5422_v5 = vrot.slane %v5394_v26, %v12319_v1  ;;  %v5291_v9 = vrot.slane %v5277_v12, %v12319_v1 }
 0x460   :  { %3046 = vadd.xlane.f32.xlu0 %v3045_v41  ;;  %3115 = vadd.xlane.f32.xlu1 %v3114_v47  ;;  %v5295_v41 = vcombine.low %v3247_v35, %v3251_v54  ;;  %v5296_v47 = vcombine.low %v3255_v53, %v3259_v25  ;;  %v5424_v36 = vcombine.low %v5415_v21, %v5422_v5 }
 0x462   :  { %v5317_v34 = vrot.slane %v5295_v41, %v12319_v1  ;;  %v5438_v35 = vrot.slane %v5424_v36, %v12319_v1 }
 0x464   :  { %3052 = vadd.xlane.f32.xlu0 %v3051_v17  ;;  %3121 = vadd.xlane.f32.xlu1 %v3120_v20  ;;  %v5261_v17 = vrot.slane %v5245_v40, %v12319_v1  ;;  %v5408_v20 = vrot.slane %v5392_v15, %v12319_v1  ;;  %v12379_v15 = vsel %vm2939_vm1, %v2874_v3, 0.0 }
 0x466   :  { %v5276_v33 = vcombine.low %v5254_v51, %v5261_v17  ;;  %v5423_v59 = vcombine.low %v5401_v13, %v5408_v20 }
 0x468   :  { %3058 = vadd.xlane.f32.xlu0 %v3057_v62  ;;  %v5324_v62 = vrot.slane %v5296_v47, %v12319_v1  ;;  %v5284_v58 = vrot.slane %v5276_v33, %v12319_v1  ;;  %v5431_v61 = vrot.slane %v5423_v59, %v12319_v1 }
 0x46a   :  { %v5326_v31 = vcombine.low %v5317_v34, %v5324_v62  ;;  %v12376_v19 = vcombine.low %v5284_v58, %v5291_v9  ;;  %v12381_v11 = vcombine.low %v5431_v61, %v5438_v35 }
 0x46c   :  { %3064 = vadd.xlane.f32.xlu0 %v3063_v44  ;;  %v5340_v54 = vrot.slane %v5326_v31, %v12319_v1 }
 0x470   :  { %3070 = vadd.xlane.f32.xlu0 %v3069_v49  ;;  %v12383_v49 = vcombine.low %v5333_v2, %v5340_v54 }
 0x474   :  { %3076 = vadd.xlane.f32.xlu0 %v3075_v50 }
 0x478   :  { %3082 = vadd.xlane.f32.xlu0 %v3081_v39  ;;  %v2948_v10 = vpop.xlane.xlu0 %2947 }
 0x479   :  { %v3263_v14 = vrot.slane %v2948_v10, %v12243_v18  ;;  %v3267_v53 = vrot.slane %v2948_v10, %v12246_v52  ;;  %v3271_v25 = vrot.slane %v2948_v10, %v12249_v22  ;;  %v3275_v44 = vrot.slane %v2948_v10, %v12255_v48 }
 0x47a   :  { %v3279_v23 = vrot.slane %v2948_v10, %v12258_v7  ;;  %v3283_v40 = vrot.slane %v2948_v10, %v12263_v32  ;;  %v3287_v38 = vrot.slane %v2948_v10, %v12266_v43  ;;  %v3291_v16 = vrot.slane %v2948_v10, %v12269_v63 }
 0x47b   :  { %v5342_v45 = vcombine.low %v3263_v14, %v3267_v53  ;;  %v5343_v26 = vcombine.low %v3271_v25, %v3275_v44 }
 0x47c   :  { %3088 = vadd.xlane.f32.xlu0 %v3087_v46  ;;  %v2957_v27 = vpop.xlane.xlu0 %2956  ;;  %v5344_v41 = vcombine.low %v3279_v23, %v3283_v40  ;;  %v5345_v47 = vcombine.low %v3287_v38, %v3291_v16 }
 0x47d   :  { %v2954_v51 = vpop.xlane.xlu1 %2953  ;;  %v5352_v17 = vrot.slane %v5342_v45, %v12319_v1  ;;  %v5359_v56 = vrot.slane %v5343_v26, %v12319_v1  ;;  %v3359_v0 = vrot.slane %v2957_v27, %v12243_v18  ;;  %v3363_v13 = vrot.slane %v2957_v27, %v12246_v52 }
 0x47e   :  { %v5366_v20 = vrot.slane %v5344_v41, %v12319_v1  ;;  %v5373_v21 = vrot.slane %v5345_v47, %v12319_v1  ;;  %v3367_v5 = vrot.slane %v2957_v27, %v12249_v22  ;;  %v3371_v6 = vrot.slane %v2957_v27, %v12255_v48 }
 0x47f   :  { %v5374_v37 = vcombine.low %v5352_v17, %v5359_v56  ;;  %v3375_v34 = vrot.slane %v2957_v27, %v12258_v7  ;;  %v3379_v62 = vrot.slane %v2957_v27, %v12263_v32  ;;  %v3383_v28 = vrot.slane %v2957_v27, %v12266_v43 }
 0x480   :  { %3094 = vadd.xlane.f32.xlu0 %v3093_v55  ;;  %v2872_v50 = vpop.permute.xlu0 %2871  ;;  %v5375_v33 = vcombine.low %v5366_v20, %v5373_v21  ;;  %v3387_v12 = vrot.slane %v2957_v27, %v12269_v63  ;;  %v5489_v59 = vcombine.low %v3359_v0, %v3363_v13  ;;  %v5490_v36 = vcombine.low %v3367_v5, %v3371_v6 }
 0x481   :  { %v12397_v24 = vpop.xlane.xlu1 %2959  ;;  %v3126_v31 = vsel %vm2939_vm1, %v2872_v50, 0.0  ;;  %v5382_v39 = vrot.slane %v5374_v37, %v12319_v1  ;;  %v5491_v46 = vcombine.low %v3375_v34, %v3379_v62  ;;  %v3327_v58 = vrot.slane %v2954_v51, %v12243_v18 }
 0x482   :  { %3127 = vadd.xlane.f32.xlu1 %v3126_v31  ;;  %v5389_v9 = vrot.slane %v5375_v33, %v12319_v1  ;;  %v5492_v3 = vcombine.low %v3383_v28, %v3387_v12  ;;  %v5499_v55 = vrot.slane %v5489_v59, %v12319_v1  ;;  %v5506_v10 = vrot.slane %v5490_v36, %v12319_v1 }
 0x483   :  { %v5513_v61 = vrot.slane %v5491_v46, %v12319_v1  ;;  %v3331_v35 = vrot.slane %v2954_v51, %v12246_v52  ;;  %v3335_v2 = vrot.slane %v2954_v51, %v12249_v22  ;;  %v3339_v54 = vrot.slane %v2954_v51, %v12255_v48 }
 0x484   :  { %3100 = vadd.xlane.f32.xlu0 %v12345_v30  ;;  %v12410_v14 = vcombine.low %v5382_v39, %v5389_v9  ;;  %v5520_v53 = vrot.slane %v5492_v3, %v12319_v1  ;;  %v5521_v25 = vcombine.low %v5499_v55, %v5506_v10  ;;  %v3343_v44 = vrot.slane %v2954_v51, %v12258_v7 }
 0x485   :  { %v12414_v23 = vpop.xlane.xlu1 %2965  ;;  %v3347_v40 = vrot.slane %v2954_v51, %v12263_v32  ;;  %v3351_v38 = vrot.slane %v2954_v51, %v12266_v43  ;;  %v3355_v16 = vrot.slane %v2954_v51, %v12269_v63  ;;  %v5440_v45 = vcombine.low %v3327_v58, %v3331_v35 }
 0x486   :  { %v5522_v26 = vcombine.low %v5513_v61, %v5520_v53  ;;  %v5529_v27 = vrot.slane %v5521_v25, %v12319_v1  ;;  %v5441_v30 = vcombine.low %v3335_v2, %v3339_v54  ;;  %v3391_v41 = vrot.slane %v12397_v24, %v12243_v18 }
 0x487   :  { %v5442_v47 = vcombine.low %v3343_v44, %v3347_v40  ;;  %v5443_v17 = vcombine.low %v3351_v38, %v3355_v16  ;;  %v5450_v56 = vrot.slane %v5440_v45, %v12319_v1  ;;  %v3395_v0 = vrot.slane %v12397_v24, %v12246_v52 }
 0x488   :  { %3106 = vadd.xlane.f32.xlu0 %v12349_v29  ;;  %v5536_v13 = vrot.slane %v5522_v26, %v12319_v1  ;;  %v5457_v51 = vrot.slane %v5441_v30, %v12319_v1  ;;  %v3399_v20 = vrot.slane %v12397_v24, %v12249_v22  ;;  %v3403_v21 = vrot.slane %v12397_v24, %v12255_v48 }
 0x489   :  { %v2972_v5 = vpop.xlane.xlu1 %2971  ;;  %v5464_v6 = vrot.slane %v5442_v47, %v12319_v1  ;;  %v5471_v37 = vrot.slane %v5443_v17, %v12319_v1  ;;  %v3407_v34 = vrot.slane %v12397_v24, %v12258_v7  ;;  %v3411_v29 = vrot.slane %v12397_v24, %v12263_v32 }
 0x48a   :  { %v12438_v62 = vcombine.low %v5529_v27, %v5536_v13  ;;  %v5472_v28 = vcombine.low %v5450_v56, %v5457_v51  ;;  %v3519_v50 = vrot.slane %v2972_v5, %v12243_v18  ;;  %v3523_v33 = vrot.slane %v2972_v5, %v12246_v52 }
 0x48b   :  { %v5473_v12 = vcombine.low %v5464_v6, %v5471_v37  ;;  %v3527_v59 = vrot.slane %v2972_v5, %v12249_v22  ;;  %v3531_v36 = vrot.slane %v2972_v5, %v12255_v48  ;;  %v3535_v31 = vrot.slane %v2972_v5, %v12258_v7 }
 0x48c   :  { %3112 = vadd.xlane.f32.xlu0 %v12353_v60  ;;  %v5480_v39 = vrot.slane %v5472_v28, %v12319_v1  ;;  %v3539_v46 = vrot.slane %v2972_v5, %v12263_v32  ;;  %v3543_v58 = vrot.slane %v2972_v5, %v12266_v43  ;;  %v3547_v9 = vrot.slane %v2972_v5, %v12269_v63 }
 0x48d   :  { %v2978_v3 = vpop.xlane.xlu1 %2977  ;;  %v5487_v55 = vrot.slane %v5473_v12, %v12319_v1  ;;  %v5734_v10 = vcombine.low %v3519_v50, %v3523_v33  ;;  %v5735_v61 = vcombine.low %v3527_v59, %v3531_v36  ;;  %v3415_v35 = vrot.slane %v12397_v24, %v12266_v43 }
 0x48e   :  { %v5736_v2 = vcombine.low %v3535_v31, %v3539_v46  ;;  %v5737_v54 = vcombine.low %v3543_v58, %v3547_v9  ;;  %v3583_v60 = vrot.slane %v2978_v3, %v12243_v18  ;;  %v3587_v53 = vrot.slane %v2978_v3, %v12246_v52 }
 0x48f   :  { %v12455_v25 = vcombine.low %v5480_v39, %v5487_v55  ;;  %v5744_v44 = vrot.slane %v5734_v10, %v12319_v1  ;;  %v5751_v40 = vrot.slane %v5735_v61, %v12319_v1  ;;  %v3591_v38 = vrot.slane %v2978_v3, %v12249_v22 }
 0x490   :  { %3118 = vadd.xlane.f32.xlu0 %v12357_v8  ;;  %v5758_v16 = vrot.slane %v5736_v2, %v12319_v1  ;;  %v5765_v45 = vrot.slane %v5737_v54, %v12319_v1  ;;  %v3595_v26 = vrot.slane %v2978_v3, %v12255_v48  ;;  %v3599_v27 = vrot.slane %v2978_v3, %v12258_v7 }
 0x491   :  { %v2984_v30 = vpop.xlane.xlu1 %2983  ;;  %v5766_v47 = vcombine.low %v5744_v44, %v5751_v40  ;;  %v3603_v17 = vrot.slane %v2978_v3, %v12263_v32  ;;  %v3607_v56 = vrot.slane %v2978_v3, %v12266_v43  ;;  %v3611_v13 = vrot.slane %v2978_v3, %v12269_v63 }
 0x492   :  { %v5767_v51 = vcombine.low %v5758_v16, %v5765_v45  ;;  %v5832_v5 = vcombine.low %v3583_v60, %v3587_v53  ;;  %v5833_v6 = vcombine.low %v3591_v38, %v3595_v26  ;;  %v3647_v8 = vrot.slane %v2984_v30, %v12243_v18 }
 0x493   :  { %8381 = vperm.xlu1 %9517, %v12376_v19   ;;  %v5774_v37 = vrot.slane %v5766_v47, %v12319_v1  ;;  %v5834_v28 = vcombine.low %v3599_v27, %v3603_v17  ;;  %v5835_v50 = vcombine.low %v3607_v56, %v3611_v13  ;;  %v3651_v33 = vrot.slane %v2984_v30, %v12246_v52 }
 0x494   :  { %3124 = vadd.xlane.f32.xlu0 %v12362_v57  ;;  %v5781_v12 = vrot.slane %v5767_v51, %v12319_v1  ;;  %v5842_v59 = vrot.slane %v5832_v5, %v12319_v1  ;;  %v5849_v36 = vrot.slane %v5833_v6, %v12319_v1  ;;  %v3655_v31 = vrot.slane %v2984_v30, %v12249_v22 }
 0x495   :  { %v2990_v39 = vpop.xlane.xlu1 %2989  ;;  %v5856_v46 = vrot.slane %v5834_v28, %v12319_v1  ;;  %v5863_v19 = vrot.slane %v5835_v50, %v12319_v1  ;;  %v3659_v58 = vrot.slane %v2984_v30, %v12255_v48  ;;  %v3663_v9 = vrot.slane %v2984_v30, %v12258_v7 }
 0x496   :  { %v12481_v3 = vcombine.low %v5774_v37, %v5781_v12  ;;  %v5864_v57 = vcombine.low %v5842_v59, %v5849_v36  ;;  %v3667_v55 = vrot.slane %v2984_v30, %v12263_v32  ;;  %v3671_v10 = vrot.slane %v2984_v30, %v12266_v43 }
 0x497   :  { %8390 = vperm.xlu1 %9517, %v12381_v11   ;;  %v5865_v61 = vcombine.low %v5856_v46, %v5863_v19  ;;  %v3675_v2 = vrot.slane %v2984_v30, %v12269_v63  ;;  %v5930_v54 = vcombine.low %v3647_v8, %v3651_v33  ;;  %v5931_v60 = vcombine.low %v3655_v31, %v3659_v58 }
 0x498   :  { %3130 = vadd.xlane.f32.xlu0 %v12379_v15  ;;  %v5872_v53 = vrot.slane %v5864_v57, %v12319_v1  ;;  %v5932_v44 = vcombine.low %v3663_v9, %v3667_v55  ;;  %v3711_v40 = vrot.slane %v2990_v39, %v12243_v18  ;;  %v3715_v38 = vrot.slane %v2990_v39, %v12246_v52 }
 0x499   :  { %v5879_v16 = vrot.slane %v5865_v61, %v12319_v1  ;;  %v5933_v45 = vcombine.low %v3671_v10, %v3675_v2  ;;  %v5940_v26 = vrot.slane %v5930_v54, %v12319_v1  ;;  %v5947_v11 = vrot.slane %v5931_v60, %v12319_v1  ;;  %v2996_v27 = vpop.xlane.xlu1 %2995 }
 0x49a   :  { %v5954_v30 = vrot.slane %v5932_v44, %v12319_v1  ;;  %v3719_v47 = vrot.slane %v2990_v39, %v12249_v22  ;;  %v3723_v15 = vrot.slane %v2990_v39, %v12255_v48  ;;  %v3727_v17 = vrot.slane %v2990_v39, %v12258_v7 }
 0x49b   :  { %8387 = vperm.xlu1 %9517, %v12410_v14   ;;  %v12499_v56 = vcombine.low %v5872_v53, %v5879_v16  ;;  %v5961_v13 = vrot.slane %v5933_v45, %v12319_v1  ;;  %v5962_v51 = vcombine.low %v5940_v26, %v5947_v11  ;;  %v3731_v5 = vrot.slane %v2990_v39, %v12263_v32 }
 0x49c   :  { %v3735_v6 = vrot.slane %v2990_v39, %v12266_v43  ;;  %v3739_v8 = vrot.slane %v2990_v39, %v12269_v63  ;;  %v6028_v37 = vcombine.low %v3711_v40, %v3715_v38  ;;  %v6029_v28 = vcombine.low %v3719_v47, %v3723_v15 }
 0x49d   :  { %v5963_v50 = vcombine.low %v5954_v30, %v5961_v13  ;;  %v5970_v33 = vrot.slane %v5962_v51, %v12319_v1  ;;  %v6030_v12 = vcombine.low %v3727_v17, %v3731_v5  ;;  %v3775_v59 = vrot.slane %v2996_v27, %v12243_v18  ;;  %v3002_v16 = vpop.xlane.xlu1 %3001 }
 0x49e   :  { %v6031_v14 = vcombine.low %v3735_v6, %v3739_v8  ;;  %v6038_v36 = vrot.slane %v6028_v37, %v12319_v1  ;;  %v6045_v31 = vrot.slane %v6029_v28, %v12319_v1  ;;  %v3779_v46 = vrot.slane %v2996_v27, %v12246_v52 }
 0x49f   :  { %8396 = vperm.xlu1 %9517, %v12438_v62   ;;  %v5977_v19 = vrot.slane %v5963_v50, %v12319_v1  ;;  %v6052_v39 = vrot.slane %v6030_v12, %v12319_v1  ;;  %v3783_v58 = vrot.slane %v2996_v27, %v12249_v22  ;;  %v3787_v9 = vrot.slane %v2996_v27, %v12255_v48 }
 0x4a0   :  { %v6059_v57 = vrot.slane %v6031_v14, %v12319_v1  ;;  %v6060_v55 = vcombine.low %v6038_v36, %v6045_v31  ;;  %v3791_v10 = vrot.slane %v2996_v27, %v12258_v7  ;;  %v3795_v61 = vrot.slane %v2996_v27, %v12263_v32 }
 0x4a1   :  { %v12518_v2 = vcombine.low %v5970_v33, %v5977_v19  ;;  %v3799_v54 = vrot.slane %v2996_v27, %v12266_v43  ;;  %v3803_v62 = vrot.slane %v2996_v27, %v12269_v63  ;;  %v6126_v60 = vcombine.low %v3775_v59, %v3779_v46  ;;  %v3008_v50 = vpop.xlane.xlu1 %3007 }
 0x4a2   :  { %v6061_v53 = vcombine.low %v6052_v39, %v6059_v57  ;;  %v6068_v44 = vrot.slane %v6060_v55, %v12319_v1  ;;  %v6127_v40 = vcombine.low %v3783_v58, %v3787_v9  ;;  %v6128_v38 = vcombine.low %v3791_v10, %v3795_v61 }
 0x4a3   :  { %8393 = vperm.xlu1 %9517, %v12455_v25   ;;  %v6129_v45 = vcombine.low %v3799_v54, %v3803_v62  ;;  %v6136_v26 = vrot.slane %v6126_v60, %v12319_v1  ;;  %v3419_v11 = vrot.slane %v12397_v24, %v12269_v63  ;;  %v5538_v27 = vcombine.low %v3391_v41, %v3395_v0 }
 0x4a4   :  { %v6075_v30 = vrot.slane %v6061_v53, %v12319_v1  ;;  %v6143_v47 = vrot.slane %v6127_v40, %v12319_v1  ;;  %v6150_v15 = vrot.slane %v6128_v38, %v12319_v1  ;;  %v5539_v25 = vcombine.low %v3399_v20, %v3403_v21 }
 0x4a5   :  { %v6157_v17 = vrot.slane %v6129_v45, %v12319_v1  ;;  %v5540_v41 = vcombine.low %v3407_v34, %v3411_v29  ;;  %v5541_v0 = vcombine.low %v3415_v35, %v3419_v11  ;;  %v5548_v13 = vrot.slane %v5538_v27, %v12319_v1 }
 0x4a6   :  { %v12553_v51 = vcombine.low %v6068_v44, %v6075_v30  ;;  %v6158_v5 = vcombine.low %v6136_v26, %v6143_v47  ;;  %v5555_v20 = vrot.slane %v5539_v25, %v12319_v1  ;;  %v3839_v21 = vrot.slane %v3002_v16, %v12243_v18 }
 0x4a7   :  { %v6159_v6 = vcombine.low %v6150_v15, %v6157_v17  ;;  %v5562_v8 = vrot.slane %v5540_v41, %v12319_v1  ;;  %v5569_v37 = vrot.slane %v5541_v0, %v12319_v1  ;;  %v3843_v34 = vrot.slane %v3002_v16, %v12246_v52 }
 0x4a8   :  { %v6166_v29 = vrot.slane %v6158_v5, %v12319_v1  ;;  %v5570_v24 = vcombine.low %v5548_v13, %v5555_v20  ;;  %v3847_v35 = vrot.slane %v3002_v16, %v12249_v22  ;;  %v3851_v28 = vrot.slane %v3002_v16, %v12255_v48 }
 0x4a9   :  { %v6173_v33 = vrot.slane %v6159_v6, %v12319_v1  ;;  %v5571_v12 = vcombine.low %v5562_v8, %v5569_v37  ;;  %v3855_v59 = vrot.slane %v3002_v16, %v12258_v7  ;;  %v3859_v14 = vrot.slane %v3002_v16, %v12263_v32 }
 0x4aa   :  { %v5578_v36 = vrot.slane %v5570_v24, %v12319_v1  ;;  %v3863_v31 = vrot.slane %v3002_v16, %v12266_v43  ;;  %v3867_v46 = vrot.slane %v3002_v16, %v12269_v63  ;;  %v6224_v19 = vcombine.low %v3839_v21, %v3843_v34 }
 0x4ab   :  { %v12569_v39 = vcombine.low %v6166_v29, %v6173_v33  ;;  %v5585_v58 = vrot.slane %v5571_v12, %v12319_v1  ;;  %v6225_v9 = vcombine.low %v3847_v35, %v3851_v28  ;;  %v6226_v57 = vcombine.low %v3855_v59, %v3859_v14 }
 0x4ac   :  { %v6227_v55 = vcombine.low %v3863_v31, %v3867_v46  ;;  %v6234_v10 = vrot.slane %v6224_v19, %v12319_v1  ;;  %v3903_v61 = vrot.slane %v3008_v50, %v12243_v18  ;;  %v3907_v54 = vrot.slane %v3008_v50, %v12246_v52 }
 0x4ad   :  { %v12575_v62 = vcombine.low %v5578_v36, %v5585_v58  ;;  %v6241_v60 = vrot.slane %v6225_v9, %v12319_v1  ;;  %v6248_v53 = vrot.slane %v6226_v57, %v12319_v1  ;;  %v3911_v44 = vrot.slane %v3008_v50, %v12249_v22 }
 0x4ae   :  { %8384 = vperm.xlu0 %9516, %v12383_v49   ;;  %v6255_v40 = vrot.slane %v6227_v55, %v12319_v1  ;;  %v3915_v38 = vrot.slane %v3008_v50, %v12255_v48  ;;  %v3919_v16 = vrot.slane %v3008_v50, %v12258_v7  ;;  %v3923_v45 = vrot.slane %v3008_v50, %v12263_v32 }
 0x4af   :  { %v6256_v26 = vcombine.low %v6234_v10, %v6241_v60  ;;  %v3927_v11 = vrot.slane %v3008_v50, %v12266_v43  ;;  %v3931_v27 = vrot.slane %v3008_v50, %v12269_v63  ;;  %v6322_v30 = vcombine.low %v3903_v61, %v3907_v54 }
 0x4b0   :  { %v6257_v47 = vcombine.low %v6248_v53, %v6255_v40  ;;  %v6323_v15 = vcombine.low %v3911_v44, %v3915_v38  ;;  %v6324_v25 = vcombine.low %v3919_v16, %v3923_v45  ;;  %v3455_v49 = vrot.slane %v12414_v23, %v12243_v18 }
 0x4b1   :  { %v2963_v17 = vpop.xlane.xlu0 %2962  ;;  %v6264_v41 = vrot.slane %v6256_v26, %v12319_v1  ;;  %v6325_v0 = vcombine.low %v3927_v11, %v3931_v27  ;;  %v6332_v13 = vrot.slane %v6322_v30, %v12319_v1  ;;  %v3459_v5 = vrot.slane %v12414_v23, %v12246_v52 }
 0x4b2   :  { %8411 = vperm.xlu0 %9516, %v12481_v3   ;;  %v3423_v20 = vrot.slane %v2963_v17, %v12243_v18  ;;  %v3427_v21 = vrot.slane %v2963_v17, %v12246_v52  ;;  %v3431_v6 = vrot.slane %v2963_v17, %v12249_v22  ;;  %v3435_v8 = vrot.slane %v2963_v17, %v12255_v48 }
 0x4b3   :  { %v3439_v37 = vrot.slane %v2963_v17, %v12258_v7  ;;  %v3443_v34 = vrot.slane %v2963_v17, %v12263_v32  ;;  %v3447_v29 = vrot.slane %v2963_v17, %v12266_v43  ;;  %v3451_v24 = vrot.slane %v2963_v17, %v12269_v63 }
 0x4b4   :  { %v5587_v35 = vcombine.low %v3423_v20, %v3427_v21  ;;  %v5588_v28 = vcombine.low %v3431_v6, %v3435_v8  ;;  %v6271_v3 = vrot.slane %v6257_v47, %v12319_v1  ;;  %v6339_v50 = vrot.slane %v6323_v15, %v12319_v1 }
 0x4b5   :  { %v2969_v33 = vpop.xlane.xlu0 %2968  ;;  %v5589_v12 = vcombine.low %v3439_v37, %v3443_v34  ;;  %v5590_v59 = vcombine.low %v3447_v29, %v3451_v24  ;;  %v6346_v14 = vrot.slane %v6324_v25, %v12319_v1  ;;  %v6353_v36 = vrot.slane %v6325_v0, %v12319_v1  ;;  %v3014_v0 = vpop.xlane.xlu1 %3013 }
 0x4b6   :  { %8417 = vperm.xlu0 %9516, %v12499_v56   ;;  %v5597_v31 = vrot.slane %v5587_v35, %v12319_v1  ;;  %v5604_v46 = vrot.slane %v5588_v28, %v12319_v1  ;;  %v12609_v19 = vcombine.low %v6264_v41, %v6271_v3  ;;  %v3487_v58 = vrot.slane %v2969_v33, %v12243_v18 }
 0x4b7   :  { %v5611_v9 = vrot.slane %v5589_v12, %v12319_v1  ;;  %v5618_v57 = vrot.slane %v5590_v59, %v12319_v1  ;;  %v3491_v55 = vrot.slane %v2969_v33, %v12246_v52  ;;  %v3495_v10 = vrot.slane %v2969_v33, %v12249_v22 }
 0x4b8   :  { %v5619_v61 = vcombine.low %v5597_v31, %v5604_v46  ;;  %v3499_v54 = vrot.slane %v2969_v33, %v12255_v48  ;;  %v3503_v56 = vrot.slane %v2969_v33, %v12258_v7  ;;  %v3507_v60 = vrot.slane %v2969_v33, %v12263_v32 }
 0x4b9   :  { %v5620_v53 = vcombine.low %v5611_v9, %v5618_v57  ;;  %v3511_v44 = vrot.slane %v2969_v33, %v12266_v43  ;;  %v3515_v40 = vrot.slane %v2969_v33, %v12269_v63  ;;  %v5685_v38 = vcombine.low %v3487_v58, %v3491_v55  ;;  %v2975_v46 = vpop.xlane.xlu0 %2974 }
 0x4ba   :  { %8423 = vperm.xlu0 %9516, %v12518_v2   ;;  %v5627_v16 = vrot.slane %v5619_v61, %v12319_v1  ;;  %v5686_v45 = vcombine.low %v3495_v10, %v3499_v54  ;;  %v5687_v26 = vcombine.low %v3503_v56, %v3507_v60  ;;  %v6354_v11 = vcombine.low %v6332_v13, %v6339_v50 }
 0x4bb   :  { %v5634_v27 = vrot.slane %v5620_v53, %v12319_v1  ;;  %v5688_v30 = vcombine.low %v3511_v44, %v3515_v40  ;;  %v5695_v47 = vrot.slane %v5685_v38, %v12319_v1  ;;  %v6355_v15 = vcombine.low %v6346_v14, %v6353_v36 }
 0x4bc   :  { %v5702_v25 = vrot.slane %v5686_v45, %v12319_v1  ;;  %v5709_v17 = vrot.slane %v5687_v26, %v12319_v1  ;;  %v6362_v41 = vrot.slane %v6354_v11, %v12319_v1  ;;  %v3463_v2 = vrot.slane %v12414_v23, %v12249_v22 }
 0x4bd   :  { %v5635_v20 = vcombine.low %v5627_v16, %v5634_v27  ;;  %v5716_v21 = vrot.slane %v5688_v30, %v12319_v1  ;;  %v6369_v13 = vrot.slane %v6355_v15, %v12319_v1  ;;  %v3467_v6 = vrot.slane %v12414_v23, %v12255_v48 }
 0x4be   :  { %8429 = vperm.xlu0 %9516, %v12553_v51   ;;  %v5717_v8 = vcombine.low %v5695_v47, %v5702_v25  ;;  %v3471_v37 = vrot.slane %v12414_v23, %v12258_v7  ;;  %v3475_v34 = vrot.slane %v12414_v23, %v12263_v32  ;;  %v3479_v29 = vrot.slane %v12414_v23, %v12266_v43  ;;  %v3020_v47 = vpop.xlane.xlu1 %3019 }
 0x4bf   :  { %8402 = vperm.xlu1 %9517, %v5635_v20   ;;  %v5718_v24 = vcombine.low %v5709_v17, %v5716_v21  ;;  %v6370_v35 = vcombine.low %v6362_v41, %v6369_v13  ;;  %v3483_v28 = vrot.slane %v12414_v23, %v12269_v63  ;;  %v5636_v51 = vcombine.low %v3455_v49, %v3459_v5 }
 0x4c0   :  { %v5725_v3 = vrot.slane %v5717_v8, %v12319_v1  ;;  %v5637_v50 = vcombine.low %v3463_v2, %v3467_v6  ;;  %v5638_v33 = vcombine.low %v3471_v37, %v3475_v34  ;;  %v3967_v12 = vrot.slane %v3014_v0, %v12243_v18 }
 0x4c1   :  { %v5732_v59 = vrot.slane %v5718_v24, %v12319_v1  ;;  %v5639_v14 = vcombine.low %v3479_v29, %v3483_v28  ;;  %v5646_v36 = vrot.slane %v5636_v51, %v12319_v1  ;;  %v3971_v31 = vrot.slane %v3014_v0, %v12246_v52 }
 0x4c2   :  { %8435 = vperm.xlu0 %9516, %v12569_v39   ;;  %v5653_v58 = vrot.slane %v5637_v50, %v12319_v1  ;;  %v5660_v23 = vrot.slane %v5638_v33, %v12319_v1  ;;  %v3975_v49 = vrot.slane %v3014_v0, %v12249_v22  ;;  %v3979_v5 = vrot.slane %v3014_v0, %v12255_v48  ;;  %v2981_v50 = vpop.xlane.xlu0 %2980 }
 0x4c3   :  { %8399 = vperm.xlu1 %9517, %v12575_v62   ;;  %v5733_v9 = vcombine.low %v5725_v3, %v5732_v59  ;;  %v5667_v57 = vrot.slane %v5639_v14, %v12319_v1  ;;  %v3983_v55 = vrot.slane %v3014_v0, %v12258_v7  ;;  %v3987_v10 = vrot.slane %v3014_v0, %v12263_v32 }
 0x4c4   :  { %v5668_v61 = vcombine.low %v5646_v36, %v5653_v58  ;;  %v3991_v39 = vrot.slane %v3014_v0, %v12266_v43  ;;  %v3995_v54 = vrot.slane %v3014_v0, %v12269_v63  ;;  %v6420_v56 = vcombine.low %v3967_v12, %v3971_v31 }
 0x4c5   :  { %v5669_v60 = vcombine.low %v5660_v23, %v5667_v57  ;;  %v6421_v53 = vcombine.low %v3975_v49, %v3979_v5  ;;  %v6422_v44 = vcombine.low %v3983_v55, %v3987_v10  ;;  %v3551_v40 = vrot.slane %v2975_v46, %v12243_v18 }
 0x4c6   :  { %8441 = vperm.xlu0 %9516, %v12609_v19   ;;  %v5676_v62 = vrot.slane %v5668_v61, %v12319_v1  ;;  %v6423_v38 = vcombine.low %v3991_v39, %v3995_v54  ;;  %v6430_v16 = vrot.slane %v6420_v56, %v12319_v1  ;;  %v3555_v45 = vrot.slane %v2975_v46, %v12246_v52 }
 0x4c7   :  { %8408 = vperm.xlu1 %9517, %v5733_v9   ;;  %v5683_v26 = vrot.slane %v5669_v60, %v12319_v1  ;;  %v6437_v11 = vrot.slane %v6421_v53, %v12319_v1  ;;  %v6444_v27 = vrot.slane %v6422_v44, %v12319_v1  ;;  %v3559_v30 = vrot.slane %v2975_v46, %v12249_v22  ;;  %v3026_v53 = vpop.xlane.xlu1 %3025 }
 0x4c8   :  { %v6451_v15 = vrot.slane %v6423_v38, %v12319_v1  ;;  %v3563_v19 = vrot.slane %v2975_v46, %v12255_v48  ;;  %v3567_v25 = vrot.slane %v2975_v46, %v12258_v7  ;;  %v3571_v17 = vrot.slane %v2975_v46, %v12263_v32 }
 0x4c9   :  { %v5684_v41 = vcombine.low %v5676_v62, %v5683_v26  ;;  %v6452_v2 = vcombine.low %v6430_v16, %v6437_v11  ;;  %v3575_v0 = vrot.slane %v2975_v46, %v12266_v43  ;;  %v3579_v20 = vrot.slane %v2975_v46, %v12269_v63 }
 0x4ca   :  { %8447 = vperm.xlu0 %9516, %v6370_v35   ;;  %v6453_v21 = vcombine.low %v6444_v27, %v6451_v15  ;;  %v5783_v13 = vcombine.low %v3551_v40, %v3555_v45  ;;  %v5784_v6 = vcombine.low %v3559_v30, %v3563_v19  ;;  %v5785_v8 = vcombine.low %v3567_v25, %v3571_v17 }
 0x4cb   :  { %8405 = vperm.xlu1 %9517, %v5684_v41   ;;  %v6460_v37 = vrot.slane %v6452_v2, %v12319_v1  ;;  %v5786_v34 = vcombine.low %v3575_v0, %v3579_v20  ;;  %v4031_v29 = vrot.slane %v3020_v47, %v12243_v18  ;;  %v4035_v24 = vrot.slane %v3020_v47, %v12246_v52 }
 0x4cc   :  { %v6467_v28 = vrot.slane %v6453_v21, %v12319_v1  ;;  %v5793_v51 = vrot.slane %v5783_v13, %v12319_v1  ;;  %v5800_v3 = vrot.slane %v5784_v6, %v12319_v1  ;;  %v5807_v35 = vrot.slane %v5785_v8, %v12319_v1 }
 0x4cd   :  { %v5814_v33 = vrot.slane %v5786_v34, %v12319_v1  ;;  %v4039_v12 = vrot.slane %v3020_v47, %v12249_v22  ;;  %v4043_v59 = vrot.slane %v3020_v47, %v12255_v48  ;;  %v4047_v14 = vrot.slane %v3020_v47, %v12258_v7  ;;  %v2987_v34 = vpop.xlane.xlu0 %2986 }
 0x4ce   :  { %v6468_v36 = vcombine.low %v6460_v37, %v6467_v28  ;;  %v5815_v31 = vcombine.low %v5793_v51, %v5800_v3  ;;  %v4051_v46 = vrot.slane %v3020_v47, %v12263_v32  ;;  %v4055_v58 = vrot.slane %v3020_v47, %v12266_v43 }
 0x4cf   :  { %v5816_v23 = vcombine.low %v5807_v35, %v5814_v33  ;;  %v4059_v49 = vrot.slane %v3020_v47, %v12269_v63  ;;  %v6518_v5 = vcombine.low %v4031_v29, %v4035_v24  ;;  %v6519_v9 = vcombine.low %v4039_v12, %v4043_v59 }
 0x4d0   :  { %8453 = vperm.xlu0 %9516, %v6468_v36   ;;  %v5823_v57 = vrot.slane %v5815_v31, %v12319_v1  ;;  %v6520_v55 = vcombine.low %v4047_v14, %v4051_v46  ;;  %v3615_v10 = vrot.slane %v2981_v50, %v12243_v18  ;;  %v3619_v61 = vrot.slane %v2981_v50, %v12246_v52 }
 0x4d1   :  { %v5830_v39 = vrot.slane %v5816_v23, %v12319_v1  ;;  %v6521_v54 = vcombine.low %v4055_v58, %v4059_v49  ;;  %v6528_v56 = vrot.slane %v6518_v5, %v12319_v1  ;;  %v6535_v60 = vrot.slane %v6519_v9, %v12319_v1 }
 0x4d2   :  { %v6542_v44 = vrot.slane %v6520_v55, %v12319_v1  ;;  %v3623_v40 = vrot.slane %v2981_v50, %v12249_v22  ;;  %v3627_v62 = vrot.slane %v2981_v50, %v12255_v48  ;;  %v3631_v38 = vrot.slane %v2981_v50, %v12258_v7  ;;  %v3032_v55 = vpop.xlane.xlu1 %3031 }
 0x4d3   :  { %v5831_v16 = vcombine.low %v5823_v57, %v5830_v39  ;;  %v6549_v45 = vrot.slane %v6521_v54, %v12319_v1  ;;  %v6550_v26 = vcombine.low %v6528_v56, %v6535_v60  ;;  %v3635_v11 = vrot.slane %v2981_v50, %v12263_v32 }
 0x4d4   :  { %v3639_v27 = vrot.slane %v2981_v50, %v12266_v43  ;;  %v3643_v30 = vrot.slane %v2981_v50, %v12269_v63  ;;  %v5881_v47 = vcombine.low %v3615_v10, %v3619_v61  ;;  %v5882_v15 = vcombine.low %v3623_v40, %v3627_v62 }
 0x4d5   :  { %8414 = vperm.xlu1 %9517, %v5831_v16   ;;  %v6551_v19 = vcombine.low %v6542_v44, %v6549_v45  ;;  %v6558_v25 = vrot.slane %v6550_v26, %v12319_v1  ;;  %v5883_v17 = vcombine.low %v3631_v38, %v3635_v11  ;;  %v4095_v41 = vrot.slane %v3026_v53, %v12243_v18 }
 0x4d6   :  { %v5884_v2 = vcombine.low %v3639_v27, %v3643_v30  ;;  %v5891_v0 = vrot.slane %v5881_v47, %v12319_v1  ;;  %v5898_v20 = vrot.slane %v5882_v15, %v12319_v1  ;;  %v4099_v21 = vrot.slane %v3026_v53, %v12246_v52 }
 0x4d7   :  { %v6565_v13 = vrot.slane %v6551_v19, %v12319_v1  ;;  %v5905_v6 = vrot.slane %v5883_v17, %v12319_v1  ;;  %v4103_v8 = vrot.slane %v3026_v53, %v12249_v22  ;;  %v4107_v37 = vrot.slane %v3026_v53, %v12255_v48 }
 0x4d8   :  { %v5912_v29 = vrot.slane %v5884_v2, %v12319_v1  ;;  %v5913_v24 = vcombine.low %v5891_v0, %v5898_v20  ;;  %v4111_v28 = vrot.slane %v3026_v53, %v12258_v7  ;;  %v4115_v51 = vrot.slane %v3026_v53, %v12263_v32 }
 0x4d9   :  { %v6566_v3 = vcombine.low %v6558_v25, %v6565_v13  ;;  %v4119_v35 = vrot.slane %v3026_v53, %v12266_v43  ;;  %v4123_v50 = vrot.slane %v3026_v53, %v12269_v63  ;;  %v6616_v33 = vcombine.low %v4095_v41, %v4099_v21  ;;  %v2993_v25 = vpop.xlane.xlu0 %2992 }
 0x4da   :  { %v5914_v12 = vcombine.low %v5905_v6, %v5912_v29  ;;  %v5921_v59 = vrot.slane %v5913_v24, %v12319_v1  ;;  %v6617_v14 = vcombine.low %v4103_v8, %v4107_v37  ;;  %v6618_v36 = vcombine.low %v4111_v28, %v4115_v51 }
 0x4db   :  { %8459 = vperm.xlu0 %9516, %v6566_v3   ;;  %v6619_v31 = vcombine.low %v4119_v35, %v4123_v50  ;;  %v6626_v46 = vrot.slane %v6616_v33, %v12319_v1  ;;  %v3679_v58 = vrot.slane %v2987_v34, %v12243_v18  ;;  %v3683_v23 = vrot.slane %v2987_v34, %v12246_v52 }
 0x4dc   :  { %v5928_v49 = vrot.slane %v5914_v12, %v12319_v1  ;;  %v6633_v5 = vrot.slane %v6617_v14, %v12319_v1  ;;  %v6640_v9 = vrot.slane %v6618_v36, %v12319_v1  ;;  %v3687_v57 = vrot.slane %v2987_v34, %v12249_v22 }
 0x4dd   :  { %v6647_v10 = vrot.slane %v6619_v31, %v12319_v1  ;;  %v3691_v61 = vrot.slane %v2987_v34, %v12255_v48  ;;  %v3695_v39 = vrot.slane %v2987_v34, %v12258_v7  ;;  %v3699_v54 = vrot.slane %v2987_v34, %v12263_v32 }
 0x4de   :  { %v5929_v56 = vcombine.low %v5921_v59, %v5928_v49  ;;  %v6648_v60 = vcombine.low %v6626_v46, %v6633_v5  ;;  %v3703_v53 = vrot.slane %v2987_v34, %v12266_v43  ;;  %v3707_v44 = vrot.slane %v2987_v34, %v12269_v63  ;;  %v3038_v59 = vpop.xlane.xlu1 %3037 }
 0x4df   :  { %v6649_v40 = vcombine.low %v6640_v9, %v6647_v10  ;;  %v5979_v62 = vcombine.low %v3679_v58, %v3683_v23  ;;  %v5980_v38 = vcombine.low %v3687_v57, %v3691_v61  ;;  %v5981_v16 = vcombine.low %v3695_v39, %v3699_v54 }
 0x4e0   :  { %8420 = vperm.xlu1 %9517, %v5929_v56   ;;  %v6656_v45 = vrot.slane %v6648_v60, %v12319_v1  ;;  %v5982_v26 = vcombine.low %v3703_v53, %v3707_v44  ;;  %v4159_v11 = vrot.slane %v3032_v55, %v12243_v18  ;;  %v4163_v27 = vrot.slane %v3032_v55, %v12246_v52 }
 0x4e1   :  { %v6663_v30 = vrot.slane %v6649_v40, %v12319_v1  ;;  %v5989_v47 = vrot.slane %v5979_v62, %v12319_v1  ;;  %v5996_v15 = vrot.slane %v5980_v38, %v12319_v1  ;;  %v6003_v19 = vrot.slane %v5981_v16, %v12319_v1 }
 0x4e2   :  { %v6010_v17 = vrot.slane %v5982_v26, %v12319_v1  ;;  %v4167_v41 = vrot.slane %v3032_v55, %v12249_v22  ;;  %v4171_v2 = vrot.slane %v3032_v55, %v12255_v48  ;;  %v4175_v0 = vrot.slane %v3032_v55, %v12258_v7  ;;  %v2999_v26 = vpop.xlane.xlu0 %2998 }
 0x4e3   :  { %v6664_v20 = vcombine.low %v6656_v45, %v6663_v30  ;;  %v6011_v21 = vcombine.low %v5989_v47, %v5996_v15  ;;  %v4179_v13 = vrot.slane %v3032_v55, %v12263_v32  ;;  %v4183_v6 = vrot.slane %v3032_v55, %v12266_v43 }
 0x4e4   :  { %v6012_v8 = vcombine.low %v6003_v19, %v6010_v17  ;;  %v4187_v37 = vrot.slane %v3032_v55, %v12269_v63  ;;  %v6714_v34 = vcombine.low %v4159_v11, %v4163_v27  ;;  %v6715_v29 = vcombine.low %v4167_v41, %v4171_v2 }
 0x4e5   :  { %8465 = vperm.xlu0 %9516, %v6664_v20   ;;  %v6019_v24 = vrot.slane %v6011_v21, %v12319_v1  ;;  %v6716_v28 = vcombine.low %v4175_v0, %v4179_v13  ;;  %v3743_v51 = vrot.slane %v2993_v25, %v12243_v18  ;;  %v3747_v3 = vrot.slane %v2993_v25, %v12246_v52 }
 0x4e6   :  { %v6026_v35 = vrot.slane %v6012_v8, %v12319_v1  ;;  %v6717_v50 = vcombine.low %v4183_v6, %v4187_v37  ;;  %v6724_v33 = vrot.slane %v6714_v34, %v12319_v1  ;;  %v6731_v12 = vrot.slane %v6715_v29, %v12319_v1 }
 0x4e7   :  { %v6738_v14 = vrot.slane %v6716_v28, %v12319_v1  ;;  %v3751_v36 = vrot.slane %v2993_v25, %v12249_v22  ;;  %v3755_v31 = vrot.slane %v2993_v25, %v12255_v48  ;;  %v3759_v46 = vrot.slane %v2993_v25, %v12258_v7  ;;  %v3044_v28 = vpop.xlane.xlu1 %3043 }
 0x4e8   :  { %v6027_v58 = vcombine.low %v6019_v24, %v6026_v35  ;;  %v6745_v23 = vrot.slane %v6717_v50, %v12319_v1  ;;  %v6746_v49 = vcombine.low %v6724_v33, %v6731_v12  ;;  %v3763_v5 = vrot.slane %v2993_v25, %v12263_v32 }
 0x4e9   :  { %v3767_v9 = vrot.slane %v2993_v25, %v12266_v43  ;;  %v3771_v57 = vrot.slane %v2993_v25, %v12269_v63  ;;  %v6077_v55 = vcombine.low %v3743_v51, %v3747_v3  ;;  %v6078_v10 = vcombine.low %v3751_v36, %v3755_v31 }
 0x4ea   :  { %8426 = vperm.xlu1 %9517, %v6027_v58   ;;  %v6747_v61 = vcombine.low %v6738_v14, %v6745_v23  ;;  %v6754_v39 = vrot.slane %v6746_v49, %v12319_v1  ;;  %v6079_v54 = vcombine.low %v3759_v46, %v3763_v5  ;;  %v4223_v56 = vrot.slane %v3038_v59, %v12243_v18 }
 0x4eb   :  { %v6080_v60 = vcombine.low %v3767_v9, %v3771_v57  ;;  %v6087_v53 = vrot.slane %v6077_v55, %v12319_v1  ;;  %v6094_v44 = vrot.slane %v6078_v10, %v12319_v1  ;;  %v4227_v40 = vrot.slane %v3038_v59, %v12246_v52 }
 0x4ec   :  { %v6761_v62 = vrot.slane %v6747_v61, %v12319_v1  ;;  %v6101_v38 = vrot.slane %v6079_v54, %v12319_v1  ;;  %v4231_v16 = vrot.slane %v3038_v59, %v12249_v22  ;;  %v4235_v45 = vrot.slane %v3038_v59, %v12255_v48 }
 0x4ed   :  { %v6108_v11 = vrot.slane %v6080_v60, %v12319_v1  ;;  %v6109_v27 = vcombine.low %v6087_v53, %v6094_v44  ;;  %v4239_v30 = vrot.slane %v3038_v59, %v12258_v7  ;;  %v4243_v47 = vrot.slane %v3038_v59, %v12263_v32 }
 0x4ee   :  { %v6762_v15 = vcombine.low %v6754_v39, %v6761_v62  ;;  %v4247_v19 = vrot.slane %v3038_v59, %v12266_v43  ;;  %v4251_v25 = vrot.slane %v3038_v59, %v12269_v63  ;;  %v6812_v17 = vcombine.low %v4223_v56, %v4227_v40  ;;  %v3005_v39 = vpop.xlane.xlu0 %3004 }
 0x4ef   :  { %v6110_v41 = vcombine.low %v6101_v38, %v6108_v11  ;;  %v6117_v2 = vrot.slane %v6109_v27, %v12319_v1  ;;  %v6813_v0 = vcombine.low %v4231_v16, %v4235_v45  ;;  %v6814_v20 = vcombine.low %v4239_v30, %v4243_v47 }
 0x4f0   :  { %8471 = vperm.xlu0 %9516, %v6762_v15   ;;  %v6815_v21 = vcombine.low %v4247_v19, %v4251_v25  ;;  %v6822_v13 = vrot.slane %v6812_v17, %v12319_v1  ;;  %v3807_v6 = vrot.slane %v2999_v26, %v12243_v18  ;;  %v3811_v8 = vrot.slane %v2999_v26, %v12246_v52 }
 0x4f1   :  { %v6124_v37 = vrot.slane %v6110_v41, %v12319_v1  ;;  %v6829_v34 = vrot.slane %v6813_v0, %v12319_v1  ;;  %v6836_v29 = vrot.slane %v6814_v20, %v12319_v1  ;;  %v3815_v24 = vrot.slane %v2999_v26, %v12249_v22 }
 0x4f2   :  { %v6843_v51 = vrot.slane %v6815_v21, %v12319_v1  ;;  %v3819_v3 = vrot.slane %v2999_v26, %v12255_v48  ;;  %v3823_v35 = vrot.slane %v2999_v26, %v12258_v7  ;;  %v3827_v50 = vrot.slane %v2999_v26, %v12263_v32 }
 0x4f3   :  { %v6125_v33 = vcombine.low %v6117_v2, %v6124_v37  ;;  %v6844_v12 = vcombine.low %v6822_v13, %v6829_v34  ;;  %v3831_v59 = vrot.slane %v2999_v26, %v12266_v43  ;;  %v3835_v14 = vrot.slane %v2999_v26, %v12269_v63  ;;  %v3050_v2 = vpop.xlane.xlu1 %3049 }
 0x4f4   :  { %v6845_v36 = vcombine.low %v6836_v29, %v6843_v51  ;;  %v6175_v31 = vcombine.low %v3807_v6, %v3811_v8  ;;  %v6176_v46 = vcombine.low %v3815_v24, %v3819_v3  ;;  %v6177_v58 = vcombine.low %v3823_v35, %v3827_v50  ;;  %v3011_v3 = vpop.xlane.xlu0 %3010 }
 0x4f5   :  { %8432 = vperm.xlu1 %9517, %v6125_v33   ;;  %v6852_v23 = vrot.slane %v6844_v12, %v12319_v1  ;;  %v6178_v49 = vcombine.low %v3831_v59, %v3835_v14  ;;  %v4287_v5 = vrot.slane %v3044_v28, %v12243_v18  ;;  %v4291_v9 = vrot.slane %v3044_v28, %v12246_v52 }
 0x4f6   :  { %v6859_v57 = vrot.slane %v6845_v36, %v12319_v1  ;;  %v6185_v55 = vrot.slane %v6175_v31, %v12319_v1  ;;  %v6192_v10 = vrot.slane %v6176_v46, %v12319_v1  ;;  %v6199_v61 = vrot.slane %v6177_v58, %v12319_v1 }
 0x4f7   :  { %v6206_v54 = vrot.slane %v6178_v49, %v12319_v1  ;;  %v4295_v56 = vrot.slane %v3044_v28, %v12249_v22  ;;  %v4299_v60 = vrot.slane %v3044_v28, %v12255_v48  ;;  %v4303_v53 = vrot.slane %v3044_v28, %v12258_v7 }
 0x4f8   :  { %v6860_v44 = vcombine.low %v6852_v23, %v6859_v57  ;;  %v6207_v40 = vcombine.low %v6185_v55, %v6192_v10  ;;  %v4307_v62 = vrot.slane %v3044_v28, %v12263_v32  ;;  %v4311_v38 = vrot.slane %v3044_v28, %v12266_v43 }
 0x4f9   :  { %v6208_v16 = vcombine.low %v6199_v61, %v6206_v54  ;;  %v4315_v45 = vrot.slane %v3044_v28, %v12269_v63  ;;  %v6910_v26 = vcombine.low %v4287_v5, %v4291_v9  ;;  %v6911_v11 = vcombine.low %v4295_v56, %v4299_v60 }
 0x4fa   :  { %8477 = vperm.xlu0 %9516, %v6860_v44   ;;  %v6215_v27 = vrot.slane %v6207_v40, %v12319_v1  ;;  %v6912_v30 = vcombine.low %v4303_v53, %v4307_v62  ;;  %v3871_v47 = vrot.slane %v3005_v39, %v12243_v18  ;;  %v3875_v15 = vrot.slane %v3005_v39, %v12246_v52  ;;  %v12835_v40 = vpop.xlane.xlu0 %3016 }
 0x4fb   :  { %v6222_v19 = vrot.slane %v6208_v16, %v12319_v1  ;;  %v6913_v25 = vcombine.low %v4311_v38, %v4315_v45  ;;  %v6920_v17 = vrot.slane %v6910_v26, %v12319_v1  ;;  %v6927_v41 = vrot.slane %v6911_v11, %v12319_v1 }
 0x4fc   :  { %v6934_v0 = vrot.slane %v6912_v30, %v12319_v1  ;;  %v3879_v20 = vrot.slane %v3005_v39, %v12249_v22  ;;  %v3883_v21 = vrot.slane %v3005_v39, %v12255_v48  ;;  %v3887_v13 = vrot.slane %v3005_v39, %v12258_v7 }
 0x4fd   :  { %v6223_v6 = vcombine.low %v6215_v27, %v6222_v19  ;;  %v6941_v8 = vrot.slane %v6913_v25, %v12319_v1  ;;  %v6942_v37 = vcombine.low %v6920_v17, %v6927_v41  ;;  %v3891_v34 = vrot.slane %v3005_v39, %v12263_v32 }
 0x4fe   :  { %v3895_v29 = vrot.slane %v3005_v39, %v12266_v43  ;;  %v3899_v24 = vrot.slane %v3005_v39, %v12269_v63  ;;  %v6273_v28 = vcombine.low %v3871_v47, %v3875_v15  ;;  %v6274_v51 = vcombine.low %v3879_v20, %v3883_v21  ;;  %v3056_v47 = vpop.xlane.xlu1 %3055 }
 0x4ff   :  { %8438 = vperm.xlu1 %9517, %v6223_v6   ;;  %v6943_v35 = vcombine.low %v6934_v0, %v6941_v8  ;;  %v6950_v50 = vrot.slane %v6942_v37, %v12319_v1  ;;  %v6275_v33 = vcombine.low %v3887_v13, %v3891_v34  ;;  %v4351_v12 = vrot.slane %v3050_v2, %v12243_v18 }
 0x500   :  { %v6276_v59 = vcombine.low %v3895_v29, %v3899_v24  ;;  %v6283_v14 = vrot.slane %v6273_v28, %v12319_v1  ;;  %v6290_v36 = vrot.slane %v6274_v51, %v12319_v1  ;;  %v4355_v31 = vrot.slane %v3050_v2, %v12246_v52  ;;  %v12853_v28 = vpop.xlane.xlu0 %3022 }
 0x501   :  { %v6957_v46 = vrot.slane %v6943_v35, %v12319_v1  ;;  %v6297_v58 = vrot.slane %v6275_v33, %v12319_v1  ;;  %v4359_v23 = vrot.slane %v3050_v2, %v12249_v22  ;;  %v4363_v49 = vrot.slane %v3050_v2, %v12255_v48 }
 0x502   :  { %v6304_v5 = vrot.slane %v6276_v59, %v12319_v1  ;;  %v6305_v9 = vcombine.low %v6283_v14, %v6290_v36  ;;  %v4367_v57 = vrot.slane %v3050_v2, %v12258_v7  ;;  %v4371_v55 = vrot.slane %v3050_v2, %v12263_v32 }
 0x503   :  { %v6958_v10 = vcombine.low %v6950_v50, %v6957_v46  ;;  %v4375_v61 = vrot.slane %v3050_v2, %v12266_v43  ;;  %v4379_v39 = vrot.slane %v3050_v2, %v12269_v63  ;;  %v7008_v54 = vcombine.low %v4351_v12, %v4355_v31 }
 0x504   :  { %v6306_v56 = vcombine.low %v6297_v58, %v6304_v5  ;;  %v6313_v60 = vrot.slane %v6305_v9, %v12319_v1  ;;  %v7009_v53 = vcombine.low %v4359_v23, %v4363_v49  ;;  %v7010_v44 = vcombine.low %v4367_v57, %v4371_v55 }
 0x505   :  { %8483 = vperm.xlu0 %9516, %v6958_v10   ;;  %v7011_v62 = vcombine.low %v4375_v61, %v4379_v39  ;;  %v7018_v38 = vrot.slane %v7008_v54, %v12319_v1  ;;  %v3935_v16 = vrot.slane %v3011_v3, %v12243_v18  ;;  %v3939_v45 = vrot.slane %v3011_v3, %v12246_v52 }
 0x506   :  { %v6320_v26 = vrot.slane %v6306_v56, %v12319_v1  ;;  %v7025_v11 = vrot.slane %v7009_v53, %v12319_v1  ;;  %v7032_v27 = vrot.slane %v7010_v44, %v12319_v1  ;;  %v3943_v30 = vrot.slane %v3011_v3, %v12249_v22  ;;  %v3062_v53 = vpop.xlane.xlu1 %3061  ;;  %v12874_v44 = vpop.xlane.xlu0 %3028 }
 0x507   :  { %v7039_v15 = vrot.slane %v7011_v62, %v12319_v1  ;;  %v3947_v19 = vrot.slane %v3011_v3, %v12255_v48  ;;  %v3951_v25 = vrot.slane %v3011_v3, %v12258_v7  ;;  %v3955_v17 = vrot.slane %v3011_v3, %v12263_v32 }
 0x508   :  { %v6321_v41 = vcombine.low %v6313_v60, %v6320_v26  ;;  %v7040_v2 = vcombine.low %v7018_v38, %v7025_v11  ;;  %v3959_v0 = vrot.slane %v3011_v3, %v12266_v43  ;;  %v3963_v20 = vrot.slane %v3011_v3, %v12269_v63 }
 0x509   :  { %v7041_v21 = vcombine.low %v7032_v27, %v7039_v15  ;;  %v6371_v13 = vcombine.low %v3935_v16, %v3939_v45  ;;  %v6372_v6 = vcombine.low %v3943_v30, %v3947_v19  ;;  %v6373_v8 = vcombine.low %v3951_v25, %v3955_v17 }
 0x50a   :  { %8444 = vperm.xlu1 %9517, %v6321_v41   ;;  %v7048_v37 = vrot.slane %v7040_v2, %v12319_v1  ;;  %v6374_v34 = vcombine.low %v3959_v0, %v3963_v20  ;;  %v4415_v29 = vrot.slane %v3056_v47, %v12243_v18  ;;  %v4419_v24 = vrot.slane %v3056_v47, %v12246_v52 }
 0x50b   :  { %v7055_v51 = vrot.slane %v7041_v21, %v12319_v1  ;;  %v6381_v35 = vrot.slane %v6371_v13, %v12319_v1  ;;  %v6388_v3 = vrot.slane %v6372_v6, %v12319_v1  ;;  %v6395_v50 = vrot.slane %v6373_v8, %v12319_v1 }
 0x50c   :  { %v6402_v33 = vrot.slane %v6374_v34, %v12319_v1  ;;  %v4423_v12 = vrot.slane %v3056_v47, %v12249_v22  ;;  %v4427_v59 = vrot.slane %v3056_v47, %v12255_v48  ;;  %v4431_v14 = vrot.slane %v3056_v47, %v12258_v7 }
 0x50d   :  { %v7056_v36 = vcombine.low %v7048_v37, %v7055_v51  ;;  %v6403_v31 = vcombine.low %v6381_v35, %v6388_v3  ;;  %v4435_v46 = vrot.slane %v3056_v47, %v12263_v32  ;;  %v4439_v58 = vrot.slane %v3056_v47, %v12266_v43 }
 0x50e   :  { %v6404_v23 = vcombine.low %v6395_v50, %v6402_v33  ;;  %v4443_v49 = vrot.slane %v3056_v47, %v12269_v63  ;;  %v7106_v5 = vcombine.low %v4415_v29, %v4419_v24  ;;  %v7107_v9 = vcombine.low %v4423_v12, %v4427_v59  ;;  %v12899_v29 = vpop.xlane.xlu0 %3034 }
 0x50f   :  { %8489 = vperm.xlu0 %9516, %v7056_v36   ;;  %v6411_v57 = vrot.slane %v6403_v31, %v12319_v1  ;;  %v7108_v55 = vcombine.low %v4431_v14, %v4435_v46  ;;  %v3999_v10 = vrot.slane %v12835_v40, %v12243_v18  ;;  %v4003_v61 = vrot.slane %v12835_v40, %v12246_v52 }
 0x510   :  { %v6418_v39 = vrot.slane %v6404_v23, %v12319_v1  ;;  %v7109_v54 = vcombine.low %v4439_v58, %v4443_v49  ;;  %v7116_v56 = vrot.slane %v7106_v5, %v12319_v1  ;;  %v7123_v60 = vrot.slane %v7107_v9, %v12319_v1 }
 0x511   :  { %v7130_v62 = vrot.slane %v7108_v55, %v12319_v1  ;;  %v4007_v38 = vrot.slane %v12835_v40, %v12249_v22  ;;  %v4011_v16 = vrot.slane %v12835_v40, %v12255_v48  ;;  %v4015_v45 = vrot.slane %v12835_v40, %v12258_v7 }
 0x512   :  { %v6419_v26 = vcombine.low %v6411_v57, %v6418_v39  ;;  %v7137_v11 = vrot.slane %v7109_v54, %v12319_v1  ;;  %v7138_v27 = vcombine.low %v7116_v56, %v7123_v60  ;;  %v4019_v30 = vrot.slane %v12835_v40, %v12263_v32  ;;  %v12924_v60 = vpop.xlane.xlu0 %3040 }
 0x513   :  { %v4023_v47 = vrot.slane %v12835_v40, %v12266_v43  ;;  %v4027_v15 = vrot.slane %v12835_v40, %v12269_v63  ;;  %v6469_v19 = vcombine.low %v3999_v10, %v4003_v61  ;;  %v6470_v25 = vcombine.low %v4007_v38, %v4011_v16 }
 0x514   :  { %8450 = vperm.xlu1 %9517, %v6419_v26   ;;  %v7139_v17 = vcombine.low %v7130_v62, %v7137_v11  ;;  %v7146_v41 = vrot.slane %v7138_v27, %v12319_v1  ;;  %v6471_v2 = vcombine.low %v4015_v45, %v4019_v30  ;;  %v4479_v0 = vrot.slane %v3062_v53, %v12243_v18 }
 0x515   :  { %v6472_v20 = vcombine.low %v4023_v47, %v4027_v15  ;;  %v6479_v21 = vrot.slane %v6469_v19, %v12319_v1  ;;  %v6486_v13 = vrot.slane %v6470_v25, %v12319_v1  ;;  %v4483_v6 = vrot.slane %v3062_v53, %v12246_v52 }
 0x516   :  { %v7153_v8 = vrot.slane %v7139_v17, %v12319_v1  ;;  %v6493_v40 = vrot.slane %v6471_v2, %v12319_v1  ;;  %v4487_v37 = vrot.slane %v3062_v53, %v12249_v22  ;;  %v4491_v34 = vrot.slane %v3062_v53, %v12255_v48 }
 0x517   :  { %v6500_v24 = vrot.slane %v6472_v20, %v12319_v1  ;;  %v6501_v51 = vcombine.low %v6479_v21, %v6486_v13  ;;  %v4495_v35 = vrot.slane %v3062_v53, %v12258_v7  ;;  %v4499_v3 = vrot.slane %v3062_v53, %v12263_v32 }
 0x518   :  { %v7154_v50 = vcombine.low %v7146_v41, %v7153_v8  ;;  %v4503_v33 = vrot.slane %v3062_v53, %v12266_v43  ;;  %v4507_v12 = vrot.slane %v3062_v53, %v12269_v63  ;;  %v7204_v59 = vcombine.low %v4479_v0, %v4483_v6 }
 0x519   :  { %v6502_v14 = vcombine.low %v6493_v40, %v6500_v24  ;;  %v6509_v36 = vrot.slane %v6501_v51, %v12319_v1  ;;  %v7205_v31 = vcombine.low %v4487_v37, %v4491_v34  ;;  %v7206_v46 = vcombine.low %v4495_v35, %v4499_v3  ;;  %v12950_v37 = vpop.xlane.xlu0 %3046 }
 0x51a   :  { %8495 = vperm.xlu0 %9516, %v7154_v50   ;;  %v7207_v58 = vcombine.low %v4503_v33, %v4507_v12  ;;  %v7214_v23 = vrot.slane %v7204_v59, %v12319_v1  ;;  %v4063_v49 = vrot.slane %v12853_v28, %v12243_v18  ;;  %v4067_v5 = vrot.slane %v12853_v28, %v12246_v52 }
 0x51b   :  { %v6516_v9 = vrot.slane %v6502_v14, %v12319_v1  ;;  %v7221_v57 = vrot.slane %v7205_v31, %v12319_v1  ;;  %v7228_v55 = vrot.slane %v7206_v46, %v12319_v1  ;;  %v4071_v10 = vrot.slane %v12853_v28, %v12249_v22 }
 0x51c   :  { %v7235_v61 = vrot.slane %v7207_v58, %v12319_v1  ;;  %v4075_v39 = vrot.slane %v12853_v28, %v12255_v48  ;;  %v4079_v54 = vrot.slane %v12853_v28, %v12258_v7  ;;  %v4083_v56 = vrot.slane %v12853_v28, %v12263_v32 }
 0x51d   :  { %v6517_v53 = vcombine.low %v6509_v36, %v6516_v9  ;;  %v7236_v62 = vcombine.low %v7214_v23, %v7221_v57  ;;  %v4087_v38 = vrot.slane %v12853_v28, %v12266_v43  ;;  %v4091_v16 = vrot.slane %v12853_v28, %v12269_v63 }
 0x51e   :  { %v7237_v45 = vcombine.low %v7228_v55, %v7235_v61  ;;  %v6567_v26 = vcombine.low %v4063_v49, %v4067_v5  ;;  %v6568_v11 = vcombine.low %v4071_v10, %v4075_v39  ;;  %v6569_v27 = vcombine.low %v4079_v54, %v4083_v56  ;;  %v12978_v56 = vpop.xlane.xlu0 %3052 }
 0x51f   :  { %8456 = vperm.xlu1 %9517, %v6517_v53   ;;  %v7244_v30 = vrot.slane %v7236_v62, %v12319_v1  ;;  %v6570_v47 = vcombine.low %v4087_v38, %v4091_v16  ;;  %v4127_v15 = vrot.slane %v12874_v44, %v12243_v18  ;;  %v4131_v19 = vrot.slane %v12874_v44, %v12246_v52 }
 0x520   :  { %v7251_v25 = vrot.slane %v7237_v45, %v12319_v1  ;;  %v6577_v17 = vrot.slane %v6567_v26, %v12319_v1  ;;  %v6584_v28 = vrot.slane %v6568_v11, %v12319_v1  ;;  %v6591_v41 = vrot.slane %v6569_v27, %v12319_v1 }
 0x521   :  { %v6598_v2 = vrot.slane %v6570_v47, %v12319_v1  ;;  %v4135_v0 = vrot.slane %v12874_v44, %v12249_v22  ;;  %v4139_v20 = vrot.slane %v12874_v44, %v12255_v48  ;;  %v4143_v21 = vrot.slane %v12874_v44, %v12258_v7 }
 0x522   :  { %v7252_v13 = vcombine.low %v7244_v30, %v7251_v25  ;;  %v6599_v6 = vcombine.low %v6577_v17, %v6584_v28  ;;  %v4147_v8 = vrot.slane %v12874_v44, %v12263_v32  ;;  %v4151_v40 = vrot.slane %v12874_v44, %v12266_v43 }
 0x523   :  { %v6600_v34 = vcombine.low %v6591_v41, %v6598_v2  ;;  %v4155_v24 = vrot.slane %v12874_v44, %v12269_v63  ;;  %v6665_v51 = vcombine.low %v4127_v15, %v4131_v19  ;;  %v6666_v35 = vcombine.low %v4135_v0, %v4139_v20  ;;  %v12962_v44 = vpop.xlane.xlu1 %3067 }
 0x524   :  { %8501 = vperm.xlu0 %9516, %v7252_v13   ;;  %v6607_v3 = vrot.slane %v6599_v6, %v12319_v1  ;;  %v6667_v50 = vcombine.low %v4143_v21, %v4147_v8  ;;  %v4191_v33 = vrot.slane %v12899_v29, %v12243_v18  ;;  %v4195_v12 = vrot.slane %v12899_v29, %v12246_v52 }
 0x525   :  { %v6614_v59 = vrot.slane %v6600_v34, %v12319_v1  ;;  %v6668_v14 = vcombine.low %v4151_v40, %v4155_v24  ;;  %v6675_v36 = vrot.slane %v6665_v51, %v12319_v1  ;;  %v6682_v31 = vrot.slane %v6666_v35, %v12319_v1  ;;  %v13005_v34 = vpop.xlane.xlu0 %3058 }
 0x526   :  { %v6689_v46 = vrot.slane %v6667_v50, %v12319_v1  ;;  %v4199_v58 = vrot.slane %v12899_v29, %v12249_v22  ;;  %v4203_v23 = vrot.slane %v12899_v29, %v12255_v48  ;;  %v4207_v49 = vrot.slane %v12899_v29, %v12258_v7 }
 0x527   :  { %v6615_v5 = vcombine.low %v6607_v3, %v6614_v59  ;;  %v6696_v9 = vrot.slane %v6668_v14, %v12319_v1  ;;  %v6697_v57 = vcombine.low %v6675_v36, %v6682_v31  ;;  %v4211_v55 = vrot.slane %v12899_v29, %v12263_v32  ;;  %v12993_v19 = vpop.xlane.xlu1 %3073 }
 0x528   :  { %v4215_v10 = vrot.slane %v12899_v29, %v12266_v43  ;;  %v4219_v61 = vrot.slane %v12899_v29, %v12269_v63  ;;  %v6763_v39 = vcombine.low %v4191_v33, %v4195_v12  ;;  %v6764_v54 = vcombine.low %v4199_v58, %v4203_v23 }
 0x529   :  { %8462 = vperm.xlu1 %9517, %v6615_v5   ;;  %v6698_v53 = vcombine.low %v6689_v46, %v6696_v9  ;;  %v6705_v62 = vrot.slane %v6697_v57, %v12319_v1  ;;  %v6765_v38 = vcombine.low %v4207_v49, %v4211_v55  ;;  %v4255_v16 = vrot.slane %v12924_v60, %v12243_v18 }
 0x52a   :  { %v6766_v45 = vcombine.low %v4215_v10, %v4219_v61  ;;  %v6773_v26 = vrot.slane %v6763_v39, %v12319_v1  ;;  %v6780_v11 = vrot.slane %v6764_v54, %v12319_v1  ;;  %v4259_v29 = vrot.slane %v12924_v60, %v12246_v52 }
 0x52b   :  { %v6712_v27 = vrot.slane %v6698_v53, %v12319_v1  ;;  %v6787_v30 = vrot.slane %v6765_v38, %v12319_v1  ;;  %v4263_v47 = vrot.slane %v12924_v60, %v12249_v22  ;;  %v4267_v15 = vrot.slane %v12924_v60, %v12255_v48  ;;  %v13024_v46 = vpop.xlane.xlu1 %3079 }
 0x52c   :  { %v6794_v25 = vrot.slane %v6766_v45, %v12319_v1  ;;  %v6795_v17 = vcombine.low %v6773_v26, %v6780_v11  ;;  %v4271_v28 = vrot.slane %v12924_v60, %v12258_v7  ;;  %v4275_v41 = vrot.slane %v12924_v60, %v12263_v32 }
 0x52d   :  { %v6713_v2 = vcombine.low %v6705_v62, %v6712_v27  ;;  %v4279_v0 = vrot.slane %v12924_v60, %v12266_v43  ;;  %v4283_v20 = vrot.slane %v12924_v60, %v12269_v63  ;;  %v6861_v21 = vcombine.low %v4255_v16, %v4259_v29  ;;  %v13035_v62 = vpop.xlane.xlu0 %3064 }
 0x52e   :  { %v6796_v13 = vcombine.low %v6787_v30, %v6794_v25  ;;  %v6803_v6 = vrot.slane %v6795_v17, %v12319_v1  ;;  %v6862_v8 = vcombine.low %v4263_v47, %v4267_v15  ;;  %v6863_v40 = vcombine.low %v4271_v28, %v4275_v41 }
 0x52f   :  { %8468 = vperm.xlu1 %9517, %v6713_v2   ;;  %v6864_v24 = vcombine.low %v4279_v0, %v4283_v20  ;;  %v6871_v51 = vrot.slane %v6861_v21, %v12319_v1  ;;  %v4319_v35 = vrot.slane %v12950_v37, %v12243_v18  ;;  %v4323_v3 = vrot.slane %v12950_v37, %v12246_v52  ;;  %v13052_v17 = vpop.xlane.xlu1 %3085 }
 0x530   :  { %v6810_v60 = vrot.slane %v6796_v13, %v12319_v1  ;;  %v6878_v50 = vrot.slane %v6862_v8, %v12319_v1  ;;  %v6885_v33 = vrot.slane %v6863_v40, %v12319_v1  ;;  %v4327_v12 = vrot.slane %v12950_v37, %v12249_v22 }
 0x531   :  { %v6892_v59 = vrot.slane %v6864_v24, %v12319_v1  ;;  %v4331_v14 = vrot.slane %v12950_v37, %v12255_v48  ;;  %v4335_v36 = vrot.slane %v12950_v37, %v12258_v7  ;;  %v4339_v31 = vrot.slane %v12950_v37, %v12263_v32 }
 0x532   :  { %v6811_v58 = vcombine.low %v6803_v6, %v6810_v60  ;;  %v6893_v23 = vcombine.low %v6871_v51, %v6878_v50  ;;  %v4343_v49 = vrot.slane %v12950_v37, %v12266_v43  ;;  %v4347_v5 = vrot.slane %v12950_v37, %v12269_v63 }
 0x533   :  { %v6894_v9 = vcombine.low %v6885_v33, %v6892_v59  ;;  %v6959_v57 = vcombine.low %v4319_v35, %v4323_v3  ;;  %v6960_v55 = vcombine.low %v4327_v12, %v4331_v14  ;;  %v6961_v10 = vcombine.low %v4335_v36, %v4339_v31 }
 0x534   :  { %8474 = vperm.xlu1 %9517, %v6811_v58   ;;  %v6901_v61 = vrot.slane %v6893_v23, %v12319_v1  ;;  %v6962_v39 = vcombine.low %v4343_v49, %v4347_v5  ;;  %v4383_v54 = vrot.slane %v12978_v56, %v12243_v18  ;;  %v4387_v53 = vrot.slane %v12978_v56, %v12246_v52  ;;  %v13078_v49 = vpop.xlane.xlu1 %3091 }
 0x535   :  { %v6908_v38 = vrot.slane %v6894_v9, %v12319_v1  ;;  %v6969_v37 = vrot.slane %v6959_v57, %v12319_v1  ;;  %v6976_v16 = vrot.slane %v6960_v55, %v12319_v1  ;;  %v6983_v45 = vrot.slane %v6961_v10, %v12319_v1 }
 0x536   :  { %v6990_v26 = vrot.slane %v6962_v39, %v12319_v1  ;;  %v4391_v11 = vrot.slane %v12978_v56, %v12249_v22  ;;  %v4395_v29 = vrot.slane %v12978_v56, %v12255_v48  ;;  %v4399_v27 = vrot.slane %v12978_v56, %v12258_v7 }
 0x537   :  { %v6909_v30 = vcombine.low %v6901_v61, %v6908_v38  ;;  %v6991_v47 = vcombine.low %v6969_v37, %v6976_v16  ;;  %v4403_v15 = vrot.slane %v12978_v56, %v12263_v32  ;;  %v4407_v25 = vrot.slane %v12978_v56, %v12266_v43 }
 0x538   :  { %v6992_v28 = vcombine.low %v6983_v45, %v6990_v26  ;;  %v4411_v41 = vrot.slane %v12978_v56, %v12269_v63  ;;  %v7057_v2 = vcombine.low %v4383_v54, %v4387_v53  ;;  %v7058_v0 = vcombine.low %v4391_v11, %v4395_v29  ;;  %v3071_v56 = vpop.xlane.xlu0 %3070 }
 0x539   :  { %8480 = vperm.xlu1 %9517, %v6909_v30   ;;  %v6999_v20 = vrot.slane %v6991_v47, %v12319_v1  ;;  %v7059_v21 = vcombine.low %v4399_v27, %v4403_v15  ;;  %v4447_v13 = vrot.slane %v13005_v34, %v12243_v18  ;;  %v4451_v6 = vrot.slane %v13005_v34, %v12246_v52 }
 0x53a   :  { %v7006_v8 = vrot.slane %v6992_v28, %v12319_v1  ;;  %v7060_v40 = vcombine.low %v4407_v25, %v4411_v41  ;;  %v7067_v24 = vrot.slane %v7057_v2, %v12319_v1  ;;  %v7074_v51 = vrot.slane %v7058_v0, %v12319_v1  ;;  %v13095_v2 = vpop.xlane.xlu1 %3097 }
 0x53b   :  { %v7081_v35 = vrot.slane %v7059_v21, %v12319_v1  ;;  %v4455_v3 = vrot.slane %v13005_v34, %v12249_v22  ;;  %v4459_v60 = vrot.slane %v13005_v34, %v12255_v48  ;;  %v4463_v50 = vrot.slane %v13005_v34, %v12258_v7 }
 0x53c   :  { %v7007_v33 = vcombine.low %v6999_v20, %v7006_v8  ;;  %v7088_v12 = vrot.slane %v7060_v40, %v12319_v1  ;;  %v7089_v59 = vcombine.low %v7067_v24, %v7074_v51  ;;  %v4467_v14 = vrot.slane %v13005_v34, %v12263_v32 }
 0x53d   :  { %v4471_v36 = vrot.slane %v13005_v34, %v12266_v43  ;;  %v4475_v31 = vrot.slane %v13005_v34, %v12269_v63  ;;  %v7155_v58 = vcombine.low %v4447_v13, %v4451_v6  ;;  %v7156_v23 = vcombine.low %v4455_v3, %v4459_v60 }
 0x53e   :  { %8486 = vperm.xlu1 %9517, %v7007_v33   ;;  %v7090_v5 = vcombine.low %v7081_v35, %v7088_v12  ;;  %v7097_v9 = vrot.slane %v7089_v59, %v12319_v1  ;;  %v7157_v57 = vcombine.low %v4463_v50, %v4467_v14  ;;  %v4575_v55 = vrot.slane %v3071_v56, %v12243_v18 }
 0x53f   :  { %v7158_v10 = vcombine.low %v4471_v36, %v4475_v31  ;;  %v7165_v61 = vrot.slane %v7155_v58, %v12319_v1  ;;  %v7172_v39 = vrot.slane %v7156_v23, %v12319_v1  ;;  %v4579_v54 = vrot.slane %v3071_v56, %v12246_v52 }
 0x540   :  { %v7104_v34 = vrot.slane %v7090_v5, %v12319_v1  ;;  %v7179_v53 = vrot.slane %v7157_v57, %v12319_v1  ;;  %v4583_v38 = vrot.slane %v3071_v56, %v12249_v22  ;;  %v4587_v37 = vrot.slane %v3071_v56, %v12255_v48  ;;  %v13123_v57 = vpop.xlane.xlu1 %3103 }
 0x541   :  { %v7186_v16 = vrot.slane %v7158_v10, %v12319_v1  ;;  %v7187_v45 = vcombine.low %v7165_v61, %v7172_v39  ;;  %v4591_v26 = vrot.slane %v3071_v56, %v12258_v7  ;;  %v4595_v11 = vrot.slane %v3071_v56, %v12263_v32 }
 0x542   :  { %v7105_v29 = vcombine.low %v7097_v9, %v7104_v34  ;;  %v4599_v27 = vrot.slane %v3071_v56, %v12266_v43  ;;  %v4603_v30 = vrot.slane %v3071_v56, %v12269_v63  ;;  %v7351_v47 = vcombine.low %v4575_v55, %v4579_v54  ;;  %v3077_v55 = vpop.xlane.xlu0 %3076 }
 0x543   :  { %v7188_v15 = vcombine.low %v7179_v53, %v7186_v16  ;;  %v7195_v25 = vrot.slane %v7187_v45, %v12319_v1  ;;  %v7352_v28 = vcombine.low %v4583_v38, %v4587_v37  ;;  %v7353_v41 = vcombine.low %v4591_v26, %v4595_v11 }
 0x544   :  { %8492 = vperm.xlu1 %9517, %v7105_v29   ;;  %v7354_v0 = vcombine.low %v4599_v27, %v4603_v30  ;;  %v7361_v20 = vrot.slane %v7351_v47, %v12319_v1  ;;  %v4511_v21 = vrot.slane %v13035_v62, %v12243_v18  ;;  %v4515_v13 = vrot.slane %v13035_v62, %v12246_v52 }
 0x545   :  { %v7202_v6 = vrot.slane %v7188_v15, %v12319_v1  ;;  %v7368_v8 = vrot.slane %v7352_v28, %v12319_v1  ;;  %v7375_v40 = vrot.slane %v7353_v41, %v12319_v1  ;;  %v4519_v24 = vrot.slane %v13035_v62, %v12249_v22 }
 0x546   :  { %v7382_v51 = vrot.slane %v7354_v0, %v12319_v1  ;;  %v4523_v56 = vrot.slane %v13035_v62, %v12255_v48  ;;  %v4527_v35 = vrot.slane %v13035_v62, %v12258_v7  ;;  %v4531_v3 = vrot.slane %v13035_v62, %v12263_v32 }
 0x547   :  { %v7203_v60 = vcombine.low %v7195_v25, %v7202_v6  ;;  %v7383_v50 = vcombine.low %v7361_v20, %v7368_v8  ;;  %v4535_v33 = vrot.slane %v13035_v62, %v12266_v43  ;;  %v4539_v12 = vrot.slane %v13035_v62, %v12269_v63 }
 0x548   :  { %v7384_v59 = vcombine.low %v7375_v40, %v7382_v51  ;;  %v7253_v14 = vcombine.low %v4511_v21, %v4515_v13  ;;  %v7254_v36 = vcombine.low %v4519_v24, %v4523_v56  ;;  %v7255_v31 = vcombine.low %v4527_v35, %v4531_v3  ;;  %v13148_v13 = vpop.xlane.xlu1 %3109 }
 0x549   :  { %8498 = vperm.xlu1 %9517, %v7203_v60   ;;  %v7391_v58 = vrot.slane %v7383_v50, %v12319_v1  ;;  %v7256_v23 = vcombine.low %v4535_v33, %v4539_v12  ;;  %v4543_v5 = vrot.slane %v12962_v44, %v12243_v18  ;;  %v4547_v9 = vrot.slane %v12962_v44, %v12246_v52 }
 0x54a   :  { %v7398_v10 = vrot.slane %v7384_v59, %v12319_v1  ;;  %v7263_v62 = vrot.slane %v7253_v14, %v12319_v1  ;;  %v7270_v61 = vrot.slane %v7254_v36, %v12319_v1  ;;  %v7277_v39 = vrot.slane %v7255_v31, %v12319_v1 }
 0x54b   :  { %v7284_v54 = vrot.slane %v7256_v23, %v12319_v1  ;;  %v4551_v34 = vrot.slane %v12962_v44, %v12249_v22  ;;  %v4555_v53 = vrot.slane %v12962_v44, %v12255_v48  ;;  %v4559_v38 = vrot.slane %v12962_v44, %v12258_v7 }
 0x54c   :  { %v7399_v37 = vcombine.low %v7391_v58, %v7398_v10  ;;  %v7285_v16 = vcombine.low %v7263_v62, %v7270_v61  ;;  %v4563_v45 = vrot.slane %v12962_v44, %v12263_v32  ;;  %v4567_v26 = vrot.slane %v12962_v44, %v12266_v43  ;;  %v13169_v62 = vpop.xlane.xlu1 %3115 }
 0x54d   :  { %v7286_v11 = vcombine.low %v7277_v39, %v7284_v54  ;;  %v4571_v29 = vrot.slane %v12962_v44, %v12269_v63  ;;  %v7302_v27 = vcombine.low %v4543_v5, %v4547_v9  ;;  %v7303_v30 = vcombine.low %v4551_v34, %v4555_v53  ;;  %v13150_v44 = vpop.xlane.xlu0 %3082 }
 0x54e   :  { %8510 = vperm.xlu0 %9516, %v7399_v37   ;;  %v7293_v47 = vrot.slane %v7285_v16, %v12319_v1  ;;  %v7304_v15 = vcombine.low %v4559_v38, %v4563_v45  ;;  %v4639_v25 = vrot.slane %v3077_v55, %v12243_v18  ;;  %v4643_v28 = vrot.slane %v3077_v55, %v12246_v52 }
 0x54f   :  { %v7300_v41 = vrot.slane %v7286_v11, %v12319_v1  ;;  %v7305_v0 = vcombine.low %v4567_v26, %v4571_v29  ;;  %v7312_v20 = vrot.slane %v7302_v27, %v12319_v1  ;;  %v7319_v21 = vrot.slane %v7303_v30, %v12319_v1 }
 0x550   :  { %v7326_v6 = vrot.slane %v7304_v15, %v12319_v1  ;;  %v4647_v8 = vrot.slane %v3077_v55, %v12249_v22  ;;  %v4651_v40 = vrot.slane %v3077_v55, %v12255_v48  ;;  %v4655_v24 = vrot.slane %v3077_v55, %v12258_v7 }
 0x551   :  { %v7301_v51 = vcombine.low %v7293_v47, %v7300_v41  ;;  %v7333_v56 = vrot.slane %v7305_v0, %v12319_v1  ;;  %v7334_v35 = vcombine.low %v7312_v20, %v7319_v21  ;;  %v4659_v3 = vrot.slane %v3077_v55, %v12263_v32  ;;  %v3089_v61 = vpop.xlane.xlu0 %3088 }
 0x552   :  { %v4663_v60 = vrot.slane %v3077_v55, %v12266_v43  ;;  %v4667_v50 = vrot.slane %v3077_v55, %v12269_v63  ;;  %v7449_v33 = vcombine.low %v4639_v25, %v4643_v28  ;;  %v7450_v12 = vcombine.low %v4647_v8, %v4651_v40  ;;  %v13193_v8 = vpop.xlane.xlu1 %3121 }
 0x553   :  { %8504 = vperm.xlu1 %9517, %v7301_v51   ;;  %v7335_v59 = vcombine.low %v7326_v6, %v7333_v56  ;;  %v7342_v14 = vrot.slane %v7334_v35, %v12319_v1  ;;  %v7451_v36 = vcombine.low %v4655_v24, %v4659_v3  ;;  %v4607_v10 = vrot.slane %v12993_v19, %v12243_v18 }
 0x554   :  { %v7452_v31 = vcombine.low %v4663_v60, %v4667_v50  ;;  %v7459_v58 = vrot.slane %v7449_v33, %v12319_v1  ;;  %v7466_v23 = vrot.slane %v7450_v12, %v12319_v1  ;;  %v4611_v55 = vrot.slane %v12993_v19, %v12246_v52 }
 0x555   :  { %v7349_v5 = vrot.slane %v7335_v59, %v12319_v1  ;;  %v7473_v9 = vrot.slane %v7451_v36, %v12319_v1  ;;  %v4615_v34 = vrot.slane %v12993_v19, %v12249_v22  ;;  %v4619_v53 = vrot.slane %v12993_v19, %v12255_v48 }
 0x556   :  { %v7480_v39 = vrot.slane %v7452_v31, %v12319_v1  ;;  %v7481_v54 = vcombine.low %v7459_v58, %v7466_v23  ;;  %v4623_v37 = vrot.slane %v12993_v19, %v12258_v7  ;;  %v4627_v16 = vrot.slane %v12993_v19, %v12263_v32  ;;  %v13202_v58 = vpop.xlane.xlu1 %3127 }
 0x557   :  { %v7350_v38 = vcombine.low %v7342_v14, %v7349_v5  ;;  %v4631_v11 = vrot.slane %v12993_v19, %v12266_v43  ;;  %v4635_v29 = vrot.slane %v12993_v19, %v12269_v63  ;;  %v7400_v27 = vcombine.low %v4607_v10, %v4611_v55  ;;  %v3095_v55 = vpop.xlane.xlu0 %3094 }
 0x558   :  { %v7482_v45 = vcombine.low %v7473_v9, %v7480_v39  ;;  %v7489_v26 = vrot.slane %v7481_v54, %v12319_v1  ;;  %v7401_v30 = vcombine.low %v4615_v34, %v4619_v53  ;;  %v7402_v47 = vcombine.low %v4623_v37, %v4627_v16 }
 0x559   :  { %8507 = vperm.xlu0 %9516, %v7350_v38   ;;  %v4767_v15 = vrot.slane %v3089_v61, %v12243_v18  ;;  %v7403_v28 = vcombine.low %v4631_v11, %v4635_v29  ;;  %v4771_v41 = vrot.slane %v3089_v61, %v12246_v52  ;;  %v4775_v0 = vrot.slane %v3089_v61, %v12249_v22 }
 0x55a   :  { %v7496_v25 = vrot.slane %v7482_v45, %v12319_v1  ;;  %v7410_v20 = vrot.slane %v7400_v27, %v12319_v1  ;;  %v7417_v21 = vrot.slane %v7401_v30, %v12319_v1  ;;  %v7424_v6 = vrot.slane %v7402_v47, %v12319_v1 }
 0x55b   :  { %v4779_v19 = vrot.slane %v3089_v61, %v12255_v48  ;;  %v7431_v24 = vrot.slane %v7403_v28, %v12319_v1  ;;  %v4783_v51 = vrot.slane %v3089_v61, %v12258_v7  ;;  %v4787_v56 = vrot.slane %v3089_v61, %v12263_v32 }
 0x55c   :  { %v7497_v40 = vcombine.low %v7489_v26, %v7496_v25  ;;  %v7432_v35 = vcombine.low %v7410_v20, %v7417_v21  ;;  %v4791_v3 = vrot.slane %v3089_v61, %v12266_v43  ;;  %v4795_v60 = vrot.slane %v3089_v61, %v12269_v63 }
 0x55d   :  { %v7645_v50 = vcombine.low %v4767_v15, %v4771_v41  ;;  %v7433_v33 = vcombine.low %v7424_v6, %v7431_v24  ;;  %v7646_v12 = vcombine.low %v4775_v0, %v4779_v19  ;;  %v7647_v59 = vcombine.low %v4783_v51, %v4787_v56  ;;  %v13228_v0 = vpop.permute.xlu1 %8381 }
 0x55e   :  { %8516 = vperm.xlu0 %9516, %v7497_v40   ;;  %v7440_v14 = vrot.slane %v7432_v35, %v12319_v1  ;;  %v7648_v36 = vcombine.low %v4791_v3, %v4795_v60  ;;  %v4735_v10 = vrot.slane %v13052_v17, %v12243_v18  ;;  %v4739_v39 = vrot.slane %v13052_v17, %v12246_v52 }
 0x55f   :  { %v7655_v31 = vrot.slane %v7645_v50, %v12319_v1  ;;  %v7447_v23 = vrot.slane %v7433_v33, %v12319_v1  ;;  %v7662_v5 = vrot.slane %v7646_v12, %v12319_v1  ;;  %v7669_v9 = vrot.slane %v7647_v59, %v12319_v1 }
 0x560   :  { %v7676_v61 = vrot.slane %v7648_v36, %v12319_v1  ;;  %v4743_v54 = vrot.slane %v13052_v17, %v12249_v22  ;;  %v4747_v34 = vrot.slane %v13052_v17, %v12255_v48  ;;  %v4751_v37 = vrot.slane %v13052_v17, %v12258_v7 }
 0x561   :  { %v7448_v53 = vcombine.low %v7440_v14, %v7447_v23  ;;  %v7677_v38 = vcombine.low %v7655_v31, %v7662_v5  ;;  %v4755_v45 = vrot.slane %v13052_v17, %v12263_v32  ;;  %v4759_v26 = vrot.slane %v13052_v17, %v12266_v43 }
 0x562   :  { %v7678_v16 = vcombine.low %v7669_v9, %v7676_v61  ;;  %v4763_v11 = vrot.slane %v13052_v17, %v12269_v63  ;;  %v7596_v27 = vcombine.low %v4735_v10, %v4739_v39  ;;  %v7597_v30 = vcombine.low %v4743_v54, %v4747_v34  ;;  %v13246_v10 = vpop.permute.xlu1 %8390  ;;  %v3101_v34 = vpop.xlane.xlu0 %3100 }
 0x563   :  { %8513 = vperm.xlu0 %9516, %v7448_v53   ;;  %v7685_v29 = vrot.slane %v7677_v38, %v12319_v1  ;;  %v4831_v47 = vrot.slane %v3095_v55, %v12243_v18  ;;  %v7598_v25 = vcombine.low %v4751_v37, %v4755_v45  ;;  %v4835_v41 = vrot.slane %v3095_v55, %v12246_v52 }
 0x564   :  { %v7692_v15 = vrot.slane %v7678_v16, %v12319_v1  ;;  %v7599_v28 = vcombine.low %v4759_v26, %v4763_v11  ;;  %v7606_v20 = vrot.slane %v7596_v27, %v12319_v1  ;;  %v7613_v21 = vrot.slane %v7597_v30, %v12319_v1 }
 0x565   :  { %v4839_v17 = vrot.slane %v3095_v55, %v12249_v22  ;;  %v4843_v6 = vrot.slane %v3095_v55, %v12255_v48  ;;  %v7620_v40 = vrot.slane %v7598_v25, %v12319_v1  ;;  %v4847_v51 = vrot.slane %v3095_v55, %v12258_v7 }
 0x566   :  { %v7693_v19 = vcombine.low %v7685_v29, %v7692_v15  ;;  %v7627_v24 = vrot.slane %v7599_v28, %v12319_v1  ;;  %v7628_v56 = vcombine.low %v7606_v20, %v7613_v21  ;;  %v4851_v35 = vrot.slane %v3095_v55, %v12263_v32 }
 0x567   :  { %v4855_v3 = vrot.slane %v3095_v55, %v12266_v43  ;;  %v4859_v60 = vrot.slane %v3095_v55, %v12269_v63  ;;  %v7743_v33 = vcombine.low %v4831_v47, %v4835_v41  ;;  %v7744_v12 = vcombine.low %v4839_v17, %v4843_v6 }
 0x568   :  { %8528 = vperm.xlu1 %9517, %v7693_v19   ;;  %v7629_v50 = vcombine.low %v7620_v40, %v7627_v24  ;;  %v7636_v59 = vrot.slane %v7628_v56, %v12319_v1  ;;  %v7745_v14 = vcombine.low %v4847_v51, %v4851_v35  ;;  %v4799_v9 = vrot.slane %v13078_v49, %v12243_v18  ;;  %v13271_v40 = vpop.permute.xlu1 %8387 }
 0x569   :  { %v7746_v36 = vcombine.low %v4855_v3, %v4859_v60  ;;  %v7753_v23 = vrot.slane %v7743_v33, %v12319_v1  ;;  %v7760_v5 = vrot.slane %v7744_v12, %v12319_v1  ;;  %v4803_v39 = vrot.slane %v13078_v49, %v12246_v52 }
 0x56a   :  { %v7643_v31 = vrot.slane %v7629_v50, %v12319_v1  ;;  %v7767_v55 = vrot.slane %v7745_v14, %v12319_v1  ;;  %v4807_v54 = vrot.slane %v13078_v49, %v12249_v22  ;;  %v4811_v37 = vrot.slane %v13078_v49, %v12255_v48 }
 0x56b   :  { %v7774_v61 = vrot.slane %v7746_v36, %v12319_v1  ;;  %v7775_v38 = vcombine.low %v7753_v23, %v7760_v5  ;;  %v4815_v45 = vrot.slane %v13078_v49, %v12258_v7  ;;  %v4819_v26 = vrot.slane %v13078_v49, %v12263_v32 }
 0x56c   :  { %v7644_v53 = vcombine.low %v7636_v59, %v7643_v31  ;;  %v4823_v11 = vrot.slane %v13078_v49, %v12266_v43  ;;  %v4827_v27 = vrot.slane %v13078_v49, %v12269_v63  ;;  %v7694_v30 = vcombine.low %v4799_v9, %v4803_v39 }
 0x56d   :  { %v7776_v16 = vcombine.low %v7767_v55, %v7774_v61  ;;  %v7783_v29 = vrot.slane %v7775_v38, %v12319_v1  ;;  %v7695_v47 = vcombine.low %v4807_v54, %v4811_v37  ;;  %v7696_v25 = vcombine.low %v4815_v45, %v4819_v26  ;;  %v13292_v37 = vpop.permute.xlu1 %8396 }
 0x56e   :  { %8525 = vperm.xlu0 %9516, %v7644_v53   ;;  %v4895_v28 = vrot.slane %v3101_v34, %v12243_v18  ;;  %v4899_v41 = vrot.slane %v3101_v34, %v12246_v52  ;;  %v7697_v20 = vcombine.low %v4823_v11, %v4827_v27  ;;  %v7704_v21 = vrot.slane %v7694_v30, %v12319_v1 }
 0x56f   :  { %v7790_v15 = vrot.slane %v7776_v16, %v12319_v1  ;;  %v7711_v17 = vrot.slane %v7695_v47, %v12319_v1  ;;  %v4903_v6 = vrot.slane %v3101_v34, %v12249_v22  ;;  %v7718_v49 = vrot.slane %v7696_v25, %v12319_v1 }
 0x570   :  { %v4907_v24 = vrot.slane %v3101_v34, %v12255_v48  ;;  %v4911_v51 = vrot.slane %v3101_v34, %v12258_v7  ;;  %v7725_v56 = vrot.slane %v7697_v20, %v12319_v1  ;;  %v4915_v3 = vrot.slane %v3101_v34, %v12263_v32 }
 0x571   :  { %v7791_v19 = vcombine.low %v7783_v29, %v7790_v15  ;;  %v7726_v35 = vcombine.low %v7704_v21, %v7711_v17  ;;  %v4919_v60 = vrot.slane %v3101_v34, %v12266_v43  ;;  %v4923_v50 = vrot.slane %v3101_v34, %v12269_v63  ;;  %v3107_v34 = vpop.xlane.xlu0 %3106 }
 0x572   :  { %v7841_v33 = vcombine.low %v4895_v28, %v4899_v41  ;;  %v7842_v12 = vcombine.low %v4903_v6, %v4907_v24  ;;  %v7727_v59 = vcombine.low %v7718_v49, %v7725_v56  ;;  %v7843_v36 = vcombine.low %v4911_v51, %v4915_v3 }
 0x573   :  { %8534 = vperm.xlu1 %9517, %v7791_v19   ;;  %v7734_v14 = vrot.slane %v7726_v35, %v12319_v1  ;;  %v7844_v31 = vcombine.low %v4919_v60, %v4923_v50  ;;  %v4863_v9 = vrot.slane %v13095_v2, %v12243_v18  ;;  %v4867_v39 = vrot.slane %v13095_v2, %v12246_v52  ;;  %v13317_v50 = vpop.permute.xlu1 %8393 }
 0x574   :  { %v7851_v23 = vrot.slane %v7841_v33, %v12319_v1  ;;  %v7858_v5 = vrot.slane %v7842_v12, %v12319_v1  ;;  %v7741_v55 = vrot.slane %v7727_v59, %v12319_v1  ;;  %v7865_v61 = vrot.slane %v7843_v36, %v12319_v1 }
 0x575   :  { %v4871_v54 = vrot.slane %v13095_v2, %v12249_v22  ;;  %v7872_v53 = vrot.slane %v7844_v31, %v12319_v1  ;;  %v4875_v16 = vrot.slane %v13095_v2, %v12255_v48  ;;  %v4879_v26 = vrot.slane %v13095_v2, %v12258_v7  ;;  %v3113_v33 = vpop.xlane.xlu0 %3112 }
 0x576   :  { %v7873_v38 = vcombine.low %v7851_v23, %v7858_v5  ;;  %v7742_v45 = vcombine.low %v7734_v14, %v7741_v55  ;;  %v4883_v11 = vrot.slane %v13095_v2, %v12263_v32  ;;  %v4887_v29 = vrot.slane %v13095_v2, %v12266_v43 }
 0x577   :  { %v7874_v27 = vcombine.low %v7865_v61, %v7872_v53  ;;  %v4891_v47 = vrot.slane %v13095_v2, %v12269_v63  ;;  %v7792_v15 = vcombine.low %v4863_v9, %v4867_v39  ;;  %v7793_v25 = vcombine.low %v4871_v54, %v4875_v16  ;;  %v13332_v16 = vpop.permute.xlu1 %8402 }
 0x578   :  { %v7881_v30 = vrot.slane %v7873_v38, %v12319_v1  ;;  %8531 = vperm.xlu0 %9516, %v7742_v45   ;;  %v7794_v28 = vcombine.low %v4879_v26, %v4883_v11  ;;  %v4959_v41 = vrot.slane %v3107_v34, %v12243_v18  ;;  %v4963_v20 = vrot.slane %v3107_v34, %v12246_v52 }
 0x579   :  { %v7888_v21 = vrot.slane %v7874_v27, %v12319_v1  ;;  %v7795_v17 = vcombine.low %v4887_v29, %v4891_v47  ;;  %v7802_v6 = vrot.slane %v7792_v15, %v12319_v1  ;;  %v4967_v19 = vrot.slane %v3107_v34, %v12249_v22 }
 0x57a   :  { %v7809_v49 = vrot.slane %v7793_v25, %v12319_v1  ;;  %v7816_v24 = vrot.slane %v7794_v28, %v12319_v1  ;;  %v4971_v2 = vrot.slane %v3107_v34, %v12255_v48  ;;  %v4975_v51 = vrot.slane %v3107_v34, %v12258_v7  ;;  %v13346_v25 = vpop.xlane.xlu0 %3118 }
 0x57b   :  { %v7889_v56 = vcombine.low %v7881_v30, %v7888_v21  ;;  %v7823_v35 = vrot.slane %v7795_v17, %v12319_v1  ;;  %v4979_v3 = vrot.slane %v3107_v34, %v12263_v32  ;;  %v4983_v60 = vrot.slane %v3107_v34, %v12266_v43 }
 0x57c   :  { %v7824_v12 = vcombine.low %v7802_v6, %v7809_v49  ;;  %v4987_v59 = vrot.slane %v3107_v34, %v12269_v63  ;;  %v7939_v14 = vcombine.low %v4959_v41, %v4963_v20  ;;  %v7940_v36 = vcombine.low %v4967_v19, %v4971_v2 }
 0x57d   :  { %v13321_v31 = vand.u32 127, %v3196_v4  ;;  %8540 = vperm.xlu1 %9517, %v7889_v56   ;;  %v7825_v23 = vcombine.low %v7816_v24, %v7823_v35  ;;  %v7941_v5 = vcombine.low %v4975_v51, %v4979_v3  ;;  %v4927_v34 = vrot.slane %v13123_v57, %v12243_v18 }
 0x57e   :  { %v7832_v9 = vrot.slane %v7824_v12, %v12319_v1  ;;  %v7942_v55 = vcombine.low %v4983_v60, %v4987_v59  ;;  %v7949_v61 = vrot.slane %v7939_v14, %v12319_v1  ;;  %v7956_v39 = vrot.slane %v7940_v36, %v12319_v1  ;;  %v13361_v12 = vpop.permute.xlu1 %8399 }
 0x57f   :  { %v7839_v54 = vrot.slane %v7825_v23, %v12319_v1  ;;  %v7963_v53 = vrot.slane %v7941_v5, %v12319_v1  ;;  %v4931_v38 = vrot.slane %v13123_v57, %v12246_v52  ;;  %v4935_v11 = vrot.slane %v13123_v57, %v12249_v22 }
 0x580   :  { %v7970_v45 = vrot.slane %v7942_v55, %v12319_v1  ;;  %v7971_v26 = vcombine.low %v7949_v61, %v7956_v39  ;;  %v4939_v29 = vrot.slane %v13123_v57, %v12255_v48  ;;  %v13340_v27 = vadd.s32 4294967272, %v13321_v31  ;;  %v13368_v39 = vpop.xlane.xlu0 %3124 }
 0x581   :  { %v7840_v30 = vcombine.low %v7832_v9, %v7839_v54  ;;  %v4943_v47 = vrot.slane %v13123_v57, %v12258_v7  ;;  %v4947_v15 = vrot.slane %v13123_v57, %v12263_v32  ;;  %v4951_v20 = vrot.slane %v13123_v57, %v12266_v43 }
 0x582   :  { %v7972_v28 = vcombine.low %v7963_v53, %v7970_v45  ;;  %v7979_v41 = vrot.slane %v7971_v26, %v12319_v1  ;;  %v4955_v21 = vrot.slane %v13123_v57, %v12269_v63  ;;  %v7890_v17 = vcombine.low %v4927_v34, %v4931_v38 }
 0x583   :  { %8537 = vperm.xlu0 %9516, %v7840_v30   ;;  %v7891_v6 = vcombine.low %v4935_v11, %v4939_v29  ;;  %v7892_v19 = vcombine.low %v4943_v47, %v4947_v15  ;;  %v5023_v49 = vrot.slane %v3113_v33, %v12243_v18  ;;  %v5027_v51 = vrot.slane %v3113_v33, %v12246_v52 }
 0x584   :  { %v7986_v24 = vrot.slane %v7972_v28, %v12319_v1  ;;  %v7893_v2 = vcombine.low %v4951_v20, %v4955_v21  ;;  %v5031_v56 = vrot.slane %v3113_v33, %v12249_v22  ;;  %v7900_v35 = vrot.slane %v7890_v17, %v12319_v1  ;;  %v13388_v17 = vpop.permute.xlu1 %8408 }
 0x585   :  { %v7907_v3 = vrot.slane %v7891_v6, %v12319_v1  ;;  %v7914_v60 = vrot.slane %v7892_v19, %v12319_v1  ;;  %v5035_v57 = vrot.slane %v3113_v33, %v12255_v48  ;;  %v5039_v36 = vrot.slane %v3113_v33, %v12258_v7 }
 0x586   :  { %v7987_v59 = vcombine.low %v7979_v41, %v7986_v24  ;;  %v7921_v14 = vrot.slane %v7893_v2, %v12319_v1  ;;  %v5043_v23 = vrot.slane %v3113_v33, %v12263_v32  ;;  %v5047_v9 = vrot.slane %v3113_v33, %v12266_v43 }
 0x587   :  { %v7922_v5 = vcombine.low %v7900_v35, %v7907_v3  ;;  %v5051_v55 = vrot.slane %v3113_v33, %v12269_v63  ;;  %v8037_v61 = vcombine.low %v5023_v49, %v5027_v51  ;;  %v8038_v53 = vcombine.low %v5031_v56, %v5035_v57  ;;  %v13394_v3 = vpop.xlane.xlu0 %3130 }
 0x588   :  { %8546 = vperm.xlu1 %9517, %v7987_v59   ;;  %v7923_v54 = vcombine.low %v7914_v60, %v7921_v14  ;;  %v8039_v34 = vcombine.low %v5039_v36, %v5043_v23  ;;  %v4991_v38 = vrot.slane %v13148_v13, %v12243_v18  ;;  %v4995_v29 = vrot.slane %v13148_v13, %v12246_v52 }
 0x589   :  { %v7930_v45 = vrot.slane %v7922_v5, %v12319_v1  ;;  %v8040_v26 = vcombine.low %v5047_v9, %v5051_v55  ;;  %v8047_v11 = vrot.slane %v8037_v61, %v12319_v1  ;;  %v8054_v30 = vrot.slane %v8038_v53, %v12319_v1 }
 0x58a   :  { %v7937_v33 = vrot.slane %v7923_v54, %v12319_v1  ;;  %v8061_v47 = vrot.slane %v8039_v34, %v12319_v1  ;;  %v4999_v15 = vrot.slane %v13148_v13, %v12249_v22  ;;  %v5003_v41 = vrot.slane %v13148_v13, %v12255_v48 }
 0x58b   :  { %v8068_v28 = vrot.slane %v8040_v26, %v12319_v1  ;;  %v5007_v20 = vrot.slane %v13148_v13, %v12258_v7  ;;  %v5011_v21 = vrot.slane %v13148_v13, %v12263_v32  ;;  %v8069_v19 = vcombine.low %v8047_v11, %v8054_v30  ;;  %v13416_v26 = vpop.permute.xlu1 %8405 }
 0x58c   :  { %v7938_v6 = vcombine.low %v7930_v45, %v7937_v33  ;;  %v5015_v49 = vrot.slane %v13148_v13, %v12266_v43  ;;  %v5019_v24 = vrot.slane %v13148_v13, %v12269_v63  ;;  %v7988_v51 = vcombine.low %v4991_v38, %v4995_v29 }
 0x58d   :  { %v8070_v2 = vcombine.low %v8061_v47, %v8068_v28  ;;  %v7989_v56 = vcombine.low %v4999_v15, %v5003_v41  ;;  %v7990_v35 = vcombine.low %v5007_v20, %v5011_v21  ;;  %v8077_v60 = vrot.slane %v8069_v19, %v12319_v1  ;;  %v13420_v47 = vpop.permute.xlu0 %8384 }
 0x58e   :  { %8543 = vperm.xlu0 %9516, %v7938_v6   ;;  %v7991_v57 = vcombine.low %v5015_v49, %v5019_v24  ;;  %v5087_v59 = vrot.slane %v13346_v25, %v12243_v18  ;;  %v5091_v14 = vrot.slane %v13346_v25, %v12246_v52  ;;  %v7998_v13 = vrot.slane %v7988_v51, %v12319_v1 }
 0x58f   :  { %v8084_v36 = vrot.slane %v8070_v2, %v12319_v1  ;;  %v8005_v23 = vrot.slane %v7989_v56, %v12319_v1  ;;  %v8012_v5 = vrot.slane %v7990_v35, %v12319_v1  ;;  %v5095_v55 = vrot.slane %v13346_v25, %v12249_v22 }
 0x590   :  { %v8019_v9 = vrot.slane %v7991_v57, %v12319_v1  ;;  %v5099_v61 = vrot.slane %v13346_v25, %v12255_v48  ;;  %v5103_v54 = vrot.slane %v13346_v25, %v12258_v7  ;;  %v5107_v38 = vrot.slane %v13346_v25, %v12263_v32 }
 0x591   :  { %v8085_v53 = vcombine.low %v8077_v60, %v8084_v36  ;;  %v8020_v34 = vcombine.low %v7998_v13, %v8005_v23  ;;  %v5111_v45 = vrot.slane %v13346_v25, %v12266_v43  ;;  %v5115_v29 = vrot.slane %v13346_v25, %v12269_v63 }
 0x592   :  { %v8021_v11 = vcombine.low %v8012_v5, %v8019_v9  ;;  %v8135_v33 = vcombine.low %v5087_v59, %v5091_v14  ;;  %v8136_v30 = vcombine.low %v5095_v55, %v5099_v61  ;;  %v13424_v15 = vsub.s32 %v13321_v31, %v12237_v42  ;;  %v13447_v14 = vpop.permute.xlu1 %8414  ;;  %v13454_v9 = vpop.permute.xlu0 %8411 }
 0x593   :  { %8552 = vperm.xlu1 %9517, %v8085_v53   ;;  %v8028_v28 = vrot.slane %v8020_v34, %v12319_v1  ;;  %v8137_v41 = vcombine.low %v5103_v54, %v5107_v38  ;;  %v8138_v21 = vcombine.low %v5111_v45, %v5115_v29  ;;  %v13432_v25 = vsub.s32 %v13340_v27, %v12237_v42 }
 0x594   :  { %v8035_v20 = vrot.slane %v8021_v11, %v12319_v1  ;;  %v8145_v6 = vrot.slane %v8135_v33, %v12319_v1  ;;  %v8152_v19 = vrot.slane %v8136_v30, %v12319_v1  ;;  %v8585_v49 = vadd.s32 4294967280, %v13321_v31 }
 0x595   :  { %v8159_v24 = vrot.slane %v8137_v41, %v12319_v1  ;;  %v8166_v51 = vrot.slane %v8138_v21, %v12319_v1  ;;  %v4671_v35 = vrot.slane %v13024_v46, %v12243_v18  ;;  %v8577_v60 = vrot.slane %v13228_v0, %v13424_v15 }
 0x596   :  { %v8036_v2 = vcombine.low %v8028_v28, %v8035_v20  ;;  %v8167_v56 = vcombine.low %v8145_v6, %v8152_v19  ;;  %v4675_v57 = vrot.slane %v13024_v46, %v12246_v52  ;;  %v4679_v27 = vrot.slane %v13024_v46, %v12249_v22 }
 0x597   :  { %v4683_v59 = vrot.slane %v13024_v46, %v12255_v48  ;;  %v8168_v36 = vcombine.low %v8159_v24, %v8166_v51  ;;  %v4687_v23 = vrot.slane %v13024_v46, %v12258_v7  ;;  %v4691_v5 = vrot.slane %v13024_v46, %v12263_v32 }
 0x598   :  { %8549 = vperm.xlu0 %9516, %v8036_v2   ;;  %v8175_v13 = vrot.slane %v8167_v56, %v12319_v1  ;;  %v8596_v55 = vrot.slane %v13246_v10, %v13432_v25  ;;  %v4695_v61 = vrot.slane %v13024_v46, %v12266_v43  ;;  %v4699_v54 = vrot.slane %v13024_v46, %v12269_v63  ;;  %v13481_v2 = vpop.permute.xlu1 %8420 }
 0x599   :  { %v7498_v53 = vcombine.low %v4671_v35, %v4675_v57  ;;  %v13463_v34 = vsub.s32 %v8585_v49, %v12237_v42  ;;  %v8182_v38 = vrot.slane %v8168_v36, %v12319_v1  ;;  %v7499_v45 = vcombine.low %v4679_v27, %v4683_v59  ;;  %v13489_v27 = vpop.permute.xlu0 %8417 }
 0x59a   :  { %v7500_v11 = vcombine.low %v4687_v23, %v4691_v5  ;;  %v8606_v29 = vadd.s32 4294967256, %v13321_v31  ;;  %v7501_v33 = vcombine.low %v4695_v61, %v4699_v54  ;;  %v5055_v28 = vrot.slane %v13169_v62, %v12243_v18 }
 0x59b   :  { %v7508_v30 = vrot.slane %v7498_v53, %v12319_v1  ;;  %v8183_v41 = vcombine.low %v8175_v13, %v8182_v38  ;;  %v7515_v20 = vrot.slane %v7499_v45, %v12319_v1  ;;  %v5059_v21 = vrot.slane %v13169_v62, %v12246_v52 }
 0x59c   :  { %v7522_v46 = vrot.slane %v7500_v11, %v12319_v1  ;;  %v7529_v6 = vrot.slane %v7501_v33, %v12319_v1  ;;  %v5063_v19 = vrot.slane %v13169_v62, %v12249_v22  ;;  %v5067_v49 = vrot.slane %v13169_v62, %v12255_v48 }
 0x59d   :  { %v5071_v24 = vrot.slane %v13169_v62, %v12258_v7  ;;  %8558 = vperm.xlu1 %9517, %v8183_v41   ;;  %v7530_v51 = vcombine.low %v7508_v30, %v7515_v20  ;;  %v5075_v56 = vrot.slane %v13169_v62, %v12263_v32  ;;  %v5079_v35 = vrot.slane %v13169_v62, %v12266_v43 }
 0x59e   :  { %v5083_v57 = vrot.slane %v13169_v62, %v12269_v63  ;;  %v8589_v59 = vrot.slane %v13271_v40, %v13463_v34  ;;  %v7531_v36 = vcombine.low %v7522_v46, %v7529_v6  ;;  %v8086_v13 = vcombine.low %v5055_v28, %v5059_v21  ;;  %v13511_v6 = vpop.permute.xlu1 %8426 }
 0x59f   :  { %v8087_v23 = vcombine.low %v5063_v19, %v5067_v49  ;;  %v13494_v5 = vsub.s32 %v8606_v29, %v12237_v42  ;;  %v7538_v61 = vrot.slane %v7530_v51, %v12319_v1  ;;  %v8088_v54 = vcombine.low %v5071_v24, %v5075_v56  ;;  %v13519_v56 = vpop.permute.xlu0 %8423 }
 0x5a0   :  { %v8089_v53 = vcombine.low %v5079_v35, %v5083_v57  ;;  %v7545_v38 = vrot.slane %v7531_v36, %v12319_v1  ;;  %v8096_v45 = vrot.slane %v8086_v13, %v12319_v1  ;;  %v4703_v11 = vrot.slane %v13150_v44, %v12243_v18 }
 0x5a1   :  { %v8103_v62 = vrot.slane %v8087_v23, %v12319_v1  ;;  %v8110_v33 = vrot.slane %v8088_v54, %v12319_v1  ;;  %v4707_v29 = vrot.slane %v13150_v44, %v12246_v52  ;;  %v4711_v28 = vrot.slane %v13150_v44, %v12249_v22 }
 0x5a2   :  { %v8117_v30 = vrot.slane %v8089_v53, %v12319_v1  ;;  %v8578_v41 = vadd.s32 4294967288, %v13321_v31  ;;  %v7546_v20 = vcombine.low %v7538_v61, %v7545_v38  ;;  %v4715_v21 = vrot.slane %v13150_v44, %v12255_v48 }
 0x5a3   :  { %v8118_v46 = vcombine.low %v8096_v45, %v8103_v62  ;;  %v4719_v49 = vrot.slane %v13150_v44, %v12258_v7  ;;  %v4723_v24 = vrot.slane %v13150_v44, %v12263_v32  ;;  %v4727_v51 = vrot.slane %v13150_v44, %v12266_v43 }
 0x5a4   :  { %v8119_v19 = vcombine.low %v8110_v33, %v8117_v30  ;;  %8519 = vperm.xlu0 %9516, %v7546_v20   ;;  %v4731_v57 = vrot.slane %v13150_v44, %v12269_v63  ;;  %v7547_v36 = vcombine.low %v4703_v11, %v4707_v29  ;;  %v7548_v13 = vcombine.low %v4711_v28, %v4715_v21 }
 0x5a5   :  { %v8126_v35 = vrot.slane %v8118_v46, %v12319_v1  ;;  %v7549_v61 = vcombine.low %v4719_v49, %v4723_v24  ;;  %v5151_v54 = vrot.slane %v13368_v39, %v12243_v18  ;;  %v5155_v53 = vrot.slane %v13368_v39, %v12246_v52 }
 0x5a6   :  { %v8133_v23 = vrot.slane %v8119_v19, %v12319_v1  ;;  %v7550_v38 = vcombine.low %v4727_v51, %v4731_v57  ;;  %v7557_v45 = vrot.slane %v7547_v36, %v12319_v1  ;;  %v7564_v62 = vrot.slane %v7548_v13, %v12319_v1  ;;  %v13543_v19 = vpop.permute.xlu1 %8432  ;;  %v13550_v57 = vpop.permute.xlu0 %8429 }
 0x5a7   :  { %v5159_v33 = vrot.slane %v13368_v39, %v12249_v22  ;;  %v7571_v11 = vrot.slane %v7549_v61, %v12319_v1  ;;  %v5163_v30 = vrot.slane %v13368_v39, %v12255_v48  ;;  %v5167_v29 = vrot.slane %v13368_v39, %v12258_v7 }
 0x5a8   :  { %v8134_v44 = vcombine.low %v8126_v35, %v8133_v23  ;;  %v7578_v28 = vrot.slane %v7550_v38, %v12319_v1  ;;  %v7579_v20 = vcombine.low %v7557_v45, %v7564_v62  ;;  %v5171_v46 = vrot.slane %v13368_v39, %v12263_v32 }
 0x5a9   :  { %v5175_v21 = vrot.slane %v13368_v39, %v12266_v43  ;;  %v13546_v49 = vsub.s32 %v8578_v41, %v12237_v42  ;;  %v5179_v24 = vrot.slane %v13368_v39, %v12269_v63  ;;  %v8233_v51 = vcombine.low %v5151_v54, %v5155_v53 }
 0x5aa   :  { %8555 = vperm.xlu1 %9517, %v8134_v44   ;;  %v8234_v35 = vcombine.low %v5159_v33, %v5163_v30  ;;  %v7580_v36 = vcombine.low %v7571_v11, %v7578_v28  ;;  %v7587_v13 = vrot.slane %v7579_v20, %v12319_v1  ;;  %v8235_v23 = vcombine.low %v5167_v29, %v5171_v46 }
 0x5ab   :  { %v8236_v61 = vcombine.low %v5175_v21, %v5179_v24  ;;  %v8243_v38 = vrot.slane %v8233_v51, %v12319_v1  ;;  %v5119_v41 = vrot.slane %v13193_v8, %v12243_v18  ;;  %v5123_v54 = vrot.slane %v13193_v8, %v12246_v52  ;;  %v13574_v21 = vpop.permute.xlu1 %8438 }
 0x5ac   :  { %v8250_v45 = vrot.slane %v8234_v35, %v12319_v1  ;;  %v7594_v62 = vrot.slane %v7580_v36, %v12319_v1  ;;  %v8257_v39 = vrot.slane %v8235_v23, %v12319_v1  ;;  %v5127_v53 = vrot.slane %v13193_v8, %v12249_v22  ;;  %v13579_v36 = vpop.permute.xlu0 %8435 }
 0x5ad   :  { %v8582_v33 = vrot.slane %v13420_v47, %v13546_v49  ;;  %v8264_v44 = vrot.slane %v8236_v61, %v12319_v1  ;;  %v5131_v30 = vrot.slane %v13193_v8, %v12255_v48  ;;  %v5135_v28 = vrot.slane %v13193_v8, %v12258_v7 }
 0x5ae   :  { %v8265_v11 = vcombine.low %v8243_v38, %v8250_v45  ;;  %v7595_v29 = vcombine.low %v7587_v13, %v7594_v62  ;;  %v5139_v20 = vrot.slane %v13193_v8, %v12263_v32  ;;  %v5143_v46 = vrot.slane %v13193_v8, %v12266_v43 }
 0x5af   :  { %v8266_v24 = vcombine.low %v8257_v39, %v8264_v44  ;;  %v5147_v51 = vrot.slane %v13193_v8, %v12269_v63  ;;  %v8184_v35 = vcombine.low %v5119_v41, %v5123_v54  ;;  %v8185_v13 = vcombine.low %v5127_v53, %v5131_v30 }
 0x5b0   :  { %v8273_v47 = vrot.slane %v8265_v11, %v12319_v1  ;;  %8522 = vperm.xlu0 %9516, %v7595_v29   ;;  %v8186_v23 = vcombine.low %v5135_v28, %v5139_v20  ;;  %v5183_v61 = vrot.slane %v13202_v58, %v12243_v18  ;;  %v5187_v39 = vrot.slane %v13202_v58, %v12246_v52  ;;  %v13605_v20 = vpop.permute.xlu1 %8444 }
 0x5b1   :  { %v8280_v38 = vrot.slane %v8266_v24, %v12319_v1  ;;  %v8187_v45 = vcombine.low %v5143_v46, %v5147_v51  ;;  %v8194_v62 = vrot.slane %v8184_v35, %v12319_v1  ;;  %v8584_v8 = vsel %vm8583_vm2, %v8582_v33, %v8577_v60  ;;  %v13609_v35 = vpop.permute.xlu0 %8441 }
 0x5b2   :  { %v8201_v41 = vrot.slane %v8185_v13, %v12319_v1  ;;  %v8208_v54 = vrot.slane %v8186_v23, %v12319_v1  ;;  %v5191_v53 = vrot.slane %v13202_v58, %v12249_v22  ;;  %v5195_v30 = vrot.slane %v13202_v58, %v12255_v48 }
 0x5b3   :  { %v8281_v44 = vcombine.low %v8273_v47, %v8280_v38  ;;  %v8215_v11 = vrot.slane %v8187_v45, %v12319_v1  ;;  %v5199_v29 = vrot.slane %v13202_v58, %v12258_v7  ;;  %v8599_v0 = vadd.s32 4294967264, %v13321_v31 }
 0x5b4   :  { %v8216_v28 = vcombine.low %v8194_v62, %v8201_v41  ;;  %v5203_v60 = vrot.slane %v13202_v58, %v12263_v32  ;;  %v5207_v33 = vrot.slane %v13202_v58, %v12266_v43  ;;  %v5211_v24 = vrot.slane %v13202_v58, %v12269_v63 }
 0x5b5   :  { %8564 = vperm.xlu1 %9517, %v8281_v44   ;;  %v8217_v46 = vcombine.low %v8208_v54, %v8215_v11  ;;  %v8282_v47 = vcombine.low %v5183_v61, %v5187_v39  ;;  %v8283_v51 = vcombine.low %v5191_v53, %v5195_v30  ;;  %v8591_v13 = vsel %vm8590_vm3, %v8589_v59, %v8584_v8 }
 0x5b6   :  { %v8224_v23 = vrot.slane %v8216_v28, %v12319_v1  ;;  %v8284_v38 = vcombine.low %v5199_v29, %v5203_v60  ;;  %v8285_v62 = vcombine.low %v5207_v33, %v5211_v24  ;;  %v13620_v61 = vsub.s32 %v8599_v0, %v12237_v42  ;;  %v13640_v29 = vpop.permute.xlu1 %8450  ;;  %v13647_v28 = vpop.permute.xlu0 %8447 }
 0x5b7   :  { %v8231_v45 = vrot.slane %v8217_v46, %v12319_v1  ;;  %v8292_v41 = vrot.slane %v8282_v47, %v12319_v1  ;;  %v8299_v58 = vrot.slane %v8283_v51, %v12319_v1  ;;  %v5215_v40 = vrot.slane %v13394_v3, %v12243_v18 }
 0x5b8   :  { %v8306_v39 = vrot.slane %v8284_v38, %v12319_v1  ;;  %v5219_v59 = vrot.slane %v13394_v3, %v12246_v52  ;;  %v8313_v54 = vrot.slane %v8285_v62, %v12319_v1  ;;  %v5223_v44 = vrot.slane %v13394_v3, %v12249_v22 }
 0x5b9   :  { %v8232_v8 = vcombine.low %v8224_v23, %v8231_v45  ;;  %v8314_v53 = vcombine.low %v8292_v41, %v8299_v58  ;;  %v8598_v11 = vsel %vm8597_vm4, %v8596_v55, %v8591_v13  ;;  %v5227_v30 = vrot.slane %v13394_v3, %v12255_v48 }
 0x5ba   :  { %v5231_v18 = vrot.slane %v13394_v3, %v12258_v7  ;;  %v5235_v52 = vrot.slane %v13394_v3, %v12263_v32  ;;  %v8315_v0 = vcombine.low %v8306_v39, %v8313_v54  ;;  %v5239_v10 = vrot.slane %v13394_v3, %v12266_v43  ;;  %v13667_v41 = vpop.permute.xlu1 %8456 }
 0x5bb   :  { %8561 = vperm.xlu1 %9517, %v8232_v8   ;;  %v8322_v22 = vrot.slane %v8314_v53, %v12319_v1  ;;  %v5243_v55 = vrot.slane %v13394_v3, %v12269_v63  ;;  %v8620_v48 = vadd.s32 4294967240, %v13321_v31  ;;  %v8331_v7 = vcombine.low %v5215_v40, %v5219_v59  ;;  %v13672_v40 = vpop.permute.xlu0 %8453 }
 0x5bc   :  { %v8332_v60 = vcombine.low %v5223_v44, %v5227_v30  ;;  %v8333_v33 = vcombine.low %v5231_v18, %v5235_v52  ;;  %v8329_v32 = vrot.slane %v8315_v0, %v12319_v1  ;;  %v8613_v24 = vadd.s32 4294967248, %v13321_v31 }
 0x5bd   :  { %v8334_v46 = vcombine.low %v5239_v10, %v5243_v55  ;;  %v8603_v47 = vrot.slane %v13317_v50, %v13620_v61  ;;  %v8341_v43 = vrot.slane %v8331_v7, %v12319_v1  ;;  %v8610_v51 = vrot.slane %v13292_v37, %v13494_v5 }
 0x5be   :  { %v8348_v63 = vrot.slane %v8332_v60, %v12319_v1  ;;  %v8355_v3 = vrot.slane %v8333_v33, %v12319_v1  ;;  %v8330_v13 = vcombine.low %v8322_v22, %v8329_v32  ;;  %v13661_v38 = vsub.s32 %v8613_v24, %v12237_v42  ;;  %v8463_v55 = vpop.permute.xlu1 %8462 }
 0x5bf   :  { %v8362_v23 = vrot.slane %v8334_v46, %v12319_v1  ;;  %v13664_v45 = vsub.s32 %v8620_v48, %v12237_v42  ;;  %v8605_v50 = vsel %vm8604_vm5, %v8603_v47, %v8598_v11  ;;  %v8634_v39 = vadd.s32 4294967224, %v13321_v31  ;;  %v8460_v7 = vpop.permute.xlu0 %8459 }
 0x5c0   :  { %v8363_v62 = vcombine.low %v8341_v43, %v8348_v63  ;;  %8567 = vperm.xlu1 %9517, %v8330_v13   ;;  %v8617_v37 = vrot.slane %v13361_v12, %v13661_v38  ;;  %v8641_v59 = vadd.s32 4294967216, %v13321_v31  ;;  %v8627_v54 = vadd.s32 4294967232, %v13321_v31 }
 0x5c1   :  { %v8364_v58 = vcombine.low %v8355_v3, %v8362_v23  ;;  %v8612_v44 = vsel %vm8611_vm6, %v8610_v51, %v8605_v50  ;;  %v8624_v11 = vrot.slane %v13332_v16, %v13664_v45  ;;  %v13686_v52 = vsub.s32 %v8634_v39, %v12237_v42 }
 0x5c2   :  { %v8371_v8 = vrot.slane %v8363_v62, %v12319_v1  ;;  %v8619_v30 = vsel %vm8618_vm7, %v8617_v37, %v8612_v44  ;;  %v13683_v12 = vsub.s32 %v8627_v54, %v12237_v42  ;;  %v8648_v0 = vadd.s32 4294967208, %v13321_v31  ;;  %v8469_v23 = vpop.permute.xlu1 %8468 }
 0x5c3   :  { %v8378_v53 = vrot.slane %v8364_v58, %v12319_v1  ;;  %v13690_v22 = vsub.s32 %v8641_v59, %v12237_v42  ;;  %v8655_v10 = vadd.s32 4294967200, %v13321_v31  ;;  %v8626_v48 = vsel %vm8625_vm8, %v8624_v11, %v8619_v30  ;;  %v8466_v50 = vpop.permute.xlu0 %8465 }
 0x5c4   :  { %v8631_v16 = vrot.slane %v13416_v26, %v13683_v12  ;;  %v8686_v60 = vrot.slane %v13550_v57, %v13424_v15  ;;  %v8638_v32 = vrot.slane %v13388_v17, %v13686_v52  ;;  %v13702_v46 = vsub.s32 %v8648_v0, %v12237_v42 }
 0x5c5   :  { %v8379_v18 = vcombine.low %v8371_v8, %v8378_v53  ;;  %v8662_v24 = vadd.s32 4294967192, %v13321_v31  ;;  %v8690_v26 = vrot.slane %v13543_v19, %v13546_v49  ;;  %v8645_v47 = vrot.slane %v13454_v9, %v13690_v22 }
 0x5c6   :  { %v8633_v33 = vsel %vm8632_vm9, %v8631_v16, %v8626_v48  ;;  %v13710_v43 = vsub.s32 %v8655_v10, %v12237_v42  ;;  %v8695_v57 = vrot.slane %v13579_v36, %v13463_v34  ;;  %v8700_v17 = vrot.slane %v13574_v21, %v13432_v25  ;;  %v8475_v30 = vpop.permute.xlu1 %8474 }
 0x5c7   :  { %8570 = vperm.xlu1 %9517, %v8379_v18   ;;  %v8669_v63 = vadd.s32 4294967184, %v13321_v31  ;;  %v8640_v3 = vsel %vm8639_vm10, %v8638_v32, %v8633_v33  ;;  %v8691_v51 = vsel %vm8583_vm2, %v8690_v26, %v8686_v60  ;;  %v8705_v19 = vrot.slane %v13609_v35, %v13620_v61  ;;  %v8472_v18 = vpop.permute.xlu0 %8471 }
 0x5c8   :  { %v8676_v9 = vadd.s32 4294967176, %v13321_v31  ;;  %v8696_v13 = vsel %vm8590_vm3, %v8695_v57, %v8691_v51  ;;  %v8710_v36 = vrot.slane %v13605_v20, %v13494_v5  ;;  %v8652_v21 = vrot.slane %v13447_v14, %v13702_v46 }
 0x5c9   :  { %v13728_v62 = vsub.s32 %v8662_v24, %v12237_v42  ;;  %v8701_v58 = vsel %vm8597_vm4, %v8700_v17, %v8696_v13  ;;  %v8720_v35 = vrot.slane %v13640_v29, %v13664_v45  ;;  %v8715_v31 = vrot.slane %v13647_v28, %v13661_v38 }
 0x5ca   :  { %v8647_v37 = vsel %vm8646_vm11, %v8645_v47, %v8640_v3  ;;  %v8706_v20 = vsel %vm8604_vm5, %v8705_v19, %v8701_v58  ;;  %v8659_v14 = vrot.slane %v13489_v27, %v13710_v43  ;;  %v8730_v59 = vrot.slane %v13667_v41, %v13686_v52  ;;  %v8481_v3 = vpop.permute.xlu1 %8480 }
 0x5cb   :  { %v8711_v39 = vsel %vm8611_vm6, %v8710_v36, %v8706_v20  ;;  %v8725_v8 = vrot.slane %v13672_v40, %v13683_v12  ;;  %v13745_v29 = vsub.s32 %v8676_v9, %v12237_v42  ;;  %v8654_v54 = vsel %vm8653_vm12, %v8652_v21, %v8647_v37 }
 0x5cc   :  { %v8716_v28 = vsel %vm8618_vm7, %v8715_v31, %v8711_v39  ;;  %v8666_v53 = vrot.slane %v13481_v2, %v13728_v62  ;;  %v8740_v44 = vrot.slane %v8463_v55, %v13702_v46  ;;  %v13754_v41 = vsub.s32 %v8669_v63, %v12237_v42  ;;  %v8478_v63 = vpop.permute.xlu0 %8477 }
 0x5cd   :  { %v8721_v27 = vsel %vm8625_vm8, %v8720_v35, %v8716_v28  ;;  %v8735_v40 = vrot.slane %v8460_v7, %v13690_v22  ;;  %v8750_v10 = vrot.slane %v8469_v23, %v13728_v62  ;;  %v8661_v2 = vsel %vm8660_vm13, %v8659_v14, %v8654_v54 }
 0x5ce   :  { %v8726_v11 = vsel %vm8632_vm9, %v8725_v8, %v8721_v27  ;;  %v8745_v16 = vrot.slane %v8466_v50, %v13710_v43  ;;  %v8668_v42 = vsel %vm8667_vm14, %v8666_v53, %v8661_v2  ;;  %v8680_v48 = vrot.slane %v13511_v6, %v13745_v29  ;;  %v8487_v19 = vpop.permute.xlu1 %8486 }
 0x5cf   :  { %v8731_v0 = vsel %vm8639_vm10, %v8730_v59, %v8726_v11  ;;  %v8760_v60 = vrot.slane %v8475_v30, %v13745_v29  ;;  %v8673_v33 = vrot.slane %v13519_v56, %v13754_v41  ;;  %v8755_v32 = vrot.slane %v8472_v18, %v13754_v41 }
 0x5d0   :  { %v8736_v55 = vsel %vm8646_vm11, %v8735_v40, %v8731_v0  ;;  %v8484_v51 = vpop.permute.xlu0 %8483  ;;  %v8769_v27 = vrot.slane %v8481_v3, %v13546_v49  ;;  %v8765_v40 = vrot.slane %v8478_v63, %v13424_v15  ;;  %v8779_v0 = vrot.slane %v8487_v19, %v13432_v25 }
 0x5d1   :  { %v8741_v7 = vsel %vm8653_vm12, %v8740_v44, %v8736_v55  ;;  %v8675_v47 = vsel %vm8674_vm15, %v8673_v33, %v8668_v42  ;;  %v8774_v2 = vrot.slane %v8484_v51, %v13463_v34  ;;  %vm8947_vm1 = vcmp.lt.s32.totalorder %v3196_v4, 512 }
 0x5d2   :  { %v8746_v24 = vsel %vm8660_vm13, %v8745_v16, %v8741_v7  ;;  %v13776_v6 = vsel %vm8681_vm0, %v8680_v48, %v8675_v47  ;;  %v8493_v13 = vpop.permute.xlu1 %8492  ;;  %v8770_v18 = vsel %vm8583_vm2, %v8769_v27, %v8765_v40 }
 0x5d3   :  { %v8751_v26 = vsel %vm8667_vm14, %v8750_v10, %v8746_v24  ;;  %v8775_v48 = vsel %vm8590_vm3, %v8774_v2, %v8770_v18  ;;  %v8789_v33 = vrot.slane %v8493_v13, %v13494_v5 }
 0x5d4   :  { %v8756_v57 = vsel %vm8674_vm15, %v8755_v32, %v8751_v26  ;;  %v8490_v9 = vpop.permute.xlu0 %8489 }
 0x5d5   :  { %v13779_v17 = vsel %vm8681_vm0, %v8760_v60, %v8756_v57  ;;  %v8780_v60 = vsel %vm8597_vm4, %v8779_v0, %v8775_v48 }
 0x5d6   :  { %v8920_v56 = vcombine.low %v13776_v6, %v13779_v17  ;;  %v8499_v23 = vpop.permute.xlu1 %8498 }
 0x5d7   :  { %v8799_v3 = vrot.slane %v8499_v23, %v13664_v45 }
 0x5d8   :  { %v8496_v36 = vpop.permute.xlu0 %8495 }
 0x5da   :  { %v8505_v58 = vpop.permute.xlu1 %8504 }
 0x5dc   :  { %v8502_v21 = vpop.permute.xlu0 %8501 }
 0x5dd   :  { %v8804_v23 = vrot.slane %v8502_v21, %v13683_v12 }
 0x5e0   :  { %v13783_v50 = vpop.permute.xlu0 %8510 }
 0x5e3   :  { %v8529_v35 = vpop.permute.xlu1 %8528 }
 0x5e4   :  { %v8508_v31 = vpop.permute.xlu0 %8507  ;;  %v8848_v10 = vrot.slane %v8529_v35, %v13546_v49  ;;  %v8784_v49 = vrot.slane %v8490_v9, %v13620_v61 }
 0x5e6   :  { %v8785_v24 = vsel %vm8604_vm5, %v8784_v49, %v8780_v60 }
 0x5e7   :  { %v8790_v63 = vsel %vm8611_vm6, %v8789_v33, %v8785_v24 }
 0x5e8   :  { %v13785_v20 = vpop.permute.xlu0 %8516 }
 0x5ec   :  { %v13787_v39 = vpop.permute.xlu0 %8513 }
 0x5ed   :  { %v8824_v21 = vrot.slane %v13787_v39, %v13710_v43 }
 0x5ee   :  { %v8535_v37 = vpop.permute.xlu1 %8534 }
 0x5ef   :  { %v8858_v32 = vrot.slane %v8535_v37, %v13432_v25  ;;  %v8794_v25 = vrot.slane %v8496_v36, %v13661_v38  ;;  %v8814_v36 = vrot.slane %v8508_v31, %v13690_v22 }
 0x5f0   :  { %v8526_v8 = vpop.permute.xlu0 %8525 }
 0x5f1   :  { %v8844_v11 = vrot.slane %v8526_v8, %v13424_v15  ;;  %v8795_v9 = vsel %vm8618_vm7, %v8794_v25, %v8790_v63  ;;  %v8809_v8 = vrot.slane %v8505_v58, %v13686_v52 }
 0x5f2   :  { %v8800_v37 = vsel %vm8625_vm8, %v8799_v3, %v8795_v9 }
 0x5f3   :  { %v8849_v55 = vsel %vm8583_vm2, %v8848_v10, %v8844_v11 }
 0x5f4   :  { %v8532_v54 = vpop.permute.xlu0 %8531 }
 0x5f5   :  { %v8853_v30 = vrot.slane %v8532_v54, %v13463_v34 }
 0x5f7   :  { %v8854_v7 = vsel %vm8590_vm3, %v8853_v30, %v8849_v55 }
 0x5f8   :  { %v8541_v14 = vpop.permute.xlu1 %8540  ;;  %v8859_v34 = vsel %vm8597_vm4, %v8858_v32, %v8854_v7 }
 0x5f9   :  { %v8868_v51 = vrot.slane %v8541_v14, %v13494_v5 }
 0x5fe   :  { %v8538_v44 = vpop.permute.xlu0 %8537 }
 0x5ff   :  { %v8863_v15 = vrot.slane %v8538_v44, %v13620_v61 }
 0x601   :  { %v8864_v26 = vsel %vm8604_vm5, %v8863_v15, %v8859_v34 }
 0x602   :  { %v8869_v61 = vsel %vm8611_vm6, %v8868_v51, %v8864_v26 }
 0x603   :  { %v8547_v59 = vpop.permute.xlu1 %8546 }
 0x604   :  { %v8878_v54 = vrot.slane %v8547_v59, %v13664_v45 }
 0x609   :  { %v8544_v42 = vpop.permute.xlu0 %8543 }
 0x60a   :  { %v8873_v47 = vrot.slane %v8544_v42, %v13661_v38  ;;  %v8805_v38 = vsel %vm8632_vm9, %v8804_v23, %v8800_v37 }
 0x60b   :  { %v8810_v11 = vsel %vm8639_vm10, %v8809_v8, %v8805_v38 }
 0x60c   :  { %v8874_v13 = vsel %vm8618_vm7, %v8873_v47, %v8869_v61 }
 0x60d   :  { %v8879_v14 = vsel %vm8625_vm8, %v8878_v54, %v8874_v13 }
 0x60e   :  { %v8553_v28 = vpop.permute.xlu1 %8552 }
 0x60f   :  { %v8888_v58 = vrot.slane %v8553_v28, %v13686_v52 }
 0x613   :  { %v8550_v19 = vpop.permute.xlu0 %8549 }
 0x614   :  { %v8883_v35 = vrot.slane %v8550_v19, %v13683_v12  ;;  %v8815_v12 = vsel %vm8646_vm11, %v8814_v36, %v8810_v11 }
 0x616   :  { %v8884_v27 = vsel %vm8632_vm9, %v8883_v35, %v8879_v14 }
 0x617   :  { %v8889_v45 = vsel %vm8639_vm10, %v8888_v58, %v8884_v27 }
 0x618   :  { %v8559_v53 = vpop.permute.xlu1 %8558 }
 0x619   :  { %v8898_v18 = vrot.slane %v8559_v53, %v13702_v46 }
 0x61f   :  { %v8520_v40 = vpop.permute.xlu0 %8519 }
 0x620   :  { %v8834_v2 = vrot.slane %v8520_v40, %v13754_v41 }
 0x625   :  { %v8556_v16 = vpop.permute.xlu1 %8555 }
 0x626   :  { %v8893_v44 = vrot.slane %v8556_v16, %v13690_v22  ;;  %v8819_v22 = vrot.slane %v13783_v50, %v13702_v46 }
 0x628   :  { %v8894_v59 = vsel %vm8646_vm11, %v8893_v44, %v8889_v45  ;;  %v8820_v52 = vsel %vm8653_vm12, %v8819_v22, %v8815_v12 }
 0x629   :  { %v8899_v28 = vsel %vm8653_vm12, %v8898_v18, %v8894_v59  ;;  %v8825_v10 = vsel %vm8660_vm13, %v8824_v21, %v8820_v52 }
 0x62b   :  { %v8523_v0 = vpop.permute.xlu0 %8522 }
 0x62c   :  { %v8839_v46 = vrot.slane %v8523_v0, %v13745_v29 }
 0x630   :  { %v8565_v57 = vpop.permute.xlu1 %8564 }
 0x631   :  { %v8908_v50 = vrot.slane %v8565_v57, %v13728_v62 }
 0x636   :  { %v8562_v5 = vpop.permute.xlu1 %8561 }
 0x637   :  { %v8903_v31 = vrot.slane %v8562_v5, %v13710_v43  ;;  %v8829_v43 = vrot.slane %v13785_v20, %v13728_v62  ;;  %v8928_v62 = vrot.slane %v8920_v56, %v12319_v1 }
 0x639   :  { %v8904_v39 = vsel %vm8660_vm13, %v8903_v31, %v8899_v28  ;;  %v8830_v55 = vsel %vm8667_vm14, %v8829_v43, %v8825_v10 }
 0x63a   :  { %v8909_v42 = vsel %vm8667_vm14, %v8908_v50, %v8904_v39  ;;  %v8835_v7 = vsel %vm8674_vm15, %v8834_v2, %v8830_v55 }
 0x63b   :  { %v8568_v30 = vpop.permute.xlu1 %8567 }
 0x63c   :  { %v8913_v16 = vrot.slane %v8568_v30, %v13754_v41  ;;  %v8840_v41 = vsel %vm8681_vm0, %v8839_v46, %v8835_v7 }
 0x63e   :  { %v8914_v15 = vsel %vm8674_vm15, %v8913_v16, %v8909_v42 }
 0x642   :  { %v8571_v53 = vpop.permute.xlu1 %8570 }
 0x643   :  { %v8918_v48 = vrot.slane %v8571_v53, %v13745_v29 }
 0x645   :  { %v8919_v60 = vsel %vm8681_vm0, %v8918_v48, %v8914_v15 }
 0x646   :  { %v8921_v20 = vcombine.low %v8840_v41, %v8919_v60 }
 0x648   :  { %v8935_v33 = vrot.slane %v8921_v20, %v12319_v1 }
 0x64a   :  { %v8936_v32 = vcombine.low %v8928_v62, %v8935_v33 }
 0x64c   :  { %v8943_v29 = vrot.slane %v8936_v32, %v12319_v1 }
 0x64e   :  { %8949 = vst.msk [vmem:[#allocation2] sm:$0xf] %vm8947_vm1, %v8943_v29 }
 0x64f   :  { %9850 = shalt.err (!%p9847_p4)
}
 0x650   :  { %8959 = dma.vmem_to_hbm [thread:$0]  %s8957_s14, 64, %s13869_s5, [#allocation3]  }
 0x651   :  { %9859 = dma.done.wait [#allocation3], 64  }
 0x652   :  { %9860 = vsyncadd [#allocation3], 4294967232 }
 0x653   :  { %8963 = vsyncpa [#allocation3], 1 }

</bundles_post_ra>
